<compile_context>
chip_gen: v7x
topology: tpu7x:2x2x1
jax: 0.10.0
libtpu: 0.0.40
codegen_flags: <defaults>
</compile_context>

<pallas_src>
import jax
import jax.numpy as jnp
from jax.experimental import pallas as pl
from jax.experimental.pallas import tpu as pltpu

N_STATES = 4
N_ACTIONS = 6
LAYER_DIMS = [N_STATES, 300, 400, 600, 600, 400, 300, N_ACTIONS]
N_LAYERS = len(LAYER_DIMS) - 1
LANE = 128


def _round_up(x, m):
    return (x + m - 1) // m * m


# Lane-dense feature widths: [4, 384, 512, 640, 640, 512, 384, 128]
PADDED_DIMS = [N_STATES] + [_round_up(d, LANE) for d in LAYER_DIMS[1:]]
BIAS_WIDTH = max(PADDED_DIMS[1:])   # 640


def qnet_kernel(x_ref, w1, w2, w3, w4, w5, w6, w7, b_ref, out_ref):
    """Fused 7-layer MLP forward for one batch tile.

    x_ref : (TM, 4)              f32 activations tile
    w_i   : (in_pad_i, out_pad_i) bf16 weights, lane-dense padded dims
    b_ref : (7, 640)             f32, row i = bias of layer i (zero padded)
    out   : (TM, 128)            f32 (only first 6 cols are real)
    """
    h = x_ref[...].astype(jnp.float32)
    weight_refs = (w1, w2, w3, w4, w5, w6, w7)
    for i, w_ref in enumerate(weight_refs):
        w = w_ref[...]                               # bf16, lane-dense
        out_dim = w.shape[1]
        b = b_ref[i:i + 1, :out_dim]                 # (1, out_dim) f32, static slice
        # bf16 MXU matmul with f32 accumulation; bias + ReLU on the f32 acc.
        h = jnp.dot(h.astype(jnp.bfloat16), w,
                    preferred_element_type=jnp.float32) + b
        if i < N_LAYERS - 1:
            h = jnp.maximum(h, 0.0)                  # ReLU (fc1..fc6)
    out_ref[...] = h.astype(out_ref.dtype)


def init_params(key, dims=LAYER_DIMS, dtype=jnp.float32):
    """Deterministic init mimicking torch.nn.Linear default U[-1/sqrt(fan_in), +]."""
    params = []
    for i in range(len(dims) - 1):
        fan_in, fan_out = dims[i], dims[i + 1]
        key, kw, kb = jax.random.split(key, 3)
        bound = 1.0 / jnp.sqrt(jnp.float32(fan_in))
        # Stored as (in, out) == transpose of PyTorch's (out, in) weight.
        w = jax.random.uniform(kw, (fan_in, fan_out), dtype, -bound, bound)
        b = jax.random.uniform(kb, (fan_out,), dtype, -bound, bound)
        params.append((w, b))
    return params


def prepare_params(params):
    """One-time packing, OUTSIDE the per-call hot path.

    * cast weights to bf16 (halves the weight DMA that dominates small-batch
      latency)
    * zero-pad every feature dim to a multiple of 128 (lane-dense activations,
      lane-dense final store; padded lanes stay exactly zero)
    * coalesce all 7 biases into a single (7, 640) f32 array (1 DMA, not 7)
    """
    n = len(params)
    b_packed = jnp.zeros((n, BIAS_WIDTH), jnp.float32)
    weights = []
    for i, (w, b) in enumerate(params):
        fi, fo = w.shape
        fip, fop = PADDED_DIMS[i], PADDED_DIMS[i + 1]
        wq = jnp.zeros((fip, fop), jnp.bfloat16).at[:fi, :fo].set(
            w.astype(jnp.bfloat16))
        weights.append(wq)
        b_packed = b_packed.at[i, :fo].set(b.astype(jnp.float32))
    return tuple(weights), b_packed


def _choose_tm(B):
    """Batch tile size.

    * B <= 256: single tile (grid=1), rounded up to the 8-sublane minimum.
    * B  > 256: 256-512 rows per tile with >= 2 grid steps, so the 'parallel'
      axis shards across v7x's two TensorCores and the v6e/v7x 256-row MXU M
      dim is filled while per-grid-step overhead stays amortized.
    """
    if B <= 256:
        return max(8, _round_up(B, 8))
    return min(512, _round_up((B + 1) // 2, 8))


@jax.jit
def qnetwork_forward(state, weights, bias_packed):
    """state: (B, 4) f32 -> (B, 6) f32.  weights/bias_packed from prepare_params()."""
    B, n_states = state.shape
    assert n_states == N_STATES

    TM = _choose_tm(B)
    Bp = _round_up(B, TM)

    xp = state.astype(jnp.float32)
    if Bp != B:                                    # only pad when actually needed
        xp = jnp.zeros((Bp, N_STATES), jnp.float32).at[:B].set(xp)

    grid = (Bp // TM,)
    # Weights / bias use a constant index_map -> VMEM-resident across all tiles.
    w_specs = [pl.BlockSpec(w.shape, lambda i: (0, 0)) for w in weights]

    flops = 2 * Bp * sum(PADDED_DIMS[i] * PADDED_DIMS[i + 1]
                         for i in range(N_LAYERS))
    bytes_accessed = (sum(int(w.size) * 2 for w in weights)      # bf16 weights
                      + int(bias_packed.size) * 4                # f32 bias
                      + Bp * N_STATES * 4 + Bp * LANE * 4)       # x in, out
    cost = pl.CostEstimate(flops=flops, transcendentals=0,
                           bytes_accessed=bytes_accessed)

    out_p = pl.pallas_call(
        qnet_kernel,
        out_shape=jax.ShapeDtypeStruct((Bp, LANE), jnp.float32),
        grid=grid,
        in_specs=[pl.BlockSpec((TM, N_STATES), lambda i: (i, 0))]
                 + w_specs
                 + [pl.BlockSpec(bias_packed.shape, lambda i: (0, 0))],
        out_specs=pl.BlockSpec((TM, LANE), lambda i: (i, 0)),
        compiler_params=pltpu.CompilerParams(
            dimension_semantics=("parallel",),
            vmem_limit_bytes=32 << 20,   # peak ~13 MiB at TM=512; fits v7x 64 MiB
        ),
        cost_estimate=cost,
    )(xp, *weights, bias_packed)

    return out_p[:B, :N_ACTIONS]


def qnetwork_forward_ref(state, params):
    """Pure-JAX reference using the same bf16-weights / f32-accumulate recipe.

    Note: vs the true fp32 PyTorch module there is an O(1e-3) relative error
    from bf16 weights + per-layer activation re-cast; fine for RL inference.
    """
    h = state.astype(jnp.float32)
    n = len(params)
    for i, (w, b) in enumerate(params):
        h = jnp.dot(h.astype(jnp.bfloat16), w.astype(jnp.bfloat16),
                    preferred_element_type=jnp.float32) + b.astype(jnp.float32)
        if i < n - 1:
            h = jnp.maximum(h, 0.0)
    return h


# TODO(synk): optimizer / MSELoss / checkpoint I/O from the PyTorch module are
# training-harness state, not part of forward(), and are not implemented here.

if __name__ == "__main__":
    key = jax.random.PRNGKey(0)
    k_params, k_state = jax.random.split(key)

    params = init_params(k_params)
    weights, bias_packed = prepare_params(params)   # one-time, off the hot path

    # Latency path: tiny batch of environment observations (grid=1, TM=8).
    state_small = jax.random.normal(k_state, (2, N_STATES), jnp.float32)
    out_small = jax.block_until_ready(
        qnetwork_forward(state_small, weights, bias_packed))
    ref_small = qnetwork_forward_ref(state_small, params)
    assert out_small.shape == (2, N_ACTIONS), out_small.shape
    assert jnp.allclose(out_small, ref_small, atol=1e-3, rtol=1e-3), (
        out_small, ref_small)

    # Throughput path: multi-tile grid (TM=264, grid=2) exercising batch
    # padding and the 'parallel' axis (megacore sharding on v7x).
    state_big = jax.random.normal(jax.random.PRNGKey(1), (520, N_STATES),
                                  jnp.float32)
    out_big = jax.block_until_ready(
        qnetwork_forward(state_big, weights, bias_packed))
    ref_big = qnetwork_forward_ref(state_big, params)
    assert out_big.shape == (520, N_ACTIONS), out_big.shape
    assert jnp.allclose(out_big, ref_big, atol=1e-3, rtol=1e-3)

    print("KERNEL_OK")
</pallas_src>

<mosaic_0001>
module attributes {stable_mosaic.version = 11 : i64} {
  func.func @qnet_kernel(%arg0: i32, %arg1: memref<8x4xf32, #tpu.memory_space<vmem>>, %arg2: memref<4x384xbf16, #tpu.memory_space<vmem>>, %arg3: memref<384x512xbf16, #tpu.memory_space<vmem>>, %arg4: memref<512x640xbf16, #tpu.memory_space<vmem>>, %arg5: memref<640x640xbf16, #tpu.memory_space<vmem>>, %arg6: memref<640x512xbf16, #tpu.memory_space<vmem>>, %arg7: memref<512x384xbf16, #tpu.memory_space<vmem>>, %arg8: memref<384x128xbf16, #tpu.memory_space<vmem>>, %arg9: memref<7x640xf32, #tpu.memory_space<vmem>>, %arg10: memref<8x128xf32, #tpu.memory_space<vmem>>) attributes {dimension_semantics = [#tpu.dimension_semantics<parallel>], iteration_bounds = array<i64: 1>, scalar_prefetch = 0 : i64, scratch_operands = 0 : i64, tpu.core_type = #tpu.core_type<tc>, window_params = [{transform_indices = @transform_0, window_bounds = array<i64: 8, 4>}, {pipeline_mode = #tpu.pipeline_mode<synchronous>, transform_indices = @transform_1, window_bounds = array<i64: 4, 384>}, {pipeline_mode = #tpu.pipeline_mode<synchronous>, transform_indices = @transform_2, window_bounds = array<i64: 384, 512>}, {pipeline_mode = #tpu.pipeline_mode<synchronous>, transform_indices = @transform_3, window_bounds = array<i64: 512, 640>}, {pipeline_mode = #tpu.pipeline_mode<synchronous>, transform_indices = @transform_4, window_bounds = array<i64: 640, 640>}, {pipeline_mode = #tpu.pipeline_mode<synchronous>, transform_indices = @transform_5, window_bounds = array<i64: 640, 512>}, {pipeline_mode = #tpu.pipeline_mode<synchronous>, transform_indices = @transform_6, window_bounds = array<i64: 512, 384>}, {pipeline_mode = #tpu.pipeline_mode<synchronous>, transform_indices = @transform_7, window_bounds = array<i64: 384, 128>}, {pipeline_mode = #tpu.pipeline_mode<synchronous>, transform_indices = @transform_8, window_bounds = array<i64: 7, 640>}, {transform_indices = @transform_9, window_bounds = array<i64: 8, 128>}]} {
    %c0 = arith.constant 0 : index
    %c0_0 = arith.constant 0 : index
    %0 = vector.load %arg1[%c0, %c0_0] : memref<8x4xf32, #tpu.memory_space<vmem>>, vector<8x4xf32>
    %c0_1 = arith.constant 0 : index
    %c0_2 = arith.constant 0 : index
    %1 = vector.load %arg2[%c0_1, %c0_2] : memref<4x384xbf16, #tpu.memory_space<vmem>>, vector<4x384xbf16>
    %c0_3 = arith.constant 0 : index
    %c0_4 = arith.constant 0 : index
    %2 = vector.load %arg9[%c0_3, %c0_4] : memref<7x640xf32, #tpu.memory_space<vmem>>, vector<1x384xf32>
    %3 = arith.truncf %0 : vector<8x4xf32> to vector<8x4xbf16>
    %cst = arith.constant dense<0.000000e+00> : vector<8x384xf32>
    %4 = tpu.matmul %3, %1, %cst {dimension_numbers = #tpu.dot_dimension_numbers<[1], [0], [0], [1], [0, 0, 1, 1], [], []>} : vector<8x4xbf16>, vector<4x384xbf16>, vector<8x384xf32> -> vector<8x384xf32>
    %5 = vector.broadcast %2 : vector<1x384xf32> to vector<8x384xf32>
    %6 = arith.addf %4, %5 : vector<8x384xf32>
    %cst_5 = arith.constant 0.000000e+00 : f32
    %7 = vector.broadcast %cst_5 : f32 to vector<8x384xf32>
    %8 = arith.maximumf %6, %7 : vector<8x384xf32>
    %c0_6 = arith.constant 0 : index
    %c0_7 = arith.constant 0 : index
    %9 = vector.load %arg3[%c0_6, %c0_7] : memref<384x512xbf16, #tpu.memory_space<vmem>>, vector<384x512xbf16>
    %c1 = arith.constant 1 : index
    %c0_8 = arith.constant 0 : index
    %10 = vector.load %arg9[%c1, %c0_8] : memref<7x640xf32, #tpu.memory_space<vmem>>, vector<1x512xf32>
    %11 = arith.truncf %8 : vector<8x384xf32> to vector<8x384xbf16>
    %cst_9 = arith.constant dense<0.000000e+00> : vector<8x512xf32>
    %12 = tpu.matmul %11, %9, %cst_9 {dimension_numbers = #tpu.dot_dimension_numbers<[1], [0], [0], [1], [0, 0, 1, 1], [], []>} : vector<8x384xbf16>, vector<384x512xbf16>, vector<8x512xf32> -> vector<8x512xf32>
    %13 = vector.broadcast %10 : vector<1x512xf32> to vector<8x512xf32>
    %14 = arith.addf %12, %13 : vector<8x512xf32>
    %cst_10 = arith.constant 0.000000e+00 : f32
    %15 = vector.broadcast %cst_10 : f32 to vector<8x512xf32>
    %16 = arith.maximumf %14, %15 : vector<8x512xf32>
    %c0_11 = arith.constant 0 : index
    %c0_12 = arith.constant 0 : index
    %17 = vector.load %arg4[%c0_11, %c0_12] : memref<512x640xbf16, #tpu.memory_space<vmem>>, vector<512x640xbf16>
    %c2 = arith.constant 2 : index
    %c0_13 = arith.constant 0 : index
    %18 = vector.load %arg9[%c2, %c0_13] : memref<7x640xf32, #tpu.memory_space<vmem>>, vector<1x640xf32>
    %19 = arith.truncf %16 : vector<8x512xf32> to vector<8x512xbf16>
    %cst_14 = arith.constant dense<0.000000e+00> : vector<8x640xf32>
    %20 = tpu.matmul %19, %17, %cst_14 {dimension_numbers = #tpu.dot_dimension_numbers<[1], [0], [0], [1], [0, 0, 1, 1], [], []>} : vector<8x512xbf16>, vector<512x640xbf16>, vector<8x640xf32> -> vector<8x640xf32>
    %21 = vector.broadcast %18 : vector<1x640xf32> to vector<8x640xf32>
    %22 = arith.addf %20, %21 : vector<8x640xf32>
    %cst_15 = arith.constant 0.000000e+00 : f32
    %23 = vector.broadcast %cst_15 : f32 to vector<8x640xf32>
    %24 = arith.maximumf %22, %23 : vector<8x640xf32>
    %c0_16 = arith.constant 0 : index
    %c0_17 = arith.constant 0 : index
    %25 = vector.load %arg5[%c0_16, %c0_17] : memref<640x640xbf16, #tpu.memory_space<vmem>>, vector<640x640xbf16>
    %c3 = arith.constant 3 : index
    %c0_18 = arith.constant 0 : index
    %26 = vector.load %arg9[%c3, %c0_18] : memref<7x640xf32, #tpu.memory_space<vmem>>, vector<1x640xf32>
    %27 = arith.truncf %24 : vector<8x640xf32> to vector<8x640xbf16>
    %cst_19 = arith.constant dense<0.000000e+00> : vector<8x640xf32>
    %28 = tpu.matmul %27, %25, %cst_19 {dimension_numbers = #tpu.dot_dimension_numbers<[1], [0], [0], [1], [0, 0, 1, 1], [], []>} : vector<8x640xbf16>, vector<640x640xbf16>, vector<8x640xf32> -> vector<8x640xf32>
    %29 = vector.broadcast %26 : vector<1x640xf32> to vector<8x640xf32>
    %30 = arith.addf %28, %29 : vector<8x640xf32>
    %cst_20 = arith.constant 0.000000e+00 : f32
    %31 = vector.broadcast %cst_20 : f32 to vector<8x640xf32>
    %32 = arith.maximumf %30, %31 : vector<8x640xf32>
    %c0_21 = arith.constant 0 : index
    %c0_22 = arith.constant 0 : index
    %33 = vector.load %arg6[%c0_21, %c0_22] : memref<640x512xbf16, #tpu.memory_space<vmem>>, vector<640x512xbf16>
    %c4 = arith.constant 4 : index
    %c0_23 = arith.constant 0 : index
    %34 = vector.load %arg9[%c4, %c0_23] : memref<7x640xf32, #tpu.memory_space<vmem>>, vector<1x512xf32>
    %35 = arith.truncf %32 : vector<8x640xf32> to vector<8x640xbf16>
    %cst_24 = arith.constant dense<0.000000e+00> : vector<8x512xf32>
    %36 = tpu.matmul %35, %33, %cst_24 {dimension_numbers = #tpu.dot_dimension_numbers<[1], [0], [0], [1], [0, 0, 1, 1], [], []>} : vector<8x640xbf16>, vector<640x512xbf16>, vector<8x512xf32> -> vector<8x512xf32>
    %37 = vector.broadcast %34 : vector<1x512xf32> to vector<8x512xf32>
    %38 = arith.addf %36, %37 : vector<8x512xf32>
    %cst_25 = arith.constant 0.000000e+00 : f32
    %39 = vector.broadcast %cst_25 : f32 to vector<8x512xf32>
    %40 = arith.maximumf %38, %39 : vector<8x512xf32>
    %c0_26 = arith.constant 0 : index
    %c0_27 = arith.constant 0 : index
    %41 = vector.load %arg7[%c0_26, %c0_27] : memref<512x384xbf16, #tpu.memory_space<vmem>>, vector<512x384xbf16>
    %c5 = arith.constant 5 : index
    %c0_28 = arith.constant 0 : index
    %42 = vector.load %arg9[%c5, %c0_28] : memref<7x640xf32, #tpu.memory_space<vmem>>, vector<1x384xf32>
    %43 = arith.truncf %40 : vector<8x512xf32> to vector<8x512xbf16>
    %cst_29 = arith.constant dense<0.000000e+00> : vector<8x384xf32>
    %44 = tpu.matmul %43, %41, %cst_29 {dimension_numbers = #tpu.dot_dimension_numbers<[1], [0], [0], [1], [0, 0, 1, 1], [], []>} : vector<8x512xbf16>, vector<512x384xbf16>, vector<8x384xf32> -> vector<8x384xf32>
    %45 = vector.broadcast %42 : vector<1x384xf32> to vector<8x384xf32>
    %46 = arith.addf %44, %45 : vector<8x384xf32>
    %cst_30 = arith.constant 0.000000e+00 : f32
    %47 = vector.broadcast %cst_30 : f32 to vector<8x384xf32>
    %48 = arith.maximumf %46, %47 : vector<8x384xf32>
    %c0_31 = arith.constant 0 : index
    %c0_32 = arith.constant 0 : index
    %49 = vector.load %arg8[%c0_31, %c0_32] : memref<384x128xbf16, #tpu.memory_space<vmem>>, vector<384x128xbf16>
    %c6 = arith.constant 6 : index
    %c0_33 = arith.constant 0 : index
    %50 = vector.load %arg9[%c6, %c0_33] : memref<7x640xf32, #tpu.memory_space<vmem>>, vector<1x128xf32>
    %51 = arith.truncf %48 : vector<8x384xf32> to vector<8x384xbf16>
    %cst_34 = arith.constant dense<0.000000e+00> : vector<8x128xf32>
    %52 = tpu.matmul %51, %49, %cst_34 {dimension_numbers = #tpu.dot_dimension_numbers<[1], [0], [0], [1], [0, 0, 1, 1], [], []>} : vector<8x384xbf16>, vector<384x128xbf16>, vector<8x128xf32> -> vector<8x128xf32>
    %53 = vector.broadcast %50 : vector<1x128xf32> to vector<8x128xf32>
    %54 = arith.addf %52, %53 : vector<8x128xf32>
    %c0_35 = arith.constant 0 : index
    %c0_36 = arith.constant 0 : index
    %55 = vector.load %arg10[%c0_35, %c0_36] : memref<8x128xf32, #tpu.memory_space<vmem>>, vector<8x128xf32>
    tpu.vector_store %arg10[%c0_35, %c0_36], %54 {strides = array<i32>} : memref<8x128xf32, #tpu.memory_space<vmem>>, vector<8x128xf32>,
    return
  }
  func.func @transform_0(%arg0: i32) -> (i32, i32) {
    %c0_i32 = arith.constant 0 : i32
    %c0_i32_0 = arith.constant 0 : i32
    return %arg0, %c0_i32 : i32, i32
  }
  func.func @transform_1(%arg0: i32) -> (i32, i32) {
    %c0_i32 = arith.constant 0 : i32
    %c0_i32_0 = arith.constant 0 : i32
    %c0_i32_1 = arith.constant 0 : i32
    return %c0_i32, %c0_i32_0 : i32, i32
  }
  func.func @transform_2(%arg0: i32) -> (i32, i32) {
    %c0_i32 = arith.constant 0 : i32
    %c0_i32_0 = arith.constant 0 : i32
    %c0_i32_1 = arith.constant 0 : i32
    return %c0_i32, %c0_i32_0 : i32, i32
  }
  func.func @transform_3(%arg0: i32) -> (i32, i32) {
    %c0_i32 = arith.constant 0 : i32
    %c0_i32_0 = arith.constant 0 : i32
    %c0_i32_1 = arith.constant 0 : i32
    return %c0_i32, %c0_i32_0 : i32, i32
  }
  func.func @transform_4(%arg0: i32) -> (i32, i32) {
    %c0_i32 = arith.constant 0 : i32
    %c0_i32_0 = arith.constant 0 : i32
    %c0_i32_1 = arith.constant 0 : i32
    return %c0_i32, %c0_i32_0 : i32, i32
  }
  func.func @transform_5(%arg0: i32) -> (i32, i32) {
    %c0_i32 = arith.constant 0 : i32
    %c0_i32_0 = arith.constant 0 : i32
    %c0_i32_1 = arith.constant 0 : i32
    return %c0_i32, %c0_i32_0 : i32, i32
  }
  func.func @transform_6(%arg0: i32) -> (i32, i32) {
    %c0_i32 = arith.constant 0 : i32
    %c0_i32_0 = arith.constant 0 : i32
    %c0_i32_1 = arith.constant 0 : i32
    return %c0_i32, %c0_i32_0 : i32, i32
  }
  func.func @transform_7(%arg0: i32) -> (i32, i32) {
    %c0_i32 = arith.constant 0 : i32
    %c0_i32_0 = arith.constant 0 : i32
    %c0_i32_1 = arith.constant 0 : i32
    return %c0_i32, %c0_i32_0 : i32, i32
  }
  func.func @transform_8(%arg0: i32) -> (i32, i32) {
    %c0_i32 = arith.constant 0 : i32
    %c0_i32_0 = arith.constant 0 : i32
    %c0_i32_1 = arith.constant 0 : i32
    return %c0_i32, %c0_i32_0 : i32, i32
  }
  func.func @transform_9(%arg0: i32) -> (i32, i32) {
    %c0_i32 = arith.constant 0 : i32
    %c0_i32_0 = arith.constant 0 : i32
    return %arg0, %c0_i32 : i32, i32
  }
}

</mosaic_0001>

<bundles_post_ra>
// kernel: qnetwork_forward.1
= control target key start
LH: loop header
LB: loop body
LE: loop exit
PB: predicated region body
PF: predicated region fallthrough
CT: control target
= control target key end

     0   :  { %14 = vsyncpa [#allocation3], 0  ;;  %s9001_s0 = inlined_call_operand.vmem [shape: f32[8,4], index: 0, kind: input, shape index: {}]   ;;  %s9002_s1 = inlined_call_operand.hbm [shape: bf16[4,384], index: 1, kind: input, shape index: {}]   ;;  %s9003_s2 = inlined_call_operand.hbm [shape: bf16[384,512], index: 2, kind: input, shape index: {}]   ;;  %s9004_s3 = inlined_call_operand.hbm [shape: bf16[512,640], index: 3, kind: input, shape index: {}]   ;;  %s9005_s4 = inlined_call_operand.hbm [shape: bf16[640,640], index: 4, kind: input, shape index: {}]   ;;  %s9006_s5 = inlined_call_operand.hbm [shape: bf16[640,512], index: 5, kind: input, shape index: {}]   ;;  %s9007_s6 = inlined_call_operand.hbm [shape: bf16[512,384], index: 6, kind: input, shape index: {}]   ;;  %s9008_s7 = inlined_call_operand.hbm [shape: bf16[384,128], index: 7, kind: input, shape index: {}]   ;;  %s9009_s8 = inlined_call_operand.vmem [shape: f32[7,640], index: 8, kind: input, shape index: {}]   ;;  %s9010_s9 = inlined_call_operand.vmem [shape: f32[8,128], index: 9, kind: output, shape index: {}]  }
   0x1   :  { %15 = vsyncpa [#allocation5], 0 }
   0x2   :  { %16 = vsyncpa [#allocation8], 0 }
   0x3   :  { %17 = vsyncpa [#allocation11], 0  ;;  %s8632_s30 = smov [#allocation4]   ;;  %s8470_s13 = scalar_lea.hbm %s9003_s2, 12288 }
   0x4   :  { %s35_s10 = sshll.u32 %s8632_s30, 4  ;;  %p8471_p0 = scmp.ne.s32.totalorder %s9003_s2, %s8470_s13  ;;  %s36_s10 = int_to_ptr.vmem [resolvable:$true] %s35_s10 }
   0x5   :  { %p8474_p1 = scmp.lt.u32.totalorder %s8470_s13, %s9003_s2 }
   0x7   :  { %p8476_p2 = pnand %p8474_p1, %p8471_p0 }
   0x9   :  { %8479 = shalt.err (!%p8476_p2)
}
   0xa   :  { %s8480_s18 = scalar_lea.vmem %s36_s10, 12288  ;;  %p8485_p4 = scmp.lt.s32.totalorder %s36_s10, %s36_s10 }
   0xb   :  { %p8481_p3 = scmp.ne.s32.totalorder %s36_s10, %s8480_s18  ;;  %p8486_p5 = scmp.lt.s32.totalorder %s8480_s18, %s8480_s18 }
   0xd   :  { %p8487_p6 = por %p8486_p5, %p8485_p4 }
   0xf   :  { %p8488_p7 = pnand %p8487_p6, %p8481_p3 }
  0x11   :  { %8491 = shalt.err (!%p8488_p7)
}
  0x12   :  { %s8633_s19 = smov 256   ;;  %s8634_s20 = smov 16  }
  0x13   :  { %41 = dma.hbm_to_vmem [thread:$0]  %s9003_s2, 12288, %s36_s10, [#allocation5], %s8633_s19, %s8633_s19, %s8634_s20  }
  0x14   :  { %s8635_s23 = smov [#allocation7]   ;;  %s8636_s25 = smov [#allocation10]  }
  0x15   :  { %s59_s24 = sshll.u32 %s8635_s23, 4  ;;  %s83_s26 = sshll.u32 %s8636_s25, 4  ;;  %s60_s24 = int_to_ptr.vmem [resolvable:$true] %s59_s24  ;;  %s84_s26 = int_to_ptr.vmem [resolvable:$true] %s83_s26 }
  0x16   :  { %s8492_s29 = scalar_lea.hbm %s9005_s4, 25600 }
  0x17   :  { %p8493_p8 = scmp.ne.s32.totalorder %s9005_s4, %s8492_s29  ;;  %p8496_p9 = scmp.lt.u32.totalorder %s8492_s29, %s9005_s4 }
  0x19   :  { %p8498_p10 = pnand %p8496_p9, %p8493_p8 }
  0x1b   :  { %8501 = shalt.err (!%p8498_p10)
}
  0x1c   :  { %s8502_s2 = scalar_lea.vmem %s60_s24, 25600  ;;  %p8507_p12 = scmp.lt.s32.totalorder %s60_s24, %s60_s24 }
  0x1d   :  { %p8503_p11 = scmp.ne.s32.totalorder %s60_s24, %s8502_s2  ;;  %p8508_p13 = scmp.lt.s32.totalorder %s8502_s2, %s8502_s2 }
  0x1f   :  { %p8509_p0 = por %p8508_p13, %p8507_p12 }
  0x21   :  { %p8510_p1 = pnand %p8509_p0, %p8503_p11 }
  0x23   :  { %8513 = shalt.err (!%p8510_p1)
}
  0x24   :  { %s8637_s10 = smov 320   ;;  %s8638_s14 = smov 20  }
  0x25   :  { %65 = dma.hbm_to_vmem [thread:$0]  %s9005_s4, 25600, %s60_s24, [#allocation8], %s8637_s10, %s8637_s10, %s8638_s14  }
  0x26   :  { %s8514_s21 = scalar_lea.hbm %s9007_s6, 12288 }
  0x27   :  { %p8515_p2 = scmp.ne.s32.totalorder %s9007_s6, %s8514_s21  ;;  %p8518_p3 = scmp.lt.u32.totalorder %s8514_s21, %s9007_s6 }
  0x29   :  { %p8520_p4 = pnand %p8518_p3, %p8515_p2 }
  0x2b   :  { %8523 = shalt.err (!%p8520_p4)
}
  0x2c   :  { %s8524_s28 = scalar_lea.vmem %s84_s26, 12288  ;;  %p8529_p6 = scmp.lt.s32.totalorder %s84_s26, %s84_s26 }
  0x2d   :  { %p8525_p5 = scmp.ne.s32.totalorder %s84_s26, %s8524_s28  ;;  %p8530_p7 = scmp.lt.s32.totalorder %s8524_s28, %s8524_s28 }
  0x2f   :  { %p8531_p8 = por %p8530_p7, %p8529_p6 }
  0x31   :  { %p8532_p9 = pnand %p8531_p8, %p8525_p5 }
  0x33   :  { %8535 = shalt.err (!%p8532_p9)
}
  0x34   :  { %s8639_s4 = smov 192   ;;  %s8640_s24 = smov 12  }
  0x35   :  { %89 = dma.hbm_to_vmem [thread:$0]  %s9007_s6, 12288, %s84_s26, [#allocation11], %s8639_s4, %s8639_s4, %s8640_s24  }
  0x36   :  { %s8641_s11 = smov [#allocation2]   ;;  %s8642_s13 = smov [#allocation6]  }
  0x37   :  { %s26_s12 = sshll.u32 %s8641_s11, 4  ;;  %s47_s2 = sshll.u32 %s8642_s13, 4  ;;  %s27_s12 = int_to_ptr.vmem [resolvable:$true] %s26_s12  ;;  %s48_s2 = int_to_ptr.vmem [resolvable:$true] %s47_s2 }
  0x38   :  { %s8536_s17 = scalar_lea.hbm %s9002_s1, 96 }
  0x39   :  { %p8537_p10 = scmp.ne.s32.totalorder %s9002_s1, %s8536_s17  ;;  %p8540_p11 = scmp.lt.u32.totalorder %s8536_s17, %s9002_s1 }
  0x3b   :  { %p8542_p12 = pnand %p8540_p11, %p8537_p10 }
  0x3d   :  { %8545 = shalt.err (!%p8542_p12)
}
  0x3e   :  { %s8546_s6 = scalar_lea.vmem %s27_s12, 96  ;;  %p8551_p0 = scmp.lt.s32.totalorder %s27_s12, %s27_s12 }
  0x3f   :  { %p8547_p13 = scmp.ne.s32.totalorder %s27_s12, %s8546_s6  ;;  %p8552_p1 = scmp.lt.s32.totalorder %s8546_s6, %s8546_s6 }
  0x41   :  { %p8553_p2 = por %p8552_p1, %p8551_p0 }
  0x43   :  { %p8554_p3 = pnand %p8553_p2, %p8547_p13 }
  0x45   :  { %8557 = shalt.err (!%p8554_p3)
}
  0x46   :  { %29 = dma.hbm_to_vmem [thread:$0]  %s9002_s1, 96, %s27_s12, [#allocation3]  }
  0x47   :  { %s8558_s4 = scalar_lea.hbm %s9004_s3, 20480 }
  0x48   :  { %p8559_p4 = scmp.ne.s32.totalorder %s9004_s3, %s8558_s4  ;;  %p8562_p5 = scmp.lt.u32.totalorder %s8558_s4, %s9004_s3 }
  0x4a   :  { %p8564_p6 = pnand %p8562_p5, %p8559_p4 }
  0x4c   :  { %8567 = shalt.err (!%p8564_p6)
}
  0x4d   :  { %s8568_s13 = scalar_lea.vmem %s48_s2, 20480  ;;  %p8573_p8 = scmp.lt.s32.totalorder %s48_s2, %s48_s2 }
  0x4e   :  { %p8569_p7 = scmp.ne.s32.totalorder %s48_s2, %s8568_s13  ;;  %p8574_p9 = scmp.lt.s32.totalorder %s8568_s13, %s8568_s13 }
  0x50   :  { %p8575_p10 = por %p8574_p9, %p8573_p8 }
  0x52   :  { %p8576_p11 = pnand %p8575_p10, %p8569_p7 }
  0x54   :  { %8579 = shalt.err (!%p8576_p11)
}
  0x55   :  { %53 = dma.hbm_to_vmem [thread:$0]  %s9004_s3, 20480, %s48_s2, [#allocation5], %s8637_s10, %s8637_s10, %s8638_s14  }
  0x56   :  { %s8643_s15 = smov [#allocation9]   ;;  %s8644_s17 = smov [#allocation12]  }
  0x57   :  { %s71_s16 = sshll.u32 %s8643_s15, 4  ;;  %s95_s18 = sshll.u32 %s8644_s17, 4  ;;  %s72_s16 = int_to_ptr.vmem [resolvable:$true] %s71_s16  ;;  %s96_s18 = int_to_ptr.vmem [resolvable:$true] %s95_s18 }
  0x58   :  { %s8580_s23 = scalar_lea.hbm %s9006_s5, 20480 }
  0x59   :  { %p8581_p12 = scmp.ne.s32.totalorder %s9006_s5, %s8580_s23  ;;  %p8584_p13 = scmp.lt.u32.totalorder %s8580_s23, %s9006_s5 }
  0x5b   :  { %p8586_p0 = pnand %p8584_p13, %p8581_p12 }
  0x5d   :  { %8589 = shalt.err (!%p8586_p0)
}
  0x5e   :  { %s8590_s3 = scalar_lea.vmem %s72_s16, 20480  ;;  %p8595_p2 = scmp.lt.s32.totalorder %s72_s16, %s72_s16 }
  0x5f   :  { %p8591_p1 = scmp.ne.s32.totalorder %s72_s16, %s8590_s3  ;;  %p8596_p3 = scmp.lt.s32.totalorder %s8590_s3, %s8590_s3 }
  0x61   :  { %p8597_p4 = por %p8596_p3, %p8595_p2 }
  0x63   :  { %p8598_p5 = pnand %p8597_p4, %p8591_p1 }
  0x65   :  { %8601 = shalt.err (!%p8598_p5)
}
  0x66   :  { %77 = dma.hbm_to_vmem [thread:$0]  %s9006_s5, 20480, %s72_s16, [#allocation8], %s8633_s19, %s8633_s19, %s8634_s20  }
  0x67   :  { %s8602_s4 = scalar_lea.hbm %s9008_s7, 3072 }
  0x68   :  { %p8603_p6 = scmp.ne.s32.totalorder %s9008_s7, %s8602_s4  ;;  %p8606_p7 = scmp.lt.u32.totalorder %s8602_s4, %s9008_s7 }
  0x6a   :  { %p8608_p8 = pnand %p8606_p7, %p8603_p6 }
  0x6c   :  { %8611 = shalt.err (!%p8608_p8)
}
  0x6d   :  { %s8612_s13 = scalar_lea.vmem %s96_s18, 3072  ;;  %p8617_p10 = scmp.lt.s32.totalorder %s96_s18, %s96_s18 }
  0x6e   :  { %p8613_p9 = scmp.ne.s32.totalorder %s96_s18, %s8612_s13  ;;  %p8618_p11 = scmp.lt.s32.totalorder %s8612_s13, %s8612_s13 }
  0x70   :  { %p8619_p12 = por %p8618_p11, %p8617_p10 }
  0x72   :  { %p8620_p13 = pnand %p8619_p12, %p8613_p9 }
  0x74   :  { %8623 = shalt.err (!%p8620_p13)
}
  0x75   :  { %s8645_s5 = smov 64   ;;  %s8646_s19 = smov 4  }
  0x76   :  { %101 = dma.hbm_to_vmem [thread:$0]  %s9008_s7, 3072, %s96_s18, [#allocation11], %s8645_s5, %s8645_s5, %s8646_s19  }
  0x77   :  { %8624 = dma.done.wait [#allocation3], 96  }
  0x78   :  { %8625 = vsyncadd [#allocation3], 4294967200 }
  0x79   :  { %8626 = dma.done.wait [#allocation5], 32768  }
  0x7a   :  { %8627 = vsyncadd [#allocation5], 4294934528 }
  0x7b   :  { %8628 = dma.done.wait [#allocation8], 46080  }
  0x7c   :  { %8629 = vsyncadd [#allocation8], 4294921216 }
  0x7d   :  { %8630 = dma.done.wait [#allocation11], 15360  }
  0x7e   :  { %8631 = vsyncadd [#allocation11], 4294951936  ;;  %v131_v0 = vlaneseq  ;;  %v8647_v1 = vmov 1983009808   ;;  %v8648_v3 = vmov 0   ;;  %vm167_vm0 = vcmask 1041408  }
  0x7f   :  { %v149_v2 = vunpack.c.l.s4 %v8647_v1  ;;  %209 = vmatprep.mubr.bf16.mxu1 %v8648_v3  ;;  %v127_v7 = vld [vmem:[#allocation2] sm:$0x3f]  ;;  %v7430_v10 = vld [vmem:[#allocation4 + $0x4] ss:$16 sps:$4 sm:$0xff]   ;;  %v7435_v15 = vld [vmem:[#allocation4] ss:$16 sps:$4 sm:$0xff]  }
  0x80   :  { %v8798_v4 = vshrl.u32 %v131_v0, 7  ;;  %v147_v8 = vcombine.high %v127_v7, %v127_v7  ;;  %v126_v11 = vld [vmem:[%s9001_s0] sm:$0xff]  ;;  %863 = vmatprep.subr.bf16.mxu0 %v7430_v10  ;;  %vm163_vm1 = vcmask 31744   ;;  %v7434_v18 = vld [vmem:[#allocation4 + $0xc] ss:$16 sps:$4 sm:$0xff]   ;;  %v8649_v20 = vmov 0.0  }
  0x81   :  { %v150_v5 = vunpack.c.0.s8 %v149_v2  ;;  %v7436_v16 = vld [vmem:[#allocation4 + $0x24] ss:$16 sps:$4 sm:$0xff]   ;;  %v129_v17 = vpack.c.bf16 %v126_v11, %v126_v11  ;;  %864 = vmatpush1.bf16.msra.mxu0 %v7435_v15  ;;  %v7441_v19 = vld [vmem:[#allocation4 + $0x20] ss:$16 sps:$4 sm:$0xff]   ;;  %vm8650_vm2 = vmmov 0  }
  0x82   :  { %865 = vmatprep.subr.bf16.mxu0 %v7436_v16  ;;  %v7442_v22 = vld [vmem:[#allocation4 + $0x44] ss:$16 sps:$4 sm:$0xff]   ;;  %v7447_v23 = vld [vmem:[#allocation4 + $0x40] ss:$16 sps:$4 sm:$0xff]   ;;  %v7432_v25 = vld [vmem:[#allocation4 + $0x8] ss:$16 sps:$4 sm:$0xff]  }
  0x83   :  { %v153_v6 = vsub.s32 %v150_v5, %v8798_v4  ;;  %v7448_v24 = vld [vmem:[#allocation4 + $0x64] ss:$16 sps:$4 sm:$0xff]   ;;  %v7453_v26 = vld [vmem:[#allocation4 + $0x60] ss:$16 sps:$4 sm:$0xff]   ;;  %v7440_v28 = vld [vmem:[#allocation4 + $0x2c] ss:$16 sps:$4 sm:$0xff]  }
  0x84   :  { %v7454_v27 = vld [vmem:[#allocation4 + $0x84] ss:$16 sps:$4 sm:$0xff]   ;;  %v7459_v29 = vld [vmem:[#allocation4 + $0x80] ss:$16 sps:$4 sm:$0xff]   ;;  %v7438_v30 = vld [vmem:[#allocation4 + $0x28] ss:$16 sps:$4 sm:$0xff]  }
  0x85   :  { %v154_v9 = vrot.slane %v127_v7, %v153_v6  ;;  %v161_v14 = vrot.slane %v147_v8, %v153_v6  ;;  %866 = vmatpush1.bf16.msra.mxu0 %v7441_v19  ;;  %v7460_v31 = vld [vmem:[#allocation4 + $0xa4] ss:$16 sps:$4 sm:$0xff]   ;;  %v7446_v32 = vld [vmem:[#allocation4 + $0x4c] ss:$16 sps:$4 sm:$0xff]   ;;  %v7444_v33 = vld [vmem:[#allocation4 + $0x48] ss:$16 sps:$4 sm:$0xff]  }
  0x86   :  { %867 = vmatprep.subr.bf16.mxu0 %v7442_v22  ;;  %v7465_v34 = vld [vmem:[#allocation4 + $0xa0] ss:$16 sps:$4 sm:$0xff]   ;;  %v7466_v35 = vld [vmem:[#allocation4 + $0xc4] ss:$16 sps:$4 sm:$0xff]   ;;  %v7452_v36 = vld [vmem:[#allocation4 + $0x6c] ss:$16 sps:$4 sm:$0xff]  }
  0x87   :  { %v162_v12 = vcombine.high %v154_v9, %v154_v9  ;;  %v169_v13 = vsel %vm167_vm0, %v154_v9, 0  ;;  %v175_v21 = vsel %vm167_vm0, %v161_v14, 0  ;;  %v7471_v37 = vld [vmem:[#allocation4 + $0xc0] ss:$16 sps:$4 sm:$0xff]   ;;  %v7450_v38 = vld [vmem:[#allocation4 + $0x68] ss:$16 sps:$4 sm:$0xff]  }
  0x88   :  { %v7472_v39 = vld [vmem:[#allocation4 + $0xe4] ss:$16 sps:$4 sm:$0xff]   ;;  %v7458_v40 = vld [vmem:[#allocation4 + $0x8c] ss:$16 sps:$4 sm:$0xff]   ;;  %v7456_v41 = vld [vmem:[#allocation4 + $0x88] ss:$16 sps:$4 sm:$0xff]  }
  0x89   :  { %6374 = vmatprep.subr.msk.bf16.mxu1 %vm167_vm0, %v162_v12  ;;  %868 = vmatpush1.bf16.msra.mxu0 %v7447_v23  ;;  %v7477_v42 = vld [vmem:[#allocation4 + $0xe0] ss:$16 sps:$4 sm:$0xff]   ;;  %v7478_v43 = vld [vmem:[#allocation4 + $0x104] ss:$16 sps:$4 sm:$0xff]   ;;  %v7464_v44 = vld [vmem:[#allocation4 + $0xac] ss:$16 sps:$4 sm:$0xff]  }
  0x8a   :  { %178 = vmatpush1.bf16.msra.mxu1 %v169_v13  ;;  %869 = vmatprep.subr.bf16.mxu0 %v7448_v24  ;;  %v7483_v45 = vld [vmem:[#allocation4 + $0x100] ss:$16 sps:$4 sm:$0xff]   ;;  %v7462_v46 = vld [vmem:[#allocation4 + $0xa8] ss:$16 sps:$4 sm:$0xff]   ;;  %v7484_v47 = vld [vmem:[#allocation4 + $0x124] ss:$16 sps:$4 sm:$0xff]  }
  0x8b   :  { %7294 = vmatprep.subr.bf16.mxu1 %v8649_v20  ;;  %v7470_v48 = vld [vmem:[#allocation4 + $0xcc] ss:$16 sps:$4 sm:$0xff]   ;;  %v7468_v49 = vld [vmem:[#allocation4 + $0xc8] ss:$16 sps:$4 sm:$0xff]   ;;  %v7489_v51 = vld [vmem:[#allocation4 + $0x120] ss:$16 sps:$4 sm:$0xff]  }
  0x8c   :  { %v7476_v50 = vld [vmem:[#allocation4 + $0xec] ss:$16 sps:$4 sm:$0xff]   ;;  %v7490_v52 = vld [vmem:[#allocation4 + $0x144] ss:$16 sps:$4 sm:$0xff]   ;;  %v7495_v53 = vld [vmem:[#allocation4 + $0x140] ss:$16 sps:$4 sm:$0xff]  }
  0x8d   :  { %6375 = vmatmul.mubr.msk.bf16.vlgmr.msra.gmra.mrb[0].mxu1 %vm163_vm1, %v129_v17  ;;  %870 = vmatpush1.bf16.msra.mxu0 %v7453_v26  ;;  %v7474_v54 = vld [vmem:[#allocation4 + $0xe8] ss:$16 sps:$4 sm:$0xff]   ;;  %v7496_v55 = vld [vmem:[#allocation4 + $0x164] ss:$16 sps:$4 sm:$0xff]   ;;  %v7482_v56 = vld [vmem:[#allocation4 + $0x10c] ss:$16 sps:$4 sm:$0xff]  }
  0x8e   :  { %7295 = vmatpush3.bf16.msra.mxu1 %v175_v21  ;;  %7296 = vmatprep.mubr.msk.bf16.mxu1 %vm8650_vm2, %v8649_v20  ;;  %v7501_v57 = vld [vmem:[#allocation4 + $0x160] ss:$16 sps:$4 sm:$0xff]   ;;  %v7480_v58 = vld [vmem:[#allocation4 + $0x108] ss:$16 sps:$4 sm:$0xff]   ;;  %v7502_v59 = vld [vmem:[#allocation4 + $0x184] ss:$16 sps:$4 sm:$0xff]  }
  0x8f   :  { %945 = vmatprep.subr.bf16.mxu1 %v7434_v18  ;;  %871 = vmatprep.subr.bf16.mxu0 %v7454_v27  ;;  %v7488_v60 = vld [vmem:[#allocation4 + $0x12c] ss:$16 sps:$4 sm:$0xff]   ;;  %v7507_v61 = vld [vmem:[#allocation4 + $0x180] ss:$16 sps:$4 sm:$0xff]   ;;  %v7486_v62 = vld [vmem:[#allocation4 + $0x128] ss:$16 sps:$4 sm:$0xff]  }
  0x90   :  { %v7508_v63 = vld [vmem:[#allocation4 + $0x1a4] ss:$16 sps:$4 sm:$0xff]   ;;  %v7494_v0 = vld [vmem:[#allocation4 + $0x14c] ss:$16 sps:$4 sm:$0xff]   ;;  %v7513_v1 = vld [vmem:[#allocation4 + $0x1a0] ss:$16 sps:$4 sm:$0xff]  }
  0x91   :  { %872 = vmatpush1.bf16.msra.mxu0 %v7459_v29  ;;  %v7492_v2 = vld [vmem:[#allocation4 + $0x148] ss:$16 sps:$4 sm:$0xff]   ;;  %v7500_v5 = vld [vmem:[#allocation4 + $0x16c] ss:$16 sps:$4 sm:$0xff]   ;;  %v7514_v11 = vld [vmem:[#allocation4 + $0x1c4] ss:$16 sps:$4 sm:$0xff]  }
  0x92   :  { %873 = vmatprep.subr.bf16.mxu0 %v7460_v31  ;;  %v7498_v6 = vld [vmem:[#allocation4 + $0x168] ss:$16 sps:$4 sm:$0xff]   ;;  %v7506_v7 = vld [vmem:[#allocation4 + $0x18c] ss:$16 sps:$4 sm:$0xff]   ;;  %v7519_v14 = vld [vmem:[#allocation4 + $0x1c0] ss:$16 sps:$4 sm:$0xff]  }
  0x93   :  { %v7504_v8 = vld [vmem:[#allocation4 + $0x188] ss:$16 sps:$4 sm:$0xff]   ;;  %v7512_v9 = vld [vmem:[#allocation4 + $0x1ac] ss:$16 sps:$4 sm:$0xff]   ;;  %v7520_v15 = vld [vmem:[#allocation4 + $0x1e4] ss:$16 sps:$4 sm:$0xff]  }
  0x94   :  { %v7510_v10 = vld [vmem:[#allocation4 + $0x1a8] ss:$16 sps:$4 sm:$0xff]   ;;  %v7518_v12 = vld [vmem:[#allocation4 + $0x1cc] ss:$16 sps:$4 sm:$0xff]   ;;  %v7525_v18 = vld [vmem:[#allocation4 + $0x1e0] ss:$16 sps:$4 sm:$0xff]  }
  0x95   :  { %7297 = vmatmul.mubr.msk.bf16.vlgmr.msra.gmra.mrb[4].mxu1 %vm163_vm1, %v129_v17  ;;  %874 = vmatpush1.bf16.msra.mxu0 %v7465_v34  ;;  %v7516_v13 = vld [vmem:[#allocation4 + $0x1c8] ss:$16 sps:$4 sm:$0xff]   ;;  %v7524_v16 = vld [vmem:[#allocation4 + $0x1ec] ss:$16 sps:$4 sm:$0xff]   ;;  %v7528_v19 = vld [vmem:[#allocation4 + $0x204] ss:$16 sps:$4 sm:$0xff]  }
  0x96   :  { %946 = vmatpush1.bf16.msra.mxu1 %v7432_v25  ;;  %875 = vmatprep.subr.bf16.mxu0 %v7466_v35  ;;  %v7522_v17 = vld [vmem:[#allocation4 + $0x1e8] ss:$16 sps:$4 sm:$0xff]   ;;  %v7531_v21 = vld [vmem:[#allocation4 + $0x20c] ss:$16 sps:$4 sm:$0xff]   ;;  %v8813_v22 = vsub.s32 0, %v8798_v4  ;;  %v8816_v23 = vsub.s32 1, %v8798_v4 }
  0x97   :  { %947 = vmatprep.subr.bf16.mxu1 %v7440_v28  ;;  %v8821_v24 = vld [vmem:[%s9009_s8] ss:$8 sm:$0x7] }
  0x98   :  { %v134_v25 = vrot.slane %v8821_v24, %v8813_v22  ;;  %v138_v26 = vrot.slane %v8821_v24, %v8816_v23  ;;  %v7526_v35 = vld [vmem:[#allocation4 + $0x200] ss:$16 sps:$4 sm:$0xff]  }
  0x99   :  { %876 = vmatpush1.bf16.msra.mxu0 %v7471_v37  ;;  %v7534_v37 = vld [vmem:[#allocation4 + $0x224] ss:$16 sps:$4 sm:$0xff]  }
  0x9a   :  { %948 = vmatpush1.bf16.msra.mxu1 %v7438_v30  ;;  %877 = vmatprep.subr.bf16.mxu0 %v7472_v39 }
  0x9b   :  { %949 = vmatprep.subr.bf16.mxu1 %v7446_v32 }
  0x9d   :  { %878 = vmatpush1.bf16.msra.mxu0 %v7477_v42  ;;  %v7535_v42 = vld [vmem:[#allocation4 + $0x228] ss:$16 sps:$4 sm:$0xff]  }
  0x9e   :  { %950 = vmatpush1.bf16.msra.mxu1 %v7444_v33  ;;  %879 = vmatprep.subr.bf16.mxu0 %v7478_v43 }
  0x9f   :  { %951 = vmatprep.subr.bf16.mxu1 %v7452_v36  ;;  %v7529_v36 = vld [vmem:[#allocation4 + $0x208] ss:$16 sps:$4 sm:$0xff]  }
  0xa1   :  { %880 = vmatpush1.bf16.msra.mxu0 %v7483_v45  ;;  %v7543_v45 = vld [vmem:[#allocation4 + $0x24c] ss:$16 sps:$4 sm:$0xff]  }
  0xa2   :  { %952 = vmatpush1.bf16.msra.mxu1 %v7450_v38  ;;  %881 = vmatprep.subr.bf16.mxu0 %v7484_v47  ;;  %v7537_v38 = vld [vmem:[#allocation4 + $0x22c] ss:$16 sps:$4 sm:$0xff]  }
  0xa3   :  { %953 = vmatprep.subr.bf16.mxu1 %v7458_v40 }
  0xa5   :  { %882 = vmatpush1.bf16.msra.mxu0 %v7489_v51  ;;  %v7546_v51 = vld [vmem:[#allocation4 + $0x264] ss:$16 sps:$4 sm:$0xff]  }
  0xa6   :  { %954 = vmatpush1.bf16.msra.mxu1 %v7456_v41  ;;  %883 = vmatprep.subr.bf16.mxu0 %v7490_v52  ;;  %v7532_v41 = vld [vmem:[#allocation4 + $0x220] ss:$16 sps:$4 sm:$0xff]   ;;  %v7549_v52 = vld [vmem:[#allocation4 + $0x26c] ss:$16 sps:$4 sm:$0xff]  }
  0xa7   :  { %955 = vmatprep.subr.bf16.mxu1 %v7464_v44  ;;  %v7540_v44 = vld [vmem:[#allocation4 + $0x244] ss:$16 sps:$4 sm:$0xff]  }
  0xa9   :  { %884 = vmatpush1.bf16.msra.mxu0 %v7495_v53  ;;  %v7544_v53 = vld [vmem:[#allocation4 + $0x260] ss:$16 sps:$4 sm:$0xff]  }
  0xaa   :  { %956 = vmatpush1.bf16.msra.mxu1 %v7462_v46  ;;  %885 = vmatprep.subr.bf16.mxu0 %v7496_v55  ;;  %v7552_v55 = vld [vmem:[#allocation4 + $0x284] ss:$16 sps:$4 sm:$0xff]  }
  0xab   :  { %957 = vmatprep.subr.bf16.mxu1 %v7470_v48 }
  0xad   :  { %886 = vmatpush1.bf16.msra.mxu0 %v7501_v57  ;;  %v7550_v57 = vld [vmem:[#allocation4 + $0x280] ss:$16 sps:$4 sm:$0xff]  }
  0xae   :  { %958 = vmatpush1.bf16.msra.mxu1 %v7468_v49  ;;  %887 = vmatprep.subr.bf16.mxu0 %v7502_v59  ;;  %v7538_v49 = vld [vmem:[#allocation4 + $0x240] ss:$16 sps:$4 sm:$0xff]   ;;  %v7558_v59 = vld [vmem:[#allocation4 + $0x2a4] ss:$16 sps:$4 sm:$0xff]  }
  0xaf   :  { %959 = vmatprep.subr.bf16.mxu1 %v7476_v50  ;;  %v7541_v50 = vld [vmem:[#allocation4 + $0x248] ss:$16 sps:$4 sm:$0xff]  }
  0xb1   :  { %888 = vmatpush1.bf16.msra.mxu0 %v7507_v61  ;;  %v8830_v61 = vsub.s32 2, %v8798_v4 }
  0xb2   :  { %960 = vmatpush1.bf16.msra.mxu1 %v7474_v54  ;;  %889 = vmatprep.subr.bf16.mxu0 %v7508_v63  ;;  %v7547_v54 = vld [vmem:[#allocation4 + $0x268] ss:$16 sps:$4 sm:$0xff]  }
  0xb3   :  { %961 = vmatprep.subr.bf16.mxu1 %v7482_v56  ;;  %v7555_v56 = vld [vmem:[#allocation4 + $0x28c] ss:$16 sps:$4 sm:$0xff]   ;;  %v7559_v63 = vld [vmem:[#allocation4 + $0x2a8] ss:$16 sps:$4 sm:$0xff]  }
  0xb5   :  { %890 = vmatpush1.bf16.msra.mxu0 %v7513_v1  ;;  %v7564_v1 = vld [vmem:[#allocation4 + $0x2c4] ss:$16 sps:$4 sm:$0xff]  }
  0xb6   :  { %962 = vmatpush1.bf16.msra.mxu1 %v7480_v58  ;;  %891 = vmatprep.subr.bf16.mxu0 %v7514_v11  ;;  %v7553_v58 = vld [vmem:[#allocation4 + $0x288] ss:$16 sps:$4 sm:$0xff]  }
  0xb7   :  { %963 = vmatprep.subr.bf16.mxu1 %v7488_v60  ;;  %v7561_v60 = vld [vmem:[#allocation4 + $0x2ac] ss:$16 sps:$4 sm:$0xff]   ;;  %v7571_v11 = vld [vmem:[#allocation4 + $0x2e8] ss:$16 sps:$4 sm:$0xff]  }
  0xb9   :  { %892 = vmatpush1.bf16.msra.mxu0 %v7519_v14  ;;  %v7579_v14 = vld [vmem:[#allocation6 + $0xc] ss:$20 sps:$4 sm:$0xff]  }
  0xba   :  { %964 = vmatpush1.bf16.msra.mxu1 %v7486_v62  ;;  %893 = vmatprep.subr.bf16.mxu0 %v7520_v15  ;;  %v7556_v62 = vld [vmem:[#allocation4 + $0x2a0] ss:$16 sps:$4 sm:$0xff]  }
  0xbb   :  { %965 = vmatprep.subr.bf16.mxu1 %v7494_v0  ;;  %v142_v0 = vrot.slane %v8821_v24, %v8830_v61  ;;  %v7574_v15 = vld [vmem:[#allocation6] ss:$20 sps:$4 sm:$0xff]   ;;  %v7583_v24 = vld [vmem:[#allocation6 + $0x30] ss:$20 sps:$4 sm:$0xff]  }
  0xbd   :  { %894 = vmatpush1.bf16.msra.mxu0 %v7525_v18  ;;  %v7582_v18 = vld [vmem:[#allocation6 + $0x2c] ss:$20 sps:$4 sm:$0xff]  }
  0xbe   :  { %966 = vmatpush1.bf16.msra.mxu1 %v7492_v2  ;;  %904 = vmatprep.subr.bf16.mxu0 %v7528_v19  ;;  %v7567_v2 = vld [vmem:[#allocation4 + $0x2cc] ss:$16 sps:$4 sm:$0xff]   ;;  %v7585_v19 = vld [vmem:[#allocation6 + $0x34] ss:$20 sps:$4 sm:$0xff]  }
  0xbf   :  { %967 = vmatprep.subr.bf16.mxu1 %v7500_v5  ;;  %v7562_v5 = vld [vmem:[#allocation4 + $0x2c0] ss:$16 sps:$4 sm:$0xff]  }
  0xc2   :  { %968 = vmatpush1.bf16.msra.mxu1 %v7498_v6  ;;  %v7565_v6 = vld [vmem:[#allocation4 + $0x2c8] ss:$16 sps:$4 sm:$0xff]  }
  0xc3   :  { %969 = vmatprep.subr.bf16.mxu1 %v7506_v7 }
  0xc6   :  { %970 = vmatpush1.bf16.msra.mxu1 %v7504_v8  ;;  %v7570_v8 = vld [vmem:[#allocation4 + $0x2e4] ss:$16 sps:$4 sm:$0xff]  }
  0xc7   :  { %971 = vmatprep.subr.bf16.mxu1 %v7512_v9  ;;  %v7573_v9 = vld [vmem:[#allocation4 + $0x2ec] ss:$16 sps:$4 sm:$0xff]  }
  0xca   :  { %972 = vmatpush1.bf16.msra.mxu1 %v7510_v10  ;;  %v7568_v10 = vld [vmem:[#allocation4 + $0x2e0] ss:$16 sps:$4 sm:$0xff]  }
  0xcb   :  { %973 = vmatprep.subr.bf16.mxu1 %v7518_v12 }
  0xce   :  { %974 = vmatpush1.bf16.msra.mxu1 %v7516_v13  ;;  %v7576_v13 = vld [vmem:[#allocation6 + $0x4] ss:$20 sps:$4 sm:$0xff]  }
  0xcf   :  { %975 = vmatprep.subr.bf16.mxu1 %v7524_v16  ;;  %v7577_v16 = vld [vmem:[#allocation6 + $0x8] ss:$20 sps:$4 sm:$0xff]  }
  0xd2   :  { %976 = vmatpush1.bf16.msra.mxu1 %v7522_v17 }
  0xd3   :  { %986 = vmatprep.subr.bf16.mxu1 %v7531_v21  ;;  %v7580_v21 = vld [vmem:[#allocation6 + $0x28] ss:$20 sps:$4 sm:$0xff]  }
 0x160   :  { %v211_v27 = vpop.f32.mrb[0].mxu1 }
 0x161   :  { %v212_v28 = vadd.f32 %v211_v27, %v134_v25  ;;  %v213_v29 = vpop.f32.mrb[1].mxu1  ;;  %v7588_v25 = vld [vmem:[#allocation6 + $0x54] ss:$20 sps:$4 sm:$0xff]   ;;  %v7586_v27 = vld [vmem:[#allocation6 + $0x50] ss:$20 sps:$4 sm:$0xff]  }
 0x162   :  { %v214_v30 = vadd.f32 %v213_v29, %v138_v26  ;;  %v215_v31 = vpop.f32.mrb[2].mxu1  ;;  %v7591_v26 = vld [vmem:[#allocation6 + $0x5c] ss:$20 sps:$4 sm:$0xff]  }
 0x163   :  { %v258_v32 = vmax.f32 %v212_v28, 0.0  ;;  %v216_v33 = vpop.f32.mrb[3].mxu1  ;;  %v7589_v28 = vld [vmem:[#allocation6 + $0x58] ss:$20 sps:$4 sm:$0xff]   ;;  %v7594_v29 = vld [vmem:[#allocation6 + $0x7c] ss:$20 sps:$4 sm:$0xff]  }
 0x164   :  { %v259_v34 = vmax.f32 %v214_v30, 0.0  ;;  %v7597_v30 = vld [vmem:[#allocation6 + $0x84] ss:$20 sps:$4 sm:$0xff]  }
 0x165   :  { %v359_v40 = vpack.c.bf16 %v258_v32, %v258_v32  ;;  %v7592_v31 = vld [vmem:[#allocation6 + $0x78] ss:$20 sps:$4 sm:$0xff]   ;;  %v7595_v32 = vld [vmem:[#allocation6 + $0x80] ss:$20 sps:$4 sm:$0xff]  }
 0x166   :  { %v360_v39 = vpack.c.bf16 %v259_v34, %v259_v34  ;;  %v7600_v33 = vld [vmem:[#allocation6 + $0xa4] ss:$20 sps:$4 sm:$0xff]   ;;  %v7603_v34 = vld [vmem:[#allocation6 + $0xac] ss:$20 sps:$4 sm:$0xff]  }
 0x168   :  { %895 = vmatprep.mubr.bf16.mxu0 %v360_v39  ;;  %977 = vmatprep.mubr.bf16.mxu1 %v360_v39  ;;  %v252_v43 = vpop.f32.mrb[4].mxu1  ;;  %v7604_v39 = vld [vmem:[#allocation6 + $0xc8] ss:$20 sps:$4 sm:$0xff]  }
 0x169   :  { %896 = vmatmul.mubr.bf16.vlgmr.msra.gmra.mrb[0].mxu0 %v359_v40  ;;  %978 = vmatmul.mubr.bf16.vlgmr.msra.gmra.mrb[8].mxu1 %v359_v40  ;;  %v7298_v46 = vpop.f32.mrb[5].mxu1  ;;  %v253_v7 = vadd.f32 %v252_v43, %v142_v0  ;;  %v7607_v40 = vld [vmem:[#allocation6 + $0xd0] ss:$20 sps:$4 sm:$0xff]   ;;  %v7640_v0 = vld [vmem:[#allocation6 + $0x1b8] ss:$20 sps:$4 sm:$0xff]  }
 0x16a   :  { %905 = vmatpush1.bf16.msra.mxu0 %v7526_v35  ;;  %987 = vmatpush1.bf16.msra.mxu1 %v7529_v36  ;;  %v255_v47 = vpop.f32.mrb[6].mxu1  ;;  %v7598_v35 = vld [vmem:[#allocation6 + $0xa0] ss:$20 sps:$4 sm:$0xff]   ;;  %v7601_v36 = vld [vmem:[#allocation6 + $0xa8] ss:$20 sps:$4 sm:$0xff]  }
 0x16b   :  { %906 = vmatprep.subr.bf16.mxu0 %v7534_v37  ;;  %988 = vmatprep.subr.bf16.mxu1 %v7537_v38  ;;  %v7299_v48 = vpop.f32.mrb[7].mxu1  ;;  %v260_v12 = vmax.f32 %v253_v7, 0.0  ;;  %v7606_v37 = vld [vmem:[#allocation6 + $0xcc] ss:$20 sps:$4 sm:$0xff]   ;;  %v7609_v38 = vld [vmem:[#allocation6 + $0xd4] ss:$20 sps:$4 sm:$0xff]  }
 0x16c   :  { %936 = vmatprep.mubr.bf16.mxu0 %v8648_v3  ;;  %1018 = vmatprep.mubr.bf16.mxu1 %v8648_v3  ;;  %v7610_v43 = vld [vmem:[#allocation6 + $0xf0] ss:$20 sps:$4 sm:$0xff]   ;;  %v7616_v47 = vld [vmem:[#allocation6 + $0x118] ss:$20 sps:$4 sm:$0xff]   ;;  %v7619_v48 = vld [vmem:[#allocation6 + $0x120] ss:$20 sps:$4 sm:$0xff]  }
 0x16d   :  { %v361_v17 = vpack.c.bf16 %v260_v12, %v260_v12  ;;  %v7621_v46 = vld [vmem:[#allocation6 + $0x124] ss:$20 sps:$4 sm:$0xff]   ;;  %v7649_v7 = vld [vmem:[#allocation6 + $0x1e8] ss:$20 sps:$4 sm:$0xff]  }
 0x16e   :  { %907 = vmatpush1.bf16.msra.mxu0 %v7532_v41  ;;  %989 = vmatpush1.bf16.msra.mxu1 %v7535_v42  ;;  %v7612_v41 = vld [vmem:[#allocation6 + $0xf4] ss:$20 sps:$4 sm:$0xff]   ;;  %v7615_v42 = vld [vmem:[#allocation6 + $0xfc] ss:$20 sps:$4 sm:$0xff]  }
 0x16f   :  { %908 = vmatprep.subr.bf16.mxu0 %v7540_v44  ;;  %990 = vmatprep.subr.bf16.mxu1 %v7543_v45  ;;  %v7613_v44 = vld [vmem:[#allocation6 + $0xf8] ss:$20 sps:$4 sm:$0xff]   ;;  %v7618_v45 = vld [vmem:[#allocation6 + $0x11c] ss:$20 sps:$4 sm:$0xff]   ;;  %v7660_v12 = vld [vmem:[#allocation6 + $0x234] ss:$20 sps:$4 sm:$0xff]  }
 0x172   :  { %909 = vmatpush1.bf16.msra.mxu0 %v7538_v49  ;;  %991 = vmatpush1.bf16.msra.mxu1 %v7541_v50  ;;  %v7624_v49 = vld [vmem:[#allocation6 + $0x144] ss:$20 sps:$4 sm:$0xff]   ;;  %v7627_v50 = vld [vmem:[#allocation6 + $0x14c] ss:$20 sps:$4 sm:$0xff]  }
 0x173   :  { %910 = vmatprep.subr.bf16.mxu0 %v7546_v51  ;;  %992 = vmatprep.subr.bf16.mxu1 %v7549_v52  ;;  %v7622_v51 = vld [vmem:[#allocation6 + $0x140] ss:$20 sps:$4 sm:$0xff]   ;;  %v7625_v52 = vld [vmem:[#allocation6 + $0x148] ss:$20 sps:$4 sm:$0xff]  }
 0x176   :  { %911 = vmatpush1.bf16.msra.mxu0 %v7544_v53  ;;  %993 = vmatpush1.bf16.msra.mxu1 %v7547_v54  ;;  %v7630_v53 = vld [vmem:[#allocation6 + $0x16c] ss:$20 sps:$4 sm:$0xff]   ;;  %v7633_v54 = vld [vmem:[#allocation6 + $0x174] ss:$20 sps:$4 sm:$0xff]  }
 0x177   :  { %912 = vmatprep.subr.bf16.mxu0 %v7552_v55  ;;  %994 = vmatprep.subr.bf16.mxu1 %v7555_v56  ;;  %v7628_v55 = vld [vmem:[#allocation6 + $0x168] ss:$20 sps:$4 sm:$0xff]   ;;  %v7631_v56 = vld [vmem:[#allocation6 + $0x170] ss:$20 sps:$4 sm:$0xff]  }
 0x17a   :  { %913 = vmatpush1.bf16.msra.mxu0 %v7550_v57  ;;  %995 = vmatpush1.bf16.msra.mxu1 %v7553_v58  ;;  %v7636_v57 = vld [vmem:[#allocation6 + $0x194] ss:$20 sps:$4 sm:$0xff]   ;;  %v7639_v58 = vld [vmem:[#allocation6 + $0x19c] ss:$20 sps:$4 sm:$0xff]  }
 0x17b   :  { %914 = vmatprep.subr.bf16.mxu0 %v7558_v59  ;;  %996 = vmatprep.subr.bf16.mxu1 %v7561_v60  ;;  %v7634_v59 = vld [vmem:[#allocation6 + $0x190] ss:$20 sps:$4 sm:$0xff]   ;;  %v7637_v60 = vld [vmem:[#allocation6 + $0x198] ss:$20 sps:$4 sm:$0xff]  }
 0x17e   :  { %915 = vmatpush1.bf16.msra.mxu0 %v7556_v62  ;;  %997 = vmatpush1.bf16.msra.mxu1 %v7559_v63  ;;  %v7642_v62 = vld [vmem:[#allocation6 + $0x1bc] ss:$20 sps:$4 sm:$0xff]   ;;  %v7645_v63 = vld [vmem:[#allocation6 + $0x1c4] ss:$20 sps:$4 sm:$0xff]  }
 0x17f   :  { %916 = vmatprep.subr.bf16.mxu0 %v7564_v1  ;;  %998 = vmatprep.subr.bf16.mxu1 %v7567_v2  ;;  %v7643_v1 = vld [vmem:[#allocation6 + $0x1c0] ss:$20 sps:$4 sm:$0xff]   ;;  %v7648_v2 = vld [vmem:[#allocation6 + $0x1e4] ss:$20 sps:$4 sm:$0xff]  }
 0x182   :  { %917 = vmatpush1.bf16.msra.mxu0 %v7562_v5  ;;  %999 = vmatpush1.bf16.msra.mxu1 %v7565_v6  ;;  %v7651_v5 = vld [vmem:[#allocation6 + $0x1ec] ss:$20 sps:$4 sm:$0xff]  }
 0x183   :  { %918 = vmatprep.subr.bf16.mxu0 %v7570_v8  ;;  %1000 = vmatprep.subr.bf16.mxu1 %v7573_v9  ;;  %v7646_v6 = vld [vmem:[#allocation6 + $0x1e0] ss:$20 sps:$4 sm:$0xff]  }
 0x184   :  { %v7654_v8 = vld [vmem:[#allocation6 + $0x20c] ss:$20 sps:$4 sm:$0xff]   ;;  %v7657_v9 = vld [vmem:[#allocation6 + $0x214] ss:$20 sps:$4 sm:$0xff]  }
 0x186   :  { %919 = vmatpush1.bf16.msra.mxu0 %v7568_v10  ;;  %1001 = vmatpush1.bf16.msra.mxu1 %v7571_v11  ;;  %v7652_v10 = vld [vmem:[#allocation6 + $0x208] ss:$20 sps:$4 sm:$0xff]   ;;  %v7655_v11 = vld [vmem:[#allocation6 + $0x210] ss:$20 sps:$4 sm:$0xff]  }
 0x187   :  { %2089 = vmatprep.subr.bf16.mxu0 %v7576_v13  ;;  %2171 = vmatprep.subr.bf16.mxu1 %v7579_v14  ;;  %v7663_v13 = vld [vmem:[#allocation6 + $0x23c] ss:$20 sps:$4 sm:$0xff]  }
 0x188   :  { %v7658_v14 = vld [vmem:[#allocation6 + $0x230] ss:$20 sps:$4 sm:$0xff]  }
 0x189   :  { %937 = vmatmul.mubr.bf16.vlgmr.msra.gmra.mrb[0].mxu0 %v361_v17  ;;  %1019 = vmatmul.mubr.bf16.vlgmr.msra.gmra.mrb[8].mxu1 %v361_v17  ;;  %v7669_v17 = vld [vmem:[#allocation6 + $0x264] ss:$20 sps:$4 sm:$0xff]  }
 0x18a   :  { %2090 = vmatpush1.bf16.msra.mxu0 %v7574_v15  ;;  %2172 = vmatpush1.bf16.msra.mxu1 %v7577_v16  ;;  %v7661_v15 = vld [vmem:[#allocation6 + $0x238] ss:$20 sps:$4 sm:$0xff]   ;;  %v7666_v16 = vld [vmem:[#allocation6 + $0x25c] ss:$20 sps:$4 sm:$0xff]  }
 0x18b   :  { %2091 = vmatprep.subr.bf16.mxu0 %v7582_v18  ;;  %2173 = vmatprep.subr.bf16.mxu1 %v7585_v19  ;;  %v7664_v18 = vld [vmem:[#allocation6 + $0x258] ss:$20 sps:$4 sm:$0xff]   ;;  %v7667_v19 = vld [vmem:[#allocation6 + $0x260] ss:$20 sps:$4 sm:$0xff]  }
 0x18e   :  { %2092 = vmatpush1.bf16.msra.mxu0 %v7580_v21  ;;  %2174 = vmatpush1.bf16.msra.mxu1 %v7583_v24  ;;  %v7672_v21 = vld [vmem:[#allocation6 + $0x284] ss:$20 sps:$4 sm:$0xff]   ;;  %v7675_v24 = vld [vmem:[#allocation6 + $0x28c] ss:$20 sps:$4 sm:$0xff]  }
 0x18f   :  { %2093 = vmatprep.subr.bf16.mxu0 %v7588_v25  ;;  %2175 = vmatprep.subr.bf16.mxu1 %v7591_v26  ;;  %v8837_v25 = vld [vmem:[%s9009_s8 + $0x1] ss:$8 sm:$0xf]  ;;  %v8840_v26 = vsub.s32 3, %v8798_v4 }
 0x192   :  { %2094 = vmatpush1.bf16.msra.mxu0 %v7586_v27  ;;  %2176 = vmatpush1.bf16.msra.mxu1 %v7589_v28  ;;  %v366_v27 = vrot.slane %v8837_v25, %v8813_v22  ;;  %v370_v28 = vrot.slane %v8837_v25, %v8816_v23 }
 0x193   :  { %2095 = vmatprep.subr.bf16.mxu0 %v7594_v29  ;;  %2177 = vmatprep.subr.bf16.mxu1 %v7597_v30  ;;  %v378_v29 = vrot.slane %v8837_v25, %v8840_v26 }
 0x196   :  { %2096 = vmatpush1.bf16.msra.mxu0 %v7592_v31  ;;  %2178 = vmatpush1.bf16.msra.mxu1 %v7595_v32 }
 0x197   :  { %2097 = vmatprep.subr.bf16.mxu0 %v7600_v33  ;;  %2179 = vmatprep.subr.bf16.mxu1 %v7603_v34 }
 0x19a   :  { %2098 = vmatpush1.bf16.msra.mxu0 %v7598_v35  ;;  %2180 = vmatpush1.bf16.msra.mxu1 %v7601_v36 }
 0x19b   :  { %2099 = vmatprep.subr.bf16.mxu0 %v7606_v37  ;;  %2181 = vmatprep.subr.bf16.mxu1 %v7609_v38 }
 0x19e   :  { %2100 = vmatpush1.bf16.msra.mxu0 %v7604_v39  ;;  %2182 = vmatpush1.bf16.msra.mxu1 %v7607_v40 }
 0x19f   :  { %2101 = vmatprep.subr.bf16.mxu0 %v7612_v41  ;;  %2183 = vmatprep.subr.bf16.mxu1 %v7615_v42 }
 0x1a2   :  { %2102 = vmatpush1.bf16.msra.mxu0 %v7610_v43  ;;  %2184 = vmatpush1.bf16.msra.mxu1 %v7613_v44 }
 0x1a3   :  { %2103 = vmatprep.subr.bf16.mxu0 %v7618_v45  ;;  %2185 = vmatprep.subr.bf16.mxu1 %v7621_v46  ;;  %v7670_v45 = vld [vmem:[#allocation6 + $0x280] ss:$20 sps:$4 sm:$0xff]   ;;  %v7673_v46 = vld [vmem:[#allocation6 + $0x288] ss:$20 sps:$4 sm:$0xff]  }
 0x1a6   :  { %2104 = vmatpush1.bf16.msra.mxu0 %v7616_v47  ;;  %2186 = vmatpush1.bf16.msra.mxu1 %v7619_v48  ;;  %v7678_v48 = vld [vmem:[#allocation6 + $0x2ac] ss:$20 sps:$4 sm:$0xff]  }
 0x1a7   :  { %2105 = vmatprep.subr.bf16.mxu0 %v7624_v49  ;;  %2187 = vmatprep.subr.bf16.mxu1 %v7627_v50  ;;  %v7681_v49 = vld [vmem:[#allocation6 + $0x2b4] ss:$20 sps:$4 sm:$0xff]  }
 0x1aa   :  { %2106 = vmatpush1.bf16.msra.mxu0 %v7622_v51  ;;  %2188 = vmatpush1.bf16.msra.mxu1 %v7625_v52  ;;  %v7676_v51 = vld [vmem:[#allocation6 + $0x2a8] ss:$20 sps:$4 sm:$0xff]   ;;  %v7679_v52 = vld [vmem:[#allocation6 + $0x2b0] ss:$20 sps:$4 sm:$0xff]  }
 0x1ab   :  { %2107 = vmatprep.subr.bf16.mxu0 %v7630_v53  ;;  %2189 = vmatprep.subr.bf16.mxu1 %v7633_v54  ;;  %v7684_v53 = vld [vmem:[#allocation6 + $0x2d4] ss:$20 sps:$4 sm:$0xff]   ;;  %v7687_v54 = vld [vmem:[#allocation6 + $0x2dc] ss:$20 sps:$4 sm:$0xff]  }
 0x1ae   :  { %2108 = vmatpush1.bf16.msra.mxu0 %v7628_v55  ;;  %2190 = vmatpush1.bf16.msra.mxu1 %v7631_v56  ;;  %v7682_v55 = vld [vmem:[#allocation6 + $0x2d0] ss:$20 sps:$4 sm:$0xff]   ;;  %v7685_v56 = vld [vmem:[#allocation6 + $0x2d8] ss:$20 sps:$4 sm:$0xff]  }
 0x1af   :  { %2109 = vmatprep.subr.bf16.mxu0 %v7636_v57  ;;  %2191 = vmatprep.subr.bf16.mxu1 %v7639_v58  ;;  %v7690_v57 = vld [vmem:[#allocation6 + $0x2fc] ss:$20 sps:$4 sm:$0xff]   ;;  %v7693_v58 = vld [vmem:[#allocation6 + $0x304] ss:$20 sps:$4 sm:$0xff]  }
 0x1b2   :  { %2110 = vmatpush1.bf16.msra.mxu0 %v7634_v59  ;;  %2192 = vmatpush1.bf16.msra.mxu1 %v7637_v60  ;;  %v7688_v59 = vld [vmem:[#allocation6 + $0x2f8] ss:$20 sps:$4 sm:$0xff]   ;;  %v7691_v60 = vld [vmem:[#allocation6 + $0x300] ss:$20 sps:$4 sm:$0xff]  }
 0x1b3   :  { %2111 = vmatprep.subr.bf16.mxu0 %v7642_v62  ;;  %2193 = vmatprep.subr.bf16.mxu1 %v7645_v63  ;;  %v7696_v62 = vld [vmem:[#allocation6 + $0x324] ss:$20 sps:$4 sm:$0xff]   ;;  %v7699_v63 = vld [vmem:[#allocation6 + $0x32c] ss:$20 sps:$4 sm:$0xff]  }
 0x1b6   :  { %2112 = vmatpush1.bf16.msra.mxu0 %v7640_v0  ;;  %2194 = vmatpush1.bf16.msra.mxu1 %v7643_v1  ;;  %v7694_v0 = vld [vmem:[#allocation6 + $0x320] ss:$20 sps:$4 sm:$0xff]   ;;  %v7697_v1 = vld [vmem:[#allocation6 + $0x328] ss:$20 sps:$4 sm:$0xff]  }
 0x1b7   :  { %2113 = vmatprep.subr.bf16.mxu0 %v7648_v2  ;;  %2195 = vmatprep.subr.bf16.mxu1 %v7651_v5  ;;  %v7702_v2 = vld [vmem:[#allocation6 + $0x34c] ss:$20 sps:$4 sm:$0xff]   ;;  %v7705_v5 = vld [vmem:[#allocation6 + $0x354] ss:$20 sps:$4 sm:$0xff]  }
 0x1ba   :  { %2114 = vmatpush1.bf16.msra.mxu0 %v7646_v6  ;;  %2196 = vmatpush1.bf16.msra.mxu1 %v7649_v7  ;;  %v7700_v6 = vld [vmem:[#allocation6 + $0x348] ss:$20 sps:$4 sm:$0xff]   ;;  %v7703_v7 = vld [vmem:[#allocation6 + $0x350] ss:$20 sps:$4 sm:$0xff]  }
 0x1bb   :  { %2115 = vmatprep.subr.bf16.mxu0 %v7654_v8  ;;  %2197 = vmatprep.subr.bf16.mxu1 %v7657_v9  ;;  %v7708_v8 = vld [vmem:[#allocation6 + $0x374] ss:$20 sps:$4 sm:$0xff]   ;;  %v7711_v9 = vld [vmem:[#allocation6 + $0x37c] ss:$20 sps:$4 sm:$0xff]  }
 0x1be   :  { %2116 = vmatpush1.bf16.msra.mxu0 %v7652_v10  ;;  %2198 = vmatpush1.bf16.msra.mxu1 %v7655_v11  ;;  %v7706_v10 = vld [vmem:[#allocation6 + $0x370] ss:$20 sps:$4 sm:$0xff]   ;;  %v7709_v11 = vld [vmem:[#allocation6 + $0x378] ss:$20 sps:$4 sm:$0xff]  }
 0x1bf   :  { %2117 = vmatprep.subr.bf16.mxu0 %v7660_v12  ;;  %2199 = vmatprep.subr.bf16.mxu1 %v7663_v13  ;;  %v7714_v12 = vld [vmem:[#allocation6 + $0x39c] ss:$20 sps:$4 sm:$0xff]   ;;  %v7717_v13 = vld [vmem:[#allocation6 + $0x3a4] ss:$20 sps:$4 sm:$0xff]  }
 0x1c2   :  { %2118 = vmatpush1.bf16.msra.mxu0 %v7658_v14  ;;  %2200 = vmatpush1.bf16.msra.mxu1 %v7661_v15  ;;  %v7712_v14 = vld [vmem:[#allocation6 + $0x398] ss:$20 sps:$4 sm:$0xff]   ;;  %v7715_v15 = vld [vmem:[#allocation6 + $0x3a0] ss:$20 sps:$4 sm:$0xff]  }
 0x1c3   :  { %2119 = vmatprep.subr.bf16.mxu0 %v7666_v16  ;;  %2201 = vmatprep.subr.bf16.mxu1 %v7669_v17  ;;  %v7720_v16 = vld [vmem:[#allocation6 + $0x3c4] ss:$20 sps:$4 sm:$0xff]   ;;  %v7723_v17 = vld [vmem:[#allocation6 + $0x3cc] ss:$20 sps:$4 sm:$0xff]  }
 0x1c6   :  { %2120 = vmatpush1.bf16.msra.mxu0 %v7664_v18  ;;  %2202 = vmatpush1.bf16.msra.mxu1 %v7667_v19  ;;  %v7718_v18 = vld [vmem:[#allocation6 + $0x3c0] ss:$20 sps:$4 sm:$0xff]   ;;  %v7721_v19 = vld [vmem:[#allocation6 + $0x3c8] ss:$20 sps:$4 sm:$0xff]  }
 0x1c7   :  { %2130 = vmatprep.subr.bf16.mxu0 %v7672_v21  ;;  %2212 = vmatprep.subr.bf16.mxu1 %v7675_v24  ;;  %v7726_v21 = vld [vmem:[#allocation6 + $0x3ec] ss:$20 sps:$4 sm:$0xff]   ;;  %v7729_v24 = vld [vmem:[#allocation6 + $0x3f4] ss:$20 sps:$4 sm:$0xff]  }
 0x25c   :  { %v938_v30 = vpop.f32.mrb[0].mxu0  ;;  %v8848_v31 = vpop.f32.mrb[8].mxu1 }
 0x25d   :  { %v7340_v32 = vadd.f32 %v938_v30, %v366_v27  ;;  %v940_v33 = vpop.f32.mrb[1].mxu0  ;;  %v1022_v34 = vpop.f32.mrb[9].mxu1  ;;  %v7724_v27 = vld [vmem:[#allocation6 + $0x3e8] ss:$20 sps:$4 sm:$0xff]  }
 0x25e   :  { %v7341_v35 = vadd.f32 %v940_v33, %v370_v28  ;;  %v7343_v36 = vadd.f32 %v1022_v34, %v378_v29  ;;  %v942_v37 = vpop.f32.mrb[2].mxu0  ;;  %v1024_v38 = vpop.f32.mrb[10].mxu1  ;;  %v7727_v28 = vld [vmem:[#allocation6 + $0x3f0] ss:$20 sps:$4 sm:$0xff]   ;;  %v7732_v29 = vld [vmem:[#allocation6 + $0x414] ss:$20 sps:$4 sm:$0xff]  }
 0x25f   :  { %v1027_v39 = vmax.f32 %v7340_v32, 0.0  ;;  %v943_v40 = vpop.f32.mrb[3].mxu0  ;;  %v1025_v41 = vpop.f32.mrb[11].mxu1  ;;  %v7735_v30 = vld [vmem:[#allocation6 + $0x41c] ss:$20 sps:$4 sm:$0xff]  }
 0x260   :  { %v1028_v42 = vmax.f32 %v7341_v35, 0.0  ;;  %v1030_v43 = vmax.f32 %v7343_v36, 0.0  ;;  %v7730_v32 = vld [vmem:[#allocation6 + $0x410] ss:$20 sps:$4 sm:$0xff]   ;;  %v7733_v33 = vld [vmem:[#allocation6 + $0x418] ss:$20 sps:$4 sm:$0xff]  }
 0x261   :  { %v8852_v47 = vpack.c.bf16 %v1027_v39, %v1027_v39  ;;  %v7738_v34 = vld [vmem:[#allocation6 + $0x43c] ss:$20 sps:$4 sm:$0xff]   ;;  %v7741_v35 = vld [vmem:[#allocation6 + $0x444] ss:$20 sps:$4 sm:$0xff]   ;;  %v7739_v37 = vld [vmem:[#allocation6 + $0x440] ss:$20 sps:$4 sm:$0xff]  }
 0x262   :  { %v8850_v44 = vpack.c.bf16 %v1028_v42, %v1028_v42  ;;  %v8856_v50 = vpack.c.bf16 %v1030_v43, %v1030_v43  ;;  %v7736_v36 = vld [vmem:[#allocation6 + $0x438] ss:$20 sps:$4 sm:$0xff]   ;;  %v7742_v40 = vld [vmem:[#allocation6 + $0x460] ss:$20 sps:$4 sm:$0xff]   ;;  %v7745_v41 = vld [vmem:[#allocation6 + $0x468] ss:$20 sps:$4 sm:$0xff]  }
 0x263   :  { %v7744_v38 = vld [vmem:[#allocation6 + $0x464] ss:$20 sps:$4 sm:$0xff]   ;;  %v7747_v39 = vld [vmem:[#allocation6 + $0x46c] ss:$20 sps:$4 sm:$0xff]   ;;  %v7753_v43 = vld [vmem:[#allocation6 + $0x494] ss:$20 sps:$4 sm:$0xff]  }
 0x264   :  { %2121 = vmatprep.mubr.bf16.mxu0 %v8850_v44  ;;  %2203 = vmatprep.mubr.bf16.mxu1 %v8850_v44  ;;  %v7750_v42 = vld [vmem:[#allocation6 + $0x48c] ss:$20 sps:$4 sm:$0xff]  }
 0x265   :  { %2122 = vmatmul.mubr.bf16.vlgmr.msra.gmra.mrb[4].mxu0 %v8852_v47  ;;  %2204 = vmatmul.mubr.bf16.vlgmr.msra.gmra.mrb[12].mxu1 %v8852_v47 }
 0x266   :  { %2131 = vmatpush1.bf16.msra.mxu0 %v7670_v45  ;;  %2213 = vmatpush1.bf16.msra.mxu1 %v7673_v46  ;;  %v7748_v45 = vld [vmem:[#allocation6 + $0x488] ss:$20 sps:$4 sm:$0xff]   ;;  %v7751_v46 = vld [vmem:[#allocation6 + $0x490] ss:$20 sps:$4 sm:$0xff]  }
 0x267   :  { %2162 = vmatprep.mubr.bf16.mxu0 %v8856_v50  ;;  %2244 = vmatprep.mubr.bf16.mxu1 %v8856_v50 }
 0x268   :  { %2132 = vmatprep.subr.bf16.mxu0 %v7678_v48  ;;  %2214 = vmatprep.subr.bf16.mxu1 %v7681_v49  ;;  %v374_v48 = vrot.slane %v8837_v25, %v8830_v61  ;;  %v7756_v49 = vld [vmem:[#allocation6 + $0x4b4] ss:$20 sps:$4 sm:$0xff]   ;;  %v7766_v25 = vld [vmem:[#allocation6 + $0x150] ss:$20 sps:$4 sm:$0xff]  }
 0x26a   :  { %2133 = vmatpush1.bf16.msra.mxu0 %v7676_v51  ;;  %2215 = vmatpush1.bf16.msra.mxu1 %v7679_v52  ;;  %v7759_v51 = vld [vmem:[#allocation6 + $0x4bc] ss:$20 sps:$4 sm:$0xff]  }
 0x26b   :  { %2134 = vmatprep.subr.bf16.mxu0 %v7684_v53  ;;  %2216 = vmatprep.subr.bf16.mxu1 %v7687_v54  ;;  %v7754_v52 = vld [vmem:[#allocation6 + $0x4b0] ss:$20 sps:$4 sm:$0xff]   ;;  %v7757_v53 = vld [vmem:[#allocation6 + $0x4b8] ss:$20 sps:$4 sm:$0xff]   ;;  %v7342_v54 = vadd.f32 %v8848_v31, %v374_v48 }
 0x26c   :  { %v7769_v31 = vld [vmem:[#allocation6 + $0x290] ss:$20 sps:$4 sm:$0xff]  }
 0x26d   :  { %v7818_v48 = vld [vmem:[#allocation7 + $0x7c] ss:$20 sps:$4 sm:$0xff]  }
 0x26e   :  { %2135 = vmatpush1.bf16.msra.mxu0 %v7682_v55  ;;  %2217 = vmatpush1.bf16.msra.mxu1 %v7685_v56  ;;  %v7762_v55 = vld [vmem:[#allocation6 + $0x4dc] ss:$20 sps:$4 sm:$0xff]   ;;  %v7765_v56 = vld [vmem:[#allocation6 + $0x4e4] ss:$20 sps:$4 sm:$0xff]  }
 0x26f   :  { %2136 = vmatprep.subr.bf16.mxu0 %v7690_v57  ;;  %2218 = vmatprep.subr.bf16.mxu1 %v7693_v58  ;;  %v7760_v57 = vld [vmem:[#allocation6 + $0x4d8] ss:$20 sps:$4 sm:$0xff]   ;;  %v7763_v58 = vld [vmem:[#allocation6 + $0x4e0] ss:$20 sps:$4 sm:$0xff]  }
 0x272   :  { %2137 = vmatpush1.bf16.msra.mxu0 %v7688_v59  ;;  %2219 = vmatpush1.bf16.msra.mxu1 %v7691_v60  ;;  %v1029_v59 = vmax.f32 %v7342_v54, 0.0  ;;  %v7767_v60 = vld [vmem:[#allocation6 + $0x3d0] ss:$20 sps:$4 sm:$0xff]   ;;  %v7822_v54 = vld [vmem:[#allocation7 + $0xa0] ss:$20 sps:$4 sm:$0xff]  }
 0x273   :  { %2138 = vmatprep.subr.bf16.mxu0 %v7696_v62  ;;  %2220 = vmatprep.subr.bf16.mxu1 %v7699_v63  ;;  %v7768_v62 = vld [vmem:[#allocation6 + $0x10] ss:$20 sps:$4 sm:$0xff]  }
 0x274   :  { %v8865_v63 = vpack.c.bf16 %v1029_v59, %v1029_v59  ;;  %v7831_v59 = vld [vmem:[#allocation7 + $0xd0] ss:$20 sps:$4 sm:$0xff]  }
 0x276   :  { %2139 = vmatpush1.bf16.msra.mxu0 %v7694_v0  ;;  %2221 = vmatpush1.bf16.msra.mxu1 %v7697_v1  ;;  %v7770_v0 = vld [vmem:[#allocation6 + $0x178] ss:$20 sps:$4 sm:$0xff]  }
 0x277   :  { %2140 = vmatprep.subr.bf16.mxu0 %v7702_v2  ;;  %2222 = vmatprep.subr.bf16.mxu1 %v7705_v5  ;;  %v7771_v1 = vld [vmem:[#allocation6 + $0x3f8] ss:$20 sps:$4 sm:$0xff]  }
 0x278   :  { %v7772_v2 = vld [vmem:[#allocation6 + $0x38] ss:$20 sps:$4 sm:$0xff]  }
 0x279   :  { %v7773_v5 = vld [vmem:[#allocation6 + $0x2b8] ss:$20 sps:$4 sm:$0xff]  }
 0x27a   :  { %2141 = vmatpush1.bf16.msra.mxu0 %v7700_v6  ;;  %2223 = vmatpush1.bf16.msra.mxu1 %v7703_v7  ;;  %v7774_v6 = vld [vmem:[#allocation6 + $0x1a0] ss:$20 sps:$4 sm:$0xff]  }
 0x27b   :  { %2142 = vmatprep.subr.bf16.mxu0 %v7708_v8  ;;  %2224 = vmatprep.subr.bf16.mxu1 %v7711_v9  ;;  %v7775_v7 = vld [vmem:[#allocation6 + $0x420] ss:$20 sps:$4 sm:$0xff]  }
 0x27c   :  { %v7776_v8 = vld [vmem:[#allocation6 + $0x60] ss:$20 sps:$4 sm:$0xff]  }
 0x27d   :  { %v7777_v9 = vld [vmem:[#allocation6 + $0x2e0] ss:$20 sps:$4 sm:$0xff]  }
 0x27e   :  { %2143 = vmatpush1.bf16.msra.mxu0 %v7706_v10  ;;  %2225 = vmatpush1.bf16.msra.mxu1 %v7709_v11  ;;  %v7778_v10 = vld [vmem:[#allocation6 + $0x1c8] ss:$20 sps:$4 sm:$0xff]  }
 0x27f   :  { %2144 = vmatprep.subr.bf16.mxu0 %v7714_v12  ;;  %2226 = vmatprep.subr.bf16.mxu1 %v7717_v13  ;;  %v7779_v11 = vld [vmem:[#allocation6 + $0x448] ss:$20 sps:$4 sm:$0xff]   ;;  %v7782_v13 = vld [vmem:[#allocation6 + $0x1f0] ss:$20 sps:$4 sm:$0xff]  }
 0x280   :  { %v7780_v12 = vld [vmem:[#allocation6 + $0x88] ss:$20 sps:$4 sm:$0xff]  }
 0x282   :  { %2145 = vmatpush1.bf16.msra.mxu0 %v7712_v14  ;;  %2227 = vmatpush1.bf16.msra.mxu1 %v7715_v15  ;;  %v7784_v14 = vld [vmem:[#allocation6 + $0xb0] ss:$20 sps:$4 sm:$0xff]  }
 0x283   :  { %2146 = vmatprep.subr.bf16.mxu0 %v7720_v16  ;;  %2228 = vmatprep.subr.bf16.mxu1 %v7723_v17  ;;  %v7785_v15 = vld [vmem:[#allocation6 + $0x330] ss:$20 sps:$4 sm:$0xff]   ;;  %v7786_v16 = vld [vmem:[#allocation6 + $0x218] ss:$20 sps:$4 sm:$0xff]  }
 0x284   :  { %v7787_v17 = vld [vmem:[#allocation6 + $0x498] ss:$20 sps:$4 sm:$0xff]  }
 0x286   :  { %2147 = vmatpush1.bf16.msra.mxu0 %v7718_v18  ;;  %2229 = vmatpush1.bf16.msra.mxu1 %v7721_v19  ;;  %v7788_v18 = vld [vmem:[#allocation6 + $0xd8] ss:$20 sps:$4 sm:$0xff]  }
 0x287   :  { %2148 = vmatprep.subr.bf16.mxu0 %v7726_v21  ;;  %2230 = vmatprep.subr.bf16.mxu1 %v7729_v24  ;;  %v7789_v19 = vld [vmem:[#allocation6 + $0x358] ss:$20 sps:$4 sm:$0xff]   ;;  %v7790_v21 = vld [vmem:[#allocation6 + $0x240] ss:$20 sps:$4 sm:$0xff]  }
 0x288   :  { %v7791_v24 = vld [vmem:[#allocation6 + $0x4c0] ss:$20 sps:$4 sm:$0xff]  }
 0x28a   :  { %2149 = vmatpush1.bf16.msra.mxu0 %v7724_v27  ;;  %2231 = vmatpush1.bf16.msra.mxu1 %v7727_v28  ;;  %v7792_v27 = vld [vmem:[#allocation6 + $0x100] ss:$20 sps:$4 sm:$0xff]  }
 0x28b   :  { %2150 = vmatprep.subr.bf16.mxu0 %v7732_v29  ;;  %2232 = vmatprep.subr.bf16.mxu1 %v7735_v30  ;;  %v7793_v28 = vld [vmem:[#allocation6 + $0x380] ss:$20 sps:$4 sm:$0xff]   ;;  %v7794_v29 = vld [vmem:[#allocation6 + $0x268] ss:$20 sps:$4 sm:$0xff]  }
 0x28c   :  { %v7795_v30 = vld [vmem:[#allocation6 + $0x4e8] ss:$20 sps:$4 sm:$0xff]  }
 0x28e   :  { %2151 = vmatpush1.bf16.msra.mxu0 %v7730_v32  ;;  %2233 = vmatpush1.bf16.msra.mxu1 %v7733_v33  ;;  %v7796_v32 = vld [vmem:[#allocation6 + $0x128] ss:$20 sps:$4 sm:$0xff]  }
 0x28f   :  { %2152 = vmatprep.subr.bf16.mxu0 %v7738_v34  ;;  %2234 = vmatprep.subr.bf16.mxu1 %v7741_v35  ;;  %v7797_v33 = vld [vmem:[#allocation6 + $0x3a8] ss:$20 sps:$4 sm:$0xff]   ;;  %v7800_v34 = vld [vmem:[#allocation7 + $0x4] ss:$20 sps:$4 sm:$0xff]   ;;  %v7803_v35 = vld [vmem:[#allocation7 + $0xc] ss:$20 sps:$4 sm:$0xff]  }
 0x292   :  { %2153 = vmatpush1.bf16.msra.mxu0 %v7736_v36  ;;  %2235 = vmatpush1.bf16.msra.mxu1 %v7739_v37  ;;  %v7798_v36 = vld [vmem:[#allocation7] ss:$20 sps:$4 sm:$0xff]   ;;  %v7801_v37 = vld [vmem:[#allocation7 + $0x8] ss:$20 sps:$4 sm:$0xff]  }
 0x293   :  { %2154 = vmatprep.subr.bf16.mxu0 %v7744_v38  ;;  %2236 = vmatprep.subr.bf16.mxu1 %v7747_v39  ;;  %v7806_v38 = vld [vmem:[#allocation7 + $0x2c] ss:$20 sps:$4 sm:$0xff]   ;;  %v7809_v39 = vld [vmem:[#allocation7 + $0x34] ss:$20 sps:$4 sm:$0xff]  }
 0x296   :  { %2155 = vmatpush1.bf16.msra.mxu0 %v7742_v40  ;;  %2237 = vmatpush1.bf16.msra.mxu1 %v7745_v41  ;;  %v7804_v40 = vld [vmem:[#allocation7 + $0x28] ss:$20 sps:$4 sm:$0xff]   ;;  %v7807_v41 = vld [vmem:[#allocation7 + $0x30] ss:$20 sps:$4 sm:$0xff]  }
 0x297   :  { %2156 = vmatprep.subr.bf16.mxu0 %v7750_v42  ;;  %2238 = vmatprep.subr.bf16.mxu1 %v7753_v43  ;;  %v7812_v42 = vld [vmem:[#allocation7 + $0x54] ss:$20 sps:$4 sm:$0xff]   ;;  %v7815_v43 = vld [vmem:[#allocation7 + $0x5c] ss:$20 sps:$4 sm:$0xff]  }
 0x29a   :  { %2157 = vmatpush1.bf16.msra.mxu0 %v7748_v45  ;;  %2239 = vmatpush1.bf16.msra.mxu1 %v7751_v46  ;;  %v7810_v45 = vld [vmem:[#allocation7 + $0x50] ss:$20 sps:$4 sm:$0xff]   ;;  %v7813_v46 = vld [vmem:[#allocation7 + $0x58] ss:$20 sps:$4 sm:$0xff]  }
 0x29b   :  { %2158 = vmatprep.subr.bf16.mxu0 %v7756_v49  ;;  %2240 = vmatprep.subr.bf16.mxu1 %v7759_v51  ;;  %v7821_v49 = vld [vmem:[#allocation7 + $0x84] ss:$20 sps:$4 sm:$0xff]   ;;  %v7819_v51 = vld [vmem:[#allocation7 + $0x80] ss:$20 sps:$4 sm:$0xff]  }
 0x29e   :  { %2159 = vmatpush1.bf16.msra.mxu0 %v7754_v52  ;;  %2241 = vmatpush1.bf16.msra.mxu1 %v7757_v53  ;;  %v7824_v52 = vld [vmem:[#allocation7 + $0xa4] ss:$20 sps:$4 sm:$0xff]   ;;  %v7827_v53 = vld [vmem:[#allocation7 + $0xac] ss:$20 sps:$4 sm:$0xff]  }
 0x29f   :  { %2160 = vmatprep.subr.bf16.mxu0 %v7762_v55  ;;  %2242 = vmatprep.subr.bf16.mxu1 %v7765_v56  ;;  %v7825_v55 = vld [vmem:[#allocation7 + $0xa8] ss:$20 sps:$4 sm:$0xff]   ;;  %v7830_v56 = vld [vmem:[#allocation7 + $0xcc] ss:$20 sps:$4 sm:$0xff]  }
 0x2a2   :  { %2161 = vmatpush1.bf16.msra.mxu0 %v7760_v57  ;;  %2243 = vmatpush1.bf16.msra.mxu1 %v7763_v58  ;;  %v7833_v57 = vld [vmem:[#allocation7 + $0xd4] ss:$20 sps:$4 sm:$0xff]  }
 0x2a3   :  { %7122 = vmatprep.subr.bf16.mxu0 %v7766_v25  ;;  %7144 = vmatprep.subr.bf16.mxu1 %v7767_v60  ;;  %v7828_v58 = vld [vmem:[#allocation7 + $0xc8] ss:$20 sps:$4 sm:$0xff]  }
 0x2a4   :  { %v7836_v25 = vld [vmem:[#allocation7 + $0xf4] ss:$20 sps:$4 sm:$0xff]   ;;  %v7839_v60 = vld [vmem:[#allocation7 + $0xfc] ss:$20 sps:$4 sm:$0xff]  }
 0x2a5   :  { %2163 = vmatmul.mubr.bf16.vlgmr.msra.gmra.mrb[4].mxu0 %v8865_v63  ;;  %2245 = vmatmul.mubr.bf16.vlgmr.msra.gmra.mrb[12].mxu1 %v8865_v63 }
 0x2a6   :  { %7123 = vmatpush3.bf16.msra.mxu0 %v7768_v62  ;;  %2285 = vmatprep.mubr.bf16.mxu0 %v8850_v44  ;;  %v7781_v44 = vld [vmem:[#allocation6 + $0x308] ss:$20 sps:$4 sm:$0xff]   ;;  %v7834_v62 = vld [vmem:[#allocation7 + $0xf0] ss:$20 sps:$4 sm:$0xff]  }
 0x2a7   :  { %7145 = vmatpush3.bf16.msra.mxu1 %v7769_v31  ;;  %2325 = vmatprep.mubr.bf16.mxu1 %v8856_v50  ;;  %v7783_v50 = vld [vmem:[#allocation6 + $0x470] ss:$20 sps:$4 sm:$0xff]  }
 0x2a8   :  { %7124 = vmatprep.subr.bf16.mxu0 %v7770_v0  ;;  %7146 = vmatprep.subr.bf16.mxu1 %v7771_v1  ;;  %v7842_v31 = vld [vmem:[#allocation7 + $0x11c] ss:$20 sps:$4 sm:$0xff]   ;;  %v7845_v0 = vld [vmem:[#allocation7 + $0x124] ss:$20 sps:$4 sm:$0xff]  }
 0x2a9   :  { %v7840_v1 = vld [vmem:[#allocation7 + $0x118] ss:$20 sps:$4 sm:$0xff]  }
 0x2aa   :  { %7125 = vmatpush3.bf16.msra.mxu0 %v7772_v2  ;;  %v7843_v2 = vld [vmem:[#allocation7 + $0x120] ss:$20 sps:$4 sm:$0xff]  }
 0x2ab   :  { %7147 = vmatpush3.bf16.msra.mxu1 %v7773_v5  ;;  %7126 = vmatprep.subr.bf16.mxu0 %v7774_v6  ;;  %v7848_v5 = vld [vmem:[#allocation7 + $0x144] ss:$20 sps:$4 sm:$0xff]   ;;  %v7851_v6 = vld [vmem:[#allocation7 + $0x14c] ss:$20 sps:$4 sm:$0xff]  }
 0x2ac   :  { %7148 = vmatprep.subr.bf16.mxu1 %v7775_v7  ;;  %v7846_v7 = vld [vmem:[#allocation7 + $0x140] ss:$20 sps:$4 sm:$0xff]  }
 0x2ae   :  { %7127 = vmatpush3.bf16.msra.mxu0 %v7776_v8  ;;  %v7849_v8 = vld [vmem:[#allocation7 + $0x148] ss:$20 sps:$4 sm:$0xff]  }
 0x2af   :  { %7149 = vmatpush3.bf16.msra.mxu1 %v7777_v9  ;;  %7128 = vmatprep.subr.bf16.mxu0 %v7778_v10  ;;  %v7854_v9 = vld [vmem:[#allocation7 + $0x16c] ss:$20 sps:$4 sm:$0xff]   ;;  %v7857_v10 = vld [vmem:[#allocation7 + $0x174] ss:$20 sps:$4 sm:$0xff]  }
 0x2b0   :  { %7150 = vmatprep.subr.bf16.mxu1 %v7779_v11  ;;  %v7852_v11 = vld [vmem:[#allocation7 + $0x168] ss:$20 sps:$4 sm:$0xff]  }
 0x2b2   :  { %7129 = vmatpush3.bf16.msra.mxu0 %v7780_v12  ;;  %v7855_v12 = vld [vmem:[#allocation7 + $0x170] ss:$20 sps:$4 sm:$0xff]  }
 0x2b3   :  { %7151 = vmatpush3.bf16.msra.mxu1 %v7781_v44  ;;  %7130 = vmatprep.subr.bf16.mxu0 %v7782_v13  ;;  %v7860_v44 = vld [vmem:[#allocation7 + $0x194] ss:$20 sps:$4 sm:$0xff]   ;;  %v7863_v13 = vld [vmem:[#allocation7 + $0x19c] ss:$20 sps:$4 sm:$0xff]  }
 0x2b4   :  { %7152 = vmatprep.subr.bf16.mxu1 %v7783_v50  ;;  %v7858_v50 = vld [vmem:[#allocation7 + $0x190] ss:$20 sps:$4 sm:$0xff]  }
 0x2b6   :  { %7131 = vmatpush3.bf16.msra.mxu0 %v7784_v14  ;;  %v7861_v14 = vld [vmem:[#allocation7 + $0x198] ss:$20 sps:$4 sm:$0xff]  }
 0x2b7   :  { %7153 = vmatpush3.bf16.msra.mxu1 %v7785_v15  ;;  %7132 = vmatprep.subr.bf16.mxu0 %v7786_v16  ;;  %v7866_v15 = vld [vmem:[#allocation7 + $0x1bc] ss:$20 sps:$4 sm:$0xff]   ;;  %v7869_v16 = vld [vmem:[#allocation7 + $0x1c4] ss:$20 sps:$4 sm:$0xff]  }
 0x2b8   :  { %7154 = vmatprep.subr.bf16.mxu1 %v7787_v17  ;;  %v7864_v17 = vld [vmem:[#allocation7 + $0x1b8] ss:$20 sps:$4 sm:$0xff]  }
 0x2ba   :  { %7133 = vmatpush3.bf16.msra.mxu0 %v7788_v18  ;;  %v7867_v18 = vld [vmem:[#allocation7 + $0x1c0] ss:$20 sps:$4 sm:$0xff]  }
 0x2bb   :  { %7155 = vmatpush3.bf16.msra.mxu1 %v7789_v19  ;;  %7134 = vmatprep.subr.bf16.mxu0 %v7790_v21  ;;  %v7872_v19 = vld [vmem:[#allocation7 + $0x1e4] ss:$20 sps:$4 sm:$0xff]   ;;  %v7875_v21 = vld [vmem:[#allocation7 + $0x1ec] ss:$20 sps:$4 sm:$0xff]  }
 0x2bc   :  { %7156 = vmatprep.subr.bf16.mxu1 %v7791_v24  ;;  %v7870_v24 = vld [vmem:[#allocation7 + $0x1e0] ss:$20 sps:$4 sm:$0xff]  }
 0x2be   :  { %7135 = vmatpush3.bf16.msra.mxu0 %v7792_v27  ;;  %v7873_v27 = vld [vmem:[#allocation7 + $0x1e8] ss:$20 sps:$4 sm:$0xff]  }
 0x2bf   :  { %7157 = vmatpush3.bf16.msra.mxu1 %v7793_v28  ;;  %7136 = vmatprep.subr.bf16.mxu0 %v7794_v29  ;;  %v7878_v28 = vld [vmem:[#allocation7 + $0x20c] ss:$20 sps:$4 sm:$0xff]   ;;  %v7881_v29 = vld [vmem:[#allocation7 + $0x214] ss:$20 sps:$4 sm:$0xff]  }
 0x2c0   :  { %7158 = vmatprep.subr.bf16.mxu1 %v7795_v30  ;;  %v7876_v30 = vld [vmem:[#allocation7 + $0x208] ss:$20 sps:$4 sm:$0xff]  }
 0x2c2   :  { %7137 = vmatpush3.bf16.msra.mxu0 %v7796_v32  ;;  %v7879_v32 = vld [vmem:[#allocation7 + $0x210] ss:$20 sps:$4 sm:$0xff]  }
 0x2c3   :  { %7159 = vmatpush3.bf16.msra.mxu1 %v7797_v33  ;;  %3653 = vmatprep.subr.bf16.mxu0 %v7800_v34  ;;  %v7884_v33 = vld [vmem:[#allocation7 + $0x234] ss:$20 sps:$4 sm:$0xff]   ;;  %v7887_v34 = vld [vmem:[#allocation7 + $0x23c] ss:$20 sps:$4 sm:$0xff]  }
 0x2c4   :  { %3776 = vmatprep.subr.bf16.mxu1 %v7803_v35  ;;  %v7882_v35 = vld [vmem:[#allocation7 + $0x230] ss:$20 sps:$4 sm:$0xff]  }
 0x2c5   :  { %2286 = vmatmul.mubr.bf16.vlgmr.msra.gmra.mrb[8].mxu0 %v8852_v47  ;;  %v7816_v47 = vld [vmem:[#allocation7 + $0x78] ss:$20 sps:$4 sm:$0xff]  }
 0x2c6   :  { %2326 = vmatmul.mubr.bf16.vlgmr.msra.gmra.mrb[16].mxu1 %v8865_v63  ;;  %3654 = vmatpush1.bf16.msra.mxu0 %v7798_v36  ;;  %v7837_v63 = vld [vmem:[#allocation7 + $0xf8] ss:$20 sps:$4 sm:$0xff]  }
 0x2c7   :  { %3777 = vmatpush1.bf16.msra.mxu1 %v7801_v37  ;;  %3655 = vmatprep.subr.bf16.mxu0 %v7806_v38  ;;  %v7885_v36 = vld [vmem:[#allocation7 + $0x238] ss:$20 sps:$4 sm:$0xff]   ;;  %v7890_v37 = vld [vmem:[#allocation7 + $0x25c] ss:$20 sps:$4 sm:$0xff]  }
 0x2c8   :  { %3778 = vmatprep.subr.bf16.mxu1 %v7809_v39  ;;  %v7893_v38 = vld [vmem:[#allocation7 + $0x264] ss:$20 sps:$4 sm:$0xff]  }
 0x2c9   :  { %v7888_v39 = vld [vmem:[#allocation7 + $0x258] ss:$20 sps:$4 sm:$0xff]  }
 0x2ca   :  { %3656 = vmatpush1.bf16.msra.mxu0 %v7804_v40  ;;  %v7891_v40 = vld [vmem:[#allocation7 + $0x260] ss:$20 sps:$4 sm:$0xff]  }
 0x2cb   :  { %3779 = vmatpush1.bf16.msra.mxu1 %v7807_v41  ;;  %3657 = vmatprep.subr.bf16.mxu0 %v7812_v42  ;;  %v7896_v41 = vld [vmem:[#allocation7 + $0x284] ss:$20 sps:$4 sm:$0xff]   ;;  %v7899_v42 = vld [vmem:[#allocation7 + $0x28c] ss:$20 sps:$4 sm:$0xff]  }
 0x2cc   :  { %3780 = vmatprep.subr.bf16.mxu1 %v7815_v43  ;;  %v6474_v43 = vld [vmem:[%s9009_s8 + $0x2] ss:$8 sm:$0xf] }
 0x2ce   :  { %3658 = vmatpush1.bf16.msra.mxu0 %v7810_v45  ;;  %v6475_v45 = vld [vmem:[%s9009_s8 + $0x2] ss:$8 sm:$0x10] }
 0x2cf   :  { %3781 = vmatpush1.bf16.msra.mxu1 %v7813_v46  ;;  %3659 = vmatprep.subr.bf16.mxu0 %v7818_v48  ;;  %v8879_v46 = vor.u32 %v6475_v45, %v6474_v43 }
 0x2d0   :  { %3782 = vmatprep.subr.bf16.mxu1 %v7821_v49 }
 0x2d1   :  { %v1235_v48 = vrot.slane %v8879_v46, %v8813_v22  ;;  %v1239_v49 = vrot.slane %v8879_v46, %v8816_v23 }
 0x2d2   :  { %3660 = vmatpush1.bf16.msra.mxu0 %v7816_v47  ;;  %v1247_v47 = vrot.slane %v8879_v46, %v8840_v26 }
 0x2d3   :  { %3783 = vmatpush1.bf16.msra.mxu1 %v7819_v51  ;;  %3661 = vmatprep.subr.bf16.mxu0 %v7824_v52 }
 0x2d4   :  { %3784 = vmatprep.subr.bf16.mxu1 %v7827_v53 }
 0x2d6   :  { %3662 = vmatpush1.bf16.msra.mxu0 %v7822_v54 }
 0x2d7   :  { %3785 = vmatpush1.bf16.msra.mxu1 %v7825_v55  ;;  %3663 = vmatprep.subr.bf16.mxu0 %v7830_v56 }
 0x2d8   :  { %3786 = vmatprep.subr.bf16.mxu1 %v7833_v57 }
 0x2da   :  { %3664 = vmatpush1.bf16.msra.mxu0 %v7828_v58 }
 0x2db   :  { %3787 = vmatpush1.bf16.msra.mxu1 %v7831_v59  ;;  %3665 = vmatprep.subr.bf16.mxu0 %v7836_v25 }
 0x2dc   :  { %3788 = vmatprep.subr.bf16.mxu1 %v7839_v60 }
 0x2de   :  { %3666 = vmatpush1.bf16.msra.mxu0 %v7834_v62 }
 0x2df   :  { %3789 = vmatpush1.bf16.msra.mxu1 %v7837_v63  ;;  %3667 = vmatprep.subr.bf16.mxu0 %v7842_v31 }
 0x2e0   :  { %3790 = vmatprep.subr.bf16.mxu1 %v7845_v0 }
 0x2e2   :  { %3668 = vmatpush1.bf16.msra.mxu0 %v7840_v1  ;;  %v7894_v1 = vld [vmem:[#allocation7 + $0x280] ss:$20 sps:$4 sm:$0xff]  }
 0x2e3   :  { %3791 = vmatpush1.bf16.msra.mxu1 %v7843_v2  ;;  %3669 = vmatprep.subr.bf16.mxu0 %v7848_v5  ;;  %v7897_v2 = vld [vmem:[#allocation7 + $0x288] ss:$20 sps:$4 sm:$0xff]  }
 0x2e4   :  { %3792 = vmatprep.subr.bf16.mxu1 %v7851_v6  ;;  %v7902_v6 = vld [vmem:[#allocation7 + $0x2ac] ss:$20 sps:$4 sm:$0xff]  }
 0x2e6   :  { %3670 = vmatpush1.bf16.msra.mxu0 %v7846_v7  ;;  %v7905_v7 = vld [vmem:[#allocation7 + $0x2b4] ss:$20 sps:$4 sm:$0xff]  }
 0x2e7   :  { %3793 = vmatpush1.bf16.msra.mxu1 %v7849_v8  ;;  %3671 = vmatprep.subr.bf16.mxu0 %v7854_v9  ;;  %v7900_v9 = vld [vmem:[#allocation7 + $0x2a8] ss:$20 sps:$4 sm:$0xff]  }
 0x2e8   :  { %3794 = vmatprep.subr.bf16.mxu1 %v7857_v10  ;;  %v7903_v10 = vld [vmem:[#allocation7 + $0x2b0] ss:$20 sps:$4 sm:$0xff]  }
 0x2ea   :  { %3672 = vmatpush1.bf16.msra.mxu0 %v7852_v11  ;;  %v7908_v11 = vld [vmem:[#allocation7 + $0x2d4] ss:$20 sps:$4 sm:$0xff]  }
 0x2eb   :  { %3795 = vmatpush1.bf16.msra.mxu1 %v7855_v12  ;;  %3673 = vmatprep.subr.bf16.mxu0 %v7860_v44  ;;  %v7911_v12 = vld [vmem:[#allocation7 + $0x2dc] ss:$20 sps:$4 sm:$0xff]  }
 0x2ec   :  { %3796 = vmatprep.subr.bf16.mxu1 %v7863_v13  ;;  %v7906_v44 = vld [vmem:[#allocation7 + $0x2d0] ss:$20 sps:$4 sm:$0xff]   ;;  %v7909_v13 = vld [vmem:[#allocation7 + $0x2d8] ss:$20 sps:$4 sm:$0xff]  }
 0x2ee   :  { %3674 = vmatpush1.bf16.msra.mxu0 %v7858_v50  ;;  %v7914_v50 = vld [vmem:[#allocation7 + $0x2fc] ss:$20 sps:$4 sm:$0xff]  }
 0x2ef   :  { %3797 = vmatpush1.bf16.msra.mxu1 %v7861_v14  ;;  %3675 = vmatprep.subr.bf16.mxu0 %v7866_v15  ;;  %v7917_v14 = vld [vmem:[#allocation7 + $0x304] ss:$20 sps:$4 sm:$0xff]  }
 0x2f0   :  { %3798 = vmatprep.subr.bf16.mxu1 %v7869_v16  ;;  %v7912_v15 = vld [vmem:[#allocation7 + $0x2f8] ss:$20 sps:$4 sm:$0xff]   ;;  %v7915_v16 = vld [vmem:[#allocation7 + $0x300] ss:$20 sps:$4 sm:$0xff]  }
 0x2f2   :  { %3676 = vmatpush1.bf16.msra.mxu0 %v7864_v17  ;;  %v7920_v17 = vld [vmem:[#allocation7 + $0x324] ss:$20 sps:$4 sm:$0xff]  }
 0x2f3   :  { %3799 = vmatpush1.bf16.msra.mxu1 %v7867_v18  ;;  %3677 = vmatprep.subr.bf16.mxu0 %v7872_v19  ;;  %v7923_v18 = vld [vmem:[#allocation7 + $0x32c] ss:$20 sps:$4 sm:$0xff]  }
 0x2f4   :  { %3800 = vmatprep.subr.bf16.mxu1 %v7875_v21  ;;  %v7918_v19 = vld [vmem:[#allocation7 + $0x320] ss:$20 sps:$4 sm:$0xff]   ;;  %v7921_v21 = vld [vmem:[#allocation7 + $0x328] ss:$20 sps:$4 sm:$0xff]  }
 0x2f6   :  { %3678 = vmatpush1.bf16.msra.mxu0 %v7870_v24  ;;  %v7926_v24 = vld [vmem:[#allocation7 + $0x34c] ss:$20 sps:$4 sm:$0xff]  }
 0x2f7   :  { %3801 = vmatpush1.bf16.msra.mxu1 %v7873_v27  ;;  %3679 = vmatprep.subr.bf16.mxu0 %v7878_v28  ;;  %v7929_v27 = vld [vmem:[#allocation7 + $0x354] ss:$20 sps:$4 sm:$0xff]  }
 0x2f8   :  { %3802 = vmatprep.subr.bf16.mxu1 %v7881_v29  ;;  %v7924_v28 = vld [vmem:[#allocation7 + $0x348] ss:$20 sps:$4 sm:$0xff]   ;;  %v7927_v29 = vld [vmem:[#allocation7 + $0x350] ss:$20 sps:$4 sm:$0xff]  }
 0x2fa   :  { %3680 = vmatpush1.bf16.msra.mxu0 %v7876_v30  ;;  %v7932_v30 = vld [vmem:[#allocation7 + $0x374] ss:$20 sps:$4 sm:$0xff]  }
 0x2fb   :  { %3803 = vmatpush1.bf16.msra.mxu1 %v7879_v32  ;;  %3681 = vmatprep.subr.bf16.mxu0 %v7884_v33  ;;  %v7935_v32 = vld [vmem:[#allocation7 + $0x37c] ss:$20 sps:$4 sm:$0xff]   ;;  %v1250_v33 = vsub.s32 4, %v8798_v4 }
 0x2fc   :  { %3804 = vmatprep.subr.bf16.mxu1 %v7887_v34  ;;  %v7930_v34 = vld [vmem:[#allocation7 + $0x370] ss:$20 sps:$4 sm:$0xff]  }
 0x2fe   :  { %3682 = vmatpush1.bf16.msra.mxu0 %v7882_v35  ;;  %v7933_v35 = vld [vmem:[#allocation7 + $0x378] ss:$20 sps:$4 sm:$0xff]  }
 0x2ff   :  { %3805 = vmatpush1.bf16.msra.mxu1 %v7885_v36  ;;  %3683 = vmatprep.subr.bf16.mxu0 %v7890_v37  ;;  %v7938_v36 = vld [vmem:[#allocation7 + $0x39c] ss:$20 sps:$4 sm:$0xff]   ;;  %v7941_v37 = vld [vmem:[#allocation7 + $0x3a4] ss:$20 sps:$4 sm:$0xff]  }
 0x300   :  { %3806 = vmatprep.subr.bf16.mxu1 %v7893_v38 }
 0x302   :  { %3684 = vmatpush1.bf16.msra.mxu0 %v7888_v39  ;;  %v1251_v39 = vrot.slane %v8879_v46, %v1250_v33 }
 0x303   :  { %3807 = vmatpush1.bf16.msra.mxu1 %v7891_v40  ;;  %3694 = vmatprep.subr.bf16.mxu0 %v7896_v41 }
 0x304   :  { %3817 = vmatprep.subr.bf16.mxu1 %v7899_v42 }
 0x378   :  { %v2164_v51 = vpop.f32.mrb[4].mxu0  ;;  %v8887_v52 = vpop.f32.mrb[12].mxu1 }
 0x379   :  { %v7344_v53 = vadd.f32 %v2164_v51, %v1235_v48  ;;  %v2166_v54 = vpop.f32.mrb[5].mxu0  ;;  %v2248_v55 = vpop.f32.mrb[13].mxu1  ;;  %v7936_v48 = vld [vmem:[#allocation7 + $0x398] ss:$20 sps:$4 sm:$0xff]  }
 0x37a   :  { %v7345_v56 = vadd.f32 %v2166_v54, %v1239_v49  ;;  %v7347_v57 = vadd.f32 %v2248_v55, %v1247_v47  ;;  %v2168_v58 = vpop.f32.mrb[6].mxu0  ;;  %v2250_v59 = vpop.f32.mrb[14].mxu1  ;;  %v7939_v49 = vld [vmem:[#allocation7 + $0x3a0] ss:$20 sps:$4 sm:$0xff]   ;;  %v7944_v54 = vld [vmem:[#allocation7 + $0x3c4] ss:$20 sps:$4 sm:$0xff]  }
 0x37b   :  { %v2333_v25 = vmax.f32 %v7344_v53, 0.0  ;;  %v2169_v60 = vpop.f32.mrb[7].mxu0  ;;  %v2251_v62 = vpop.f32.mrb[15].mxu1  ;;  %v7947_v55 = vld [vmem:[#allocation7 + $0x3cc] ss:$20 sps:$4 sm:$0xff]  }
 0x37c   :  { %v2334_v63 = vmax.f32 %v7345_v56, 0.0  ;;  %v2336_v31 = vmax.f32 %v7347_v57, 0.0  ;;  %v7942_v59 = vld [vmem:[#allocation7 + $0x3c0] ss:$20 sps:$4 sm:$0xff]  }
 0x37d   :  { %v8891_v5 = vpack.c.bf16 %v2333_v25, %v2333_v25  ;;  %v7945_v25 = vld [vmem:[#allocation7 + $0x3c8] ss:$20 sps:$4 sm:$0xff]   ;;  %v7950_v60 = vld [vmem:[#allocation7 + $0x3ec] ss:$20 sps:$4 sm:$0xff]  }
 0x37e   :  { %v8889_v0 = vpack.c.bf16 %v2334_v63, %v2334_v63  ;;  %v8895_v8 = vpack.c.bf16 %v2336_v31, %v2336_v31  ;;  %v7953_v62 = vld [vmem:[#allocation7 + $0x3f4] ss:$20 sps:$4 sm:$0xff]   ;;  %v7951_v31 = vld [vmem:[#allocation7 + $0x3f0] ss:$20 sps:$4 sm:$0xff]  }
 0x37f   :  { %v7948_v63 = vld [vmem:[#allocation7 + $0x3e8] ss:$20 sps:$4 sm:$0xff]  }
 0x380   :  { %3685 = vmatprep.mubr.bf16.mxu0 %v8889_v0  ;;  %3808 = vmatprep.mubr.bf16.mxu1 %v8889_v0 }
 0x381   :  { %3686 = vmatmul.mubr.bf16.vlgmr.msra.gmra.mrb[12].mxu0 %v8891_v5  ;;  %3809 = vmatmul.mubr.bf16.vlgmr.msra.gmra.mrb[20].mxu1 %v8891_v5 }
 0x382   :  { %3695 = vmatpush1.bf16.msra.mxu0 %v7894_v1  ;;  %3818 = vmatpush1.bf16.msra.mxu1 %v7897_v2  ;;  %v7956_v1 = vld [vmem:[#allocation7 + $0x414] ss:$20 sps:$4 sm:$0xff]   ;;  %v7959_v2 = vld [vmem:[#allocation7 + $0x41c] ss:$20 sps:$4 sm:$0xff]  }
 0x383   :  { %3726 = vmatprep.mubr.bf16.mxu0 %v8895_v8  ;;  %3849 = vmatprep.mubr.bf16.mxu1 %v8895_v8 }
 0x384   :  { %3696 = vmatprep.subr.bf16.mxu0 %v7902_v6  ;;  %3819 = vmatprep.subr.bf16.mxu1 %v7905_v7  ;;  %v7954_v6 = vld [vmem:[#allocation7 + $0x410] ss:$20 sps:$4 sm:$0xff]   ;;  %v7957_v7 = vld [vmem:[#allocation7 + $0x418] ss:$20 sps:$4 sm:$0xff]  }
 0x386   :  { %3697 = vmatpush1.bf16.msra.mxu0 %v7900_v9  ;;  %3820 = vmatpush1.bf16.msra.mxu1 %v7903_v10  ;;  %v7962_v9 = vld [vmem:[#allocation7 + $0x43c] ss:$20 sps:$4 sm:$0xff]   ;;  %v7965_v10 = vld [vmem:[#allocation7 + $0x444] ss:$20 sps:$4 sm:$0xff]  }
 0x387   :  { %3698 = vmatprep.subr.bf16.mxu0 %v7908_v11  ;;  %3821 = vmatprep.subr.bf16.mxu1 %v7911_v12  ;;  %v7960_v11 = vld [vmem:[#allocation7 + $0x438] ss:$20 sps:$4 sm:$0xff]   ;;  %v7963_v12 = vld [vmem:[#allocation7 + $0x440] ss:$20 sps:$4 sm:$0xff]  }
 0x38a   :  { %3699 = vmatpush1.bf16.msra.mxu0 %v7906_v44  ;;  %3822 = vmatpush1.bf16.msra.mxu1 %v7909_v13  ;;  %v7968_v44 = vld [vmem:[#allocation7 + $0x464] ss:$20 sps:$4 sm:$0xff]   ;;  %v7971_v13 = vld [vmem:[#allocation7 + $0x46c] ss:$20 sps:$4 sm:$0xff]  }
 0x38b   :  { %3700 = vmatprep.subr.bf16.mxu0 %v7914_v50  ;;  %3823 = vmatprep.subr.bf16.mxu1 %v7917_v14  ;;  %v7966_v50 = vld [vmem:[#allocation7 + $0x460] ss:$20 sps:$4 sm:$0xff]   ;;  %v7969_v14 = vld [vmem:[#allocation7 + $0x468] ss:$20 sps:$4 sm:$0xff]  }
 0x38e   :  { %3701 = vmatpush1.bf16.msra.mxu0 %v7912_v15  ;;  %3824 = vmatpush1.bf16.msra.mxu1 %v7915_v16  ;;  %v7974_v15 = vld [vmem:[#allocation7 + $0x48c] ss:$20 sps:$4 sm:$0xff]   ;;  %v7977_v16 = vld [vmem:[#allocation7 + $0x494] ss:$20 sps:$4 sm:$0xff]  }
 0x38f   :  { %3702 = vmatprep.subr.bf16.mxu0 %v7920_v17  ;;  %3825 = vmatprep.subr.bf16.mxu1 %v7923_v18  ;;  %v7972_v17 = vld [vmem:[#allocation7 + $0x488] ss:$20 sps:$4 sm:$0xff]   ;;  %v7975_v18 = vld [vmem:[#allocation7 + $0x490] ss:$20 sps:$4 sm:$0xff]  }
 0x392   :  { %3703 = vmatpush1.bf16.msra.mxu0 %v7918_v19  ;;  %3826 = vmatpush1.bf16.msra.mxu1 %v7921_v21  ;;  %v1243_v19 = vrot.slane %v8879_v46, %v8830_v61  ;;  %v7980_v21 = vld [vmem:[#allocation7 + $0x4b4] ss:$20 sps:$4 sm:$0xff]   ;;  %v7992_v46 = vld [vmem:[#allocation7 + $0x504] ss:$20 sps:$4 sm:$0xff]  }
 0x393   :  { %3704 = vmatprep.subr.bf16.mxu0 %v7926_v24  ;;  %3827 = vmatprep.subr.bf16.mxu1 %v7929_v27  ;;  %v7983_v24 = vld [vmem:[#allocation7 + $0x4bc] ss:$20 sps:$4 sm:$0xff]  }
 0x394   :  { %v7978_v27 = vld [vmem:[#allocation7 + $0x4b0] ss:$20 sps:$4 sm:$0xff]  }
 0x396   :  { %3705 = vmatpush1.bf16.msra.mxu0 %v7924_v28  ;;  %3828 = vmatpush1.bf16.msra.mxu1 %v7927_v29  ;;  %v7981_v28 = vld [vmem:[#allocation7 + $0x4b8] ss:$20 sps:$4 sm:$0xff]   ;;  %v7346_v29 = vadd.f32 %v8887_v52, %v1243_v19 }
 0x397   :  { %3706 = vmatprep.subr.bf16.mxu0 %v7932_v30  ;;  %3829 = vmatprep.subr.bf16.mxu1 %v7935_v32  ;;  %v7986_v30 = vld [vmem:[#allocation7 + $0x4dc] ss:$20 sps:$4 sm:$0xff]   ;;  %v7989_v32 = vld [vmem:[#allocation7 + $0x4e4] ss:$20 sps:$4 sm:$0xff]   ;;  %v7998_v52 = vld [vmem:[#allocation7 + $0x52c] ss:$20 sps:$4 sm:$0xff]  }
 0x398   :  { %v7138_v38 = vpop.f32.mrb[8].mxu0  ;;  %v8045_v19 = vld [vmem:[#allocation7 + $0x2b8] ss:$20 sps:$4 sm:$0xff]  }
 0x399   :  { %v7160_v40 = vpop.f32.mrb[16].mxu1  ;;  %v7139_v41 = vpop.f32.mrb[9].mxu0 }
 0x39a   :  { %v7140_v42 = vadd.f32 %v7139_v41, %v7138_v38  ;;  %v7161_v43 = vpop.f32.mrb[17].mxu1  ;;  %3707 = vmatpush1.bf16.msra.mxu0 %v7930_v34  ;;  %3830 = vmatpush1.bf16.msra.mxu1 %v7933_v35  ;;  %v7141_v45 = vpop.f32.mrb[10].mxu0  ;;  %v7984_v34 = vld [vmem:[#allocation7 + $0x4d8] ss:$20 sps:$4 sm:$0xff]   ;;  %v7987_v35 = vld [vmem:[#allocation7 + $0x4e0] ss:$20 sps:$4 sm:$0xff]  }
 0x39b   :  { %v7162_v47 = vadd.f32 %v7161_v43, %v7160_v40  ;;  %v7163_v51 = vpop.f32.mrb[18].mxu1  ;;  %v7142_v53 = vpop.f32.mrb[11].mxu0  ;;  %3708 = vmatprep.subr.bf16.mxu0 %v7938_v36  ;;  %3831 = vmatprep.subr.bf16.mxu1 %v7941_v37  ;;  %v2335_v36 = vmax.f32 %v7346_v29, 0.0  ;;  %v7995_v37 = vld [vmem:[#allocation7 + $0x50c] ss:$20 sps:$4 sm:$0xff]  }
 0x39c   :  { %v2288_v56 = vadd.f32 %v7140_v42, %v1251_v39  ;;  %v7164_v57 = vpop.f32.mrb[19].mxu1  ;;  %v7990_v38 = vld [vmem:[#allocation7 + $0x500] ss:$20 sps:$4 sm:$0xff]   ;;  %v7993_v39 = vld [vmem:[#allocation7 + $0x508] ss:$20 sps:$4 sm:$0xff]  }
 0x39d   :  { %v8910_v40 = vpack.c.bf16 %v2335_v36, %v2335_v36  ;;  %v8001_v41 = vld [vmem:[#allocation7 + $0x534] ss:$20 sps:$4 sm:$0xff]   ;;  %v7999_v43 = vld [vmem:[#allocation7 + $0x530] ss:$20 sps:$4 sm:$0xff]   ;;  %v8019_v57 = vld [vmem:[#allocation7 + $0x5ac] ss:$20 sps:$4 sm:$0xff]  }
 0x39e   :  { %v8905_v58 = vadd.f32 %v7162_v47, %v2288_v56  ;;  %3709 = vmatpush1.bf16.msra.mxu0 %v7936_v48  ;;  %3832 = vmatpush1.bf16.msra.mxu1 %v7939_v49  ;;  %v7996_v42 = vld [vmem:[#allocation7 + $0x528] ss:$20 sps:$4 sm:$0xff]   ;;  %v8002_v49 = vld [vmem:[#allocation7 + $0x550] ss:$20 sps:$4 sm:$0xff]   ;;  %v8005_v47 = vld [vmem:[#allocation7 + $0x558] ss:$20 sps:$4 sm:$0xff]  }
 0x39f   :  { %3710 = vmatprep.subr.bf16.mxu0 %v7944_v54  ;;  %3833 = vmatprep.subr.bf16.mxu1 %v7947_v55  ;;  %v8004_v45 = vld [vmem:[#allocation7 + $0x554] ss:$20 sps:$4 sm:$0xff]   ;;  %v8007_v48 = vld [vmem:[#allocation7 + $0x55c] ss:$20 sps:$4 sm:$0xff]   ;;  %v8013_v53 = vld [vmem:[#allocation7 + $0x584] ss:$20 sps:$4 sm:$0xff]  }
 0x3a0   :  { %v8010_v51 = vld [vmem:[#allocation7 + $0x57c] ss:$20 sps:$4 sm:$0xff]   ;;  %v8008_v54 = vld [vmem:[#allocation7 + $0x578] ss:$20 sps:$4 sm:$0xff]   ;;  %v8011_v55 = vld [vmem:[#allocation7 + $0x580] ss:$20 sps:$4 sm:$0xff]  }
 0x3a1   :  { %v8016_v56 = vld [vmem:[#allocation7 + $0x5a4] ss:$20 sps:$4 sm:$0xff]   ;;  %v8050_v29 = vld [vmem:[#allocation7 + $0x1c8] ss:$20 sps:$4 sm:$0xff]  }
 0x3a2   :  { %3711 = vmatpush1.bf16.msra.mxu0 %v7942_v59  ;;  %3834 = vmatpush1.bf16.msra.mxu1 %v7945_v25  ;;  %v8014_v59 = vld [vmem:[#allocation7 + $0x5a0] ss:$20 sps:$4 sm:$0xff]   ;;  %v8017_v25 = vld [vmem:[#allocation7 + $0x5a8] ss:$20 sps:$4 sm:$0xff]   ;;  %v8057_v36 = vld [vmem:[#allocation7 + $0x330] ss:$20 sps:$4 sm:$0xff]  }
 0x3a3   :  { %3712 = vmatprep.subr.bf16.mxu0 %v7950_v60  ;;  %3835 = vmatprep.subr.bf16.mxu1 %v7953_v62  ;;  %v8022_v60 = vld [vmem:[#allocation7 + $0x5cc] ss:$20 sps:$4 sm:$0xff]   ;;  %v8025_v62 = vld [vmem:[#allocation7 + $0x5d4] ss:$20 sps:$4 sm:$0xff]  }
 0x3a6   :  { %3713 = vmatpush1.bf16.msra.mxu0 %v7948_v63  ;;  %3836 = vmatpush1.bf16.msra.mxu1 %v7951_v31  ;;  %v8020_v63 = vld [vmem:[#allocation7 + $0x5c8] ss:$20 sps:$4 sm:$0xff]   ;;  %v8023_v31 = vld [vmem:[#allocation7 + $0x5d0] ss:$20 sps:$4 sm:$0xff]  }
 0x3a7   :  { %3714 = vmatprep.subr.bf16.mxu0 %v7956_v1  ;;  %3837 = vmatprep.subr.bf16.mxu1 %v7959_v2  ;;  %v8028_v1 = vld [vmem:[#allocation7 + $0x5f4] ss:$20 sps:$4 sm:$0xff]   ;;  %v8031_v2 = vld [vmem:[#allocation7 + $0x5fc] ss:$20 sps:$4 sm:$0xff]  }
 0x3aa   :  { %3715 = vmatpush1.bf16.msra.mxu0 %v7954_v6  ;;  %3838 = vmatpush1.bf16.msra.mxu1 %v7957_v7  ;;  %v8026_v6 = vld [vmem:[#allocation7 + $0x5f0] ss:$20 sps:$4 sm:$0xff]   ;;  %v8029_v7 = vld [vmem:[#allocation7 + $0x5f8] ss:$20 sps:$4 sm:$0xff]  }
 0x3ab   :  { %3716 = vmatprep.subr.bf16.mxu0 %v7962_v9  ;;  %3839 = vmatprep.subr.bf16.mxu1 %v7965_v10  ;;  %v8034_v9 = vld [vmem:[#allocation7 + $0x61c] ss:$20 sps:$4 sm:$0xff]   ;;  %v8037_v10 = vld [vmem:[#allocation7 + $0x624] ss:$20 sps:$4 sm:$0xff]  }
 0x3ae   :  { %3717 = vmatpush1.bf16.msra.mxu0 %v7960_v11  ;;  %3840 = vmatpush1.bf16.msra.mxu1 %v7963_v12  ;;  %v8032_v11 = vld [vmem:[#allocation7 + $0x618] ss:$20 sps:$4 sm:$0xff]   ;;  %v8035_v12 = vld [vmem:[#allocation7 + $0x620] ss:$20 sps:$4 sm:$0xff]  }
 0x3af   :  { %3718 = vmatprep.subr.bf16.mxu0 %v7968_v44  ;;  %3841 = vmatprep.subr.bf16.mxu1 %v7971_v13  ;;  %v2337_v44 = vmax.f32 %v8905_v58, 0.0  ;;  %v8038_v13 = vld [vmem:[#allocation7 + $0x150] ss:$20 sps:$4 sm:$0xff]   ;;  %v8044_v58 = vld [vmem:[#allocation7 + $0x38] ss:$20 sps:$4 sm:$0xff]  }
 0x3b2   :  { %3719 = vmatpush1.bf16.msra.mxu0 %v7966_v50  ;;  %3842 = vmatpush1.bf16.msra.mxu1 %v7969_v14  ;;  %v8039_v50 = vld [vmem:[#allocation7 + $0x3d0] ss:$20 sps:$4 sm:$0xff]  }
 0x3b3   :  { %3720 = vmatprep.subr.bf16.mxu0 %v7974_v15  ;;  %3843 = vmatprep.subr.bf16.mxu1 %v7977_v16  ;;  %v8040_v14 = vld [vmem:[#allocation7 + $0x10] ss:$20 sps:$4 sm:$0xff]   ;;  %v8917_v15 = vpack.c.bf16 %v2337_v44, %v2337_v44  ;;  %v8077_v44 = vld [vmem:[#allocation7 + $0x628] ss:$20 sps:$4 sm:$0xff]  }
 0x3b4   :  { %v8041_v16 = vld [vmem:[#allocation7 + $0x290] ss:$20 sps:$4 sm:$0xff]  }
 0x3b6   :  { %3721 = vmatpush1.bf16.msra.mxu0 %v7972_v17  ;;  %3844 = vmatpush1.bf16.msra.mxu1 %v7975_v18  ;;  %v8042_v17 = vld [vmem:[#allocation7 + $0x178] ss:$20 sps:$4 sm:$0xff]  }
 0x3b7   :  { %3722 = vmatprep.subr.bf16.mxu0 %v7980_v21  ;;  %3845 = vmatprep.subr.bf16.mxu1 %v7983_v24  ;;  %v8043_v18 = vld [vmem:[#allocation7 + $0x3f8] ss:$20 sps:$4 sm:$0xff]   ;;  %v8046_v21 = vld [vmem:[#allocation7 + $0x1a0] ss:$20 sps:$4 sm:$0xff]  }
 0x3b8   :  { %v8047_v24 = vld [vmem:[#allocation7 + $0x420] ss:$20 sps:$4 sm:$0xff]  }
 0x3ba   :  { %3723 = vmatpush1.bf16.msra.mxu0 %v7978_v27  ;;  %3846 = vmatpush1.bf16.msra.mxu1 %v7981_v28  ;;  %v8048_v27 = vld [vmem:[#allocation7 + $0x60] ss:$20 sps:$4 sm:$0xff]  }
 0x3bb   :  { %3724 = vmatprep.subr.bf16.mxu0 %v7986_v30  ;;  %3847 = vmatprep.subr.bf16.mxu1 %v7989_v32  ;;  %v8049_v28 = vld [vmem:[#allocation7 + $0x2e0] ss:$20 sps:$4 sm:$0xff]   ;;  %v8051_v30 = vld [vmem:[#allocation7 + $0x448] ss:$20 sps:$4 sm:$0xff]  }
 0x3bc   :  { %v8052_v32 = vld [vmem:[#allocation7 + $0x88] ss:$20 sps:$4 sm:$0xff]  }
 0x3be   :  { %3725 = vmatpush1.bf16.msra.mxu0 %v7984_v34  ;;  %3848 = vmatpush1.bf16.msra.mxu1 %v7987_v35  ;;  %v8054_v34 = vld [vmem:[#allocation7 + $0x1f0] ss:$20 sps:$4 sm:$0xff]  }
 0x3bf   :  { %3735 = vmatprep.subr.bf16.mxu0 %v7992_v46  ;;  %3858 = vmatprep.subr.bf16.mxu1 %v7995_v37  ;;  %v8056_v35 = vld [vmem:[#allocation7 + $0xb0] ss:$20 sps:$4 sm:$0xff]   ;;  %v8058_v46 = vld [vmem:[#allocation7 + $0x218] ss:$20 sps:$4 sm:$0xff]  }
 0x3c0   :  { %v8059_v37 = vld [vmem:[#allocation7 + $0x498] ss:$20 sps:$4 sm:$0xff]  }
 0x3c1   :  { %3727 = vmatmul.mubr.bf16.vlgmr.msra.gmra.mrb[12].mxu0 %v8910_v40  ;;  %3850 = vmatmul.mubr.bf16.vlgmr.msra.gmra.mrb[20].mxu1 %v8910_v40 }
 0x3c2   :  { %3736 = vmatpush1.bf16.msra.mxu0 %v7990_v38  ;;  %3859 = vmatpush1.bf16.msra.mxu1 %v7993_v39  ;;  %v8060_v38 = vld [vmem:[#allocation7 + $0xd8] ss:$20 sps:$4 sm:$0xff]  }
 0x3c3   :  { %3737 = vmatprep.subr.bf16.mxu0 %v7998_v52  ;;  %3860 = vmatprep.subr.bf16.mxu1 %v8001_v41  ;;  %v8061_v39 = vld [vmem:[#allocation7 + $0x358] ss:$20 sps:$4 sm:$0xff]   ;;  %v8062_v52 = vld [vmem:[#allocation7 + $0x240] ss:$20 sps:$4 sm:$0xff]  }
 0x3c4   :  { %3767 = vmatprep.mubr.bf16.mxu0 %v8648_v3  ;;  %3890 = vmatprep.mubr.bf16.mxu1 %v8648_v3  ;;  %v8063_v41 = vld [vmem:[#allocation7 + $0x4c0] ss:$20 sps:$4 sm:$0xff]  }
 0x3c6   :  { %3738 = vmatpush1.bf16.msra.mxu0 %v7996_v42  ;;  %3861 = vmatpush1.bf16.msra.mxu1 %v7999_v43  ;;  %v8064_v42 = vld [vmem:[#allocation7 + $0x100] ss:$20 sps:$4 sm:$0xff]  }
 0x3c7   :  { %3739 = vmatprep.subr.bf16.mxu0 %v8004_v45  ;;  %3862 = vmatprep.subr.bf16.mxu1 %v8007_v48  ;;  %v8065_v43 = vld [vmem:[#allocation7 + $0x380] ss:$20 sps:$4 sm:$0xff]   ;;  %v8066_v45 = vld [vmem:[#allocation7 + $0x268] ss:$20 sps:$4 sm:$0xff]  }
 0x3c8   :  { %v8067_v48 = vld [vmem:[#allocation7 + $0x4e8] ss:$20 sps:$4 sm:$0xff]  }
 0x3ca   :  { %3740 = vmatpush1.bf16.msra.mxu0 %v8002_v49  ;;  %3863 = vmatpush1.bf16.msra.mxu1 %v8005_v47  ;;  %v8068_v49 = vld [vmem:[#allocation7 + $0x128] ss:$20 sps:$4 sm:$0xff]  }
 0x3cb   :  { %3741 = vmatprep.subr.bf16.mxu0 %v8010_v51  ;;  %3864 = vmatprep.subr.bf16.mxu1 %v8013_v53  ;;  %v8069_v47 = vld [vmem:[#allocation7 + $0x3a8] ss:$20 sps:$4 sm:$0xff]   ;;  %v8080_v51 = vld [vmem:[#allocation9 + $0x4] ss:$16 sps:$4 sm:$0xff]  }
 0x3cc   :  { %v8070_v53 = vld [vmem:[#allocation7 + $0x510] ss:$20 sps:$4 sm:$0xff]  }
 0x3ce   :  { %3742 = vmatpush1.bf16.msra.mxu0 %v8008_v54  ;;  %3865 = vmatpush1.bf16.msra.mxu1 %v8011_v55  ;;  %v8078_v54 = vld [vmem:[#allocation9] ss:$16 sps:$4 sm:$0xff]   ;;  %v8086_v55 = vld [vmem:[#allocation9 + $0x24] ss:$16 sps:$4 sm:$0xff]  }
 0x3cf   :  { %3743 = vmatprep.subr.bf16.mxu0 %v8016_v56  ;;  %3866 = vmatprep.subr.bf16.mxu1 %v8019_v57  ;;  %v8071_v56 = vld [vmem:[#allocation7 + $0x538] ss:$20 sps:$4 sm:$0xff]   ;;  %v8084_v57 = vld [vmem:[#allocation9 + $0x20] ss:$16 sps:$4 sm:$0xff]  }
 0x3d2   :  { %3744 = vmatpush1.bf16.msra.mxu0 %v8014_v59  ;;  %3867 = vmatpush1.bf16.msra.mxu1 %v8017_v25  ;;  %v8092_v59 = vld [vmem:[#allocation9 + $0x44] ss:$16 sps:$4 sm:$0xff]  }
 0x3d3   :  { %3745 = vmatprep.subr.bf16.mxu0 %v8022_v60  ;;  %3868 = vmatprep.subr.bf16.mxu1 %v8025_v62  ;;  %v8072_v25 = vld [vmem:[#allocation7 + $0x560] ss:$20 sps:$4 sm:$0xff]  }
 0x3d4   :  { %v8098_v60 = vld [vmem:[#allocation9 + $0x64] ss:$16 sps:$4 sm:$0xff]   ;;  %v8096_v62 = vld [vmem:[#allocation9 + $0x60] ss:$16 sps:$4 sm:$0xff]  }
 0x3d6   :  { %3746 = vmatpush1.bf16.msra.mxu0 %v8020_v63  ;;  %3869 = vmatpush1.bf16.msra.mxu1 %v8023_v31  ;;  %v8104_v63 = vld [vmem:[#allocation9 + $0x84] ss:$16 sps:$4 sm:$0xff]  }
 0x3d7   :  { %3747 = vmatprep.subr.bf16.mxu0 %v8028_v1  ;;  %3870 = vmatprep.subr.bf16.mxu1 %v8031_v2  ;;  %v8074_v31 = vld [vmem:[#allocation7 + $0x5b0] ss:$20 sps:$4 sm:$0xff]  }
 0x3d8   :  { %v8102_v1 = vld [vmem:[#allocation9 + $0x80] ss:$16 sps:$4 sm:$0xff]   ;;  %v8110_v2 = vld [vmem:[#allocation9 + $0xa4] ss:$16 sps:$4 sm:$0xff]  }
 0x3da   :  { %3748 = vmatpush1.bf16.msra.mxu0 %v8026_v6  ;;  %3871 = vmatpush1.bf16.msra.mxu1 %v8029_v7  ;;  %v8075_v6 = vld [vmem:[#allocation7 + $0x5d8] ss:$20 sps:$4 sm:$0xff]   ;;  %v8108_v7 = vld [vmem:[#allocation9 + $0xa0] ss:$16 sps:$4 sm:$0xff]  }
 0x3db   :  { %3749 = vmatprep.subr.bf16.mxu0 %v8034_v9  ;;  %3872 = vmatprep.subr.bf16.mxu1 %v8037_v10  ;;  %v8116_v9 = vld [vmem:[#allocation9 + $0xc4] ss:$16 sps:$4 sm:$0xff]  }
 0x3dc   :  { %v8076_v10 = vld [vmem:[#allocation7 + $0x600] ss:$20 sps:$4 sm:$0xff]  }
 0x3de   :  { %3750 = vmatpush1.bf16.msra.mxu0 %v8032_v11  ;;  %3873 = vmatpush1.bf16.msra.mxu1 %v8035_v12  ;;  %v8114_v11 = vld [vmem:[#allocation9 + $0xc0] ss:$16 sps:$4 sm:$0xff]   ;;  %v8122_v12 = vld [vmem:[#allocation9 + $0xe4] ss:$16 sps:$4 sm:$0xff]  }
 0x3df   :  { %7166 = vmatprep.subr.bf16.mxu0 %v8038_v13  ;;  %7188 = vmatprep.subr.bf16.mxu1 %v8039_v50  ;;  %v8083_v13 = vld [vmem:[#allocation9 + $0xc] ss:$16 sps:$4 sm:$0xff]   ;;  %v8120_v50 = vld [vmem:[#allocation9 + $0xe0] ss:$16 sps:$4 sm:$0xff]  }
 0x3e1   :  { %3768 = vmatmul.mubr.bf16.vlgmr.msra.gmra.mrb[12].mxu0 %v8917_v15  ;;  %3891 = vmatmul.mubr.bf16.vlgmr.msra.gmra.mrb[20].mxu1 %v8917_v15 }
 0x3e2   :  { %7167 = vmatpush3.bf16.msra.mxu0 %v8040_v14  ;;  %3931 = vmatprep.mubr.bf16.mxu0 %v8889_v0  ;;  %v8053_v0 = vld [vmem:[#allocation7 + $0x308] ss:$20 sps:$4 sm:$0xff]   ;;  %v8128_v14 = vld [vmem:[#allocation9 + $0x104] ss:$16 sps:$4 sm:$0xff]  }
 0x3e3   :  { %7189 = vmatpush3.bf16.msra.mxu1 %v8041_v16  ;;  %3971 = vmatprep.mubr.bf16.mxu1 %v8895_v8  ;;  %v8055_v8 = vld [vmem:[#allocation7 + $0x470] ss:$20 sps:$4 sm:$0xff]   ;;  %v8081_v16 = vld [vmem:[#allocation9 + $0x8] ss:$16 sps:$4 sm:$0xff]  }
 0x3e4   :  { %7168 = vmatprep.subr.bf16.mxu0 %v8042_v17  ;;  %7190 = vmatprep.subr.bf16.mxu1 %v8043_v18  ;;  %v8089_v17 = vld [vmem:[#allocation9 + $0x2c] ss:$16 sps:$4 sm:$0xff]   ;;  %v8126_v18 = vld [vmem:[#allocation9 + $0x100] ss:$16 sps:$4 sm:$0xff]  }
 0x3e6   :  { %7169 = vmatpush3.bf16.msra.mxu0 %v8044_v58  ;;  %v8134_v58 = vld [vmem:[#allocation9 + $0x124] ss:$16 sps:$4 sm:$0xff]  }
 0x3e7   :  { %7191 = vmatpush3.bf16.msra.mxu1 %v8045_v19  ;;  %7170 = vmatprep.subr.bf16.mxu0 %v8046_v21  ;;  %v8087_v19 = vld [vmem:[#allocation9 + $0x28] ss:$16 sps:$4 sm:$0xff]   ;;  %v8095_v21 = vld [vmem:[#allocation9 + $0x4c] ss:$16 sps:$4 sm:$0xff]  }
 0x3e8   :  { %7192 = vmatprep.subr.bf16.mxu1 %v8047_v24  ;;  %v8132_v24 = vld [vmem:[#allocation9 + $0x120] ss:$16 sps:$4 sm:$0xff]  }
 0x3ea   :  { %7171 = vmatpush3.bf16.msra.mxu0 %v8048_v27  ;;  %v8140_v27 = vld [vmem:[#allocation9 + $0x144] ss:$16 sps:$4 sm:$0xff]  }
 0x3eb   :  { %7193 = vmatpush3.bf16.msra.mxu1 %v8049_v28  ;;  %7172 = vmatprep.subr.bf16.mxu0 %v8050_v29  ;;  %v8093_v28 = vld [vmem:[#allocation9 + $0x48] ss:$16 sps:$4 sm:$0xff]   ;;  %v8101_v29 = vld [vmem:[#allocation9 + $0x6c] ss:$16 sps:$4 sm:$0xff]  }
 0x3ec   :  { %7194 = vmatprep.subr.bf16.mxu1 %v8051_v30  ;;  %v8138_v30 = vld [vmem:[#allocation9 + $0x140] ss:$16 sps:$4 sm:$0xff]  }
 0x3ee   :  { %7173 = vmatpush3.bf16.msra.mxu0 %v8052_v32  ;;  %v8146_v32 = vld [vmem:[#allocation9 + $0x164] ss:$16 sps:$4 sm:$0xff]  }
 0x3ef   :  { %7195 = vmatpush3.bf16.msra.mxu1 %v8053_v0  ;;  %7174 = vmatprep.subr.bf16.mxu0 %v8054_v34  ;;  %v8107_v0 = vld [vmem:[#allocation9 + $0x8c] ss:$16 sps:$4 sm:$0xff]   ;;  %v8144_v34 = vld [vmem:[#allocation9 + $0x160] ss:$16 sps:$4 sm:$0xff]  }
 0x3f0   :  { %7196 = vmatprep.subr.bf16.mxu1 %v8055_v8  ;;  %v8152_v8 = vld [vmem:[#allocation9 + $0x184] ss:$16 sps:$4 sm:$0xff]  }
 0x3f2   :  { %7175 = vmatpush3.bf16.msra.mxu0 %v8056_v35  ;;  %v8105_v35 = vld [vmem:[#allocation9 + $0x88] ss:$16 sps:$4 sm:$0xff]  }
 0x3f3   :  { %7197 = vmatpush3.bf16.msra.mxu1 %v8057_v36  ;;  %7176 = vmatprep.subr.bf16.mxu0 %v8058_v46  ;;  %v8113_v36 = vld [vmem:[#allocation9 + $0xac] ss:$16 sps:$4 sm:$0xff]   ;;  %v8150_v46 = vld [vmem:[#allocation9 + $0x180] ss:$16 sps:$4 sm:$0xff]  }
 0x3f4   :  { %7198 = vmatprep.subr.bf16.mxu1 %v8059_v37  ;;  %v8158_v37 = vld [vmem:[#allocation9 + $0x1a4] ss:$16 sps:$4 sm:$0xff]  }
 0x3f6   :  { %7177 = vmatpush3.bf16.msra.mxu0 %v8060_v38  ;;  %v8111_v38 = vld [vmem:[#allocation9 + $0xa8] ss:$16 sps:$4 sm:$0xff]  }
 0x3f7   :  { %7199 = vmatpush3.bf16.msra.mxu1 %v8061_v39  ;;  %7178 = vmatprep.subr.bf16.mxu0 %v8062_v52  ;;  %v8119_v39 = vld [vmem:[#allocation9 + $0xcc] ss:$16 sps:$4 sm:$0xff]   ;;  %v8156_v52 = vld [vmem:[#allocation9 + $0x1a0] ss:$16 sps:$4 sm:$0xff]  }
 0x3f8   :  { %7200 = vmatprep.subr.bf16.mxu1 %v8063_v41  ;;  %v8164_v41 = vld [vmem:[#allocation9 + $0x1c4] ss:$16 sps:$4 sm:$0xff]  }
 0x3fa   :  { %7179 = vmatpush3.bf16.msra.mxu0 %v8064_v42  ;;  %v8117_v42 = vld [vmem:[#allocation9 + $0xc8] ss:$16 sps:$4 sm:$0xff]  }
 0x3fb   :  { %7201 = vmatpush3.bf16.msra.mxu1 %v8065_v43  ;;  %7180 = vmatprep.subr.bf16.mxu0 %v8066_v45  ;;  %v8125_v43 = vld [vmem:[#allocation9 + $0xec] ss:$16 sps:$4 sm:$0xff]   ;;  %v8162_v45 = vld [vmem:[#allocation9 + $0x1c0] ss:$16 sps:$4 sm:$0xff]  }
 0x3fc   :  { %7202 = vmatprep.subr.bf16.mxu1 %v8067_v48  ;;  %v8170_v48 = vld [vmem:[#allocation9 + $0x1e4] ss:$16 sps:$4 sm:$0xff]  }
 0x3fe   :  { %7181 = vmatpush3.bf16.msra.mxu0 %v8068_v49  ;;  %v8123_v49 = vld [vmem:[#allocation9 + $0xe8] ss:$16 sps:$4 sm:$0xff]  }
 0x3ff   :  { %7203 = vmatpush3.bf16.msra.mxu1 %v8069_v47  ;;  %7300 = vmatprep.subr.bf16.mxu0 %v8649_v20  ;;  %v8131_v47 = vld [vmem:[#allocation9 + $0x10c] ss:$16 sps:$4 sm:$0xff]  }
 0x400   :  { %5012 = vmatprep.subr.bf16.mxu1 %v8080_v51  ;;  %v8168_v51 = vld [vmem:[#allocation9 + $0x1e0] ss:$16 sps:$4 sm:$0xff]  }
 0x401   :  { %3932 = vmatmul.mubr.bf16.vlgmr.msra.gmra.mrb[16].mxu0 %v8891_v5  ;;  %v8090_v5 = vld [vmem:[#allocation9 + $0x40] ss:$16 sps:$4 sm:$0xff]  }
 0x402   :  { %3972 = vmatmul.mubr.bf16.vlgmr.msra.gmra.mrb[24].mxu1 %v8910_v40  ;;  %7301 = vmatpush3.bf16.msra.mxu0 %v8070_v53  ;;  %v8073_v40 = vld [vmem:[#allocation7 + $0x588] ss:$20 sps:$4 sm:$0xff]   ;;  %v8176_v53 = vld [vmem:[#allocation9 + $0x204] ss:$16 sps:$4 sm:$0xff]  }
 0x403   :  { %7302 = vmatprep.subr.bf16.mxu0 %v8649_v20  ;;  %7316 = vmatprep.mubr.msk.bf16.mxu0 %vm8650_vm2, %v8649_v20 }
 0x404   :  { %5013 = vmatpush1.bf16.msra.mxu1 %v8078_v54  ;;  %v8129_v54 = vld [vmem:[#allocation9 + $0x108] ss:$16 sps:$4 sm:$0xff]  }
 0x405   :  { %5014 = vmatprep.subr.bf16.mxu1 %v8086_v55  ;;  %v8137_v55 = vld [vmem:[#allocation9 + $0x12c] ss:$16 sps:$4 sm:$0xff]  }
 0x406   :  { %7303 = vmatpush3.bf16.msra.mxu0 %v8071_v56  ;;  %v8135_v56 = vld [vmem:[#allocation9 + $0x128] ss:$16 sps:$4 sm:$0xff]  }
 0x407   :  { %7304 = vmatprep.subr.bf16.mxu0 %v8649_v20 }
 0x408   :  { %5015 = vmatpush1.bf16.msra.mxu1 %v8084_v57  ;;  %v8143_v57 = vld [vmem:[#allocation9 + $0x14c] ss:$16 sps:$4 sm:$0xff]  }
 0x409   :  { %5016 = vmatprep.subr.bf16.mxu1 %v8092_v59  ;;  %v8141_v59 = vld [vmem:[#allocation9 + $0x148] ss:$16 sps:$4 sm:$0xff]  }
 0x40a   :  { %7305 = vmatpush3.bf16.msra.mxu0 %v8072_v25  ;;  %v8149_v25 = vld [vmem:[#allocation9 + $0x16c] ss:$16 sps:$4 sm:$0xff]  }
 0x40b   :  { %7306 = vmatprep.subr.bf16.mxu0 %v8649_v20 }
 0x40c   :  { %5017 = vmatpush1.bf16.msra.mxu1 %v8090_v5  ;;  %v8147_v5 = vld [vmem:[#allocation9 + $0x168] ss:$16 sps:$4 sm:$0xff]  }
 0x40d   :  { %5018 = vmatprep.subr.bf16.mxu1 %v8098_v60  ;;  %v8155_v60 = vld [vmem:[#allocation9 + $0x18c] ss:$16 sps:$4 sm:$0xff]  }
 0x40e   :  { %7307 = vmatpush3.bf16.msra.mxu0 %v8073_v40  ;;  %v8153_v40 = vld [vmem:[#allocation9 + $0x188] ss:$16 sps:$4 sm:$0xff]  }
 0x40f   :  { %7308 = vmatprep.subr.bf16.mxu0 %v8649_v20 }
 0x410   :  { %5019 = vmatpush1.bf16.msra.mxu1 %v8096_v62  ;;  %v8161_v62 = vld [vmem:[#allocation9 + $0x1ac] ss:$16 sps:$4 sm:$0xff]  }
 0x411   :  { %5020 = vmatprep.subr.bf16.mxu1 %v8104_v63  ;;  %v8159_v63 = vld [vmem:[#allocation9 + $0x1a8] ss:$16 sps:$4 sm:$0xff]  }
 0x412   :  { %7309 = vmatpush3.bf16.msra.mxu0 %v8074_v31  ;;  %v8167_v31 = vld [vmem:[#allocation9 + $0x1cc] ss:$16 sps:$4 sm:$0xff]  }
 0x413   :  { %7310 = vmatprep.subr.bf16.mxu0 %v8649_v20 }
 0x414   :  { %5021 = vmatpush1.bf16.msra.mxu1 %v8102_v1  ;;  %v8165_v1 = vld [vmem:[#allocation9 + $0x1c8] ss:$16 sps:$4 sm:$0xff]  }
 0x415   :  { %5022 = vmatprep.subr.bf16.mxu1 %v8110_v2  ;;  %v8173_v2 = vld [vmem:[#allocation9 + $0x1ec] ss:$16 sps:$4 sm:$0xff]  }
 0x416   :  { %7311 = vmatpush3.bf16.msra.mxu0 %v8075_v6  ;;  %v8171_v6 = vld [vmem:[#allocation9 + $0x1e8] ss:$16 sps:$4 sm:$0xff]  }
 0x417   :  { %7312 = vmatprep.subr.bf16.mxu0 %v8649_v20 }
 0x418   :  { %5023 = vmatpush1.bf16.msra.mxu1 %v8108_v7  ;;  %v8179_v7 = vld [vmem:[#allocation9 + $0x20c] ss:$16 sps:$4 sm:$0xff]  }
 0x419   :  { %5024 = vmatprep.subr.bf16.mxu1 %v8116_v9  ;;  %v6636_v9 = vld [vmem:[%s9009_s8 + $0x3] ss:$8 sm:$0xf] }
 0x41a   :  { %7313 = vmatpush3.bf16.msra.mxu0 %v8076_v10  ;;  %v6637_v10 = vld [vmem:[%s9009_s8 + $0x3] ss:$8 sm:$0x10] }
 0x41b   :  { %7314 = vmatprep.subr.bf16.mxu0 %v8649_v20 }
 0x41c   :  { %5025 = vmatpush1.bf16.msra.mxu1 %v8114_v11  ;;  %v8942_v11 = vor.u32 %v6637_v10, %v6636_v9 }
 0x41d   :  { %5026 = vmatprep.subr.bf16.mxu1 %v8122_v12 }
 0x41e   :  { %7315 = vmatpush3.bf16.msra.mxu0 %v8077_v44  ;;  %v2591_v12 = vrot.slane %v8942_v11, %v8813_v22  ;;  %v2595_v44 = vrot.slane %v8942_v11, %v8816_v23 }
 0x41f   :  { %5135 = vmatprep.subr.bf16.mxu0 %v8083_v13  ;;  %v2603_v13 = vrot.slane %v8942_v11, %v8840_v26 }
 0x420   :  { %5027 = vmatpush1.bf16.msra.mxu1 %v8120_v50 }
 0x421   :  { %7317 = vmatmul.mubr.bf16.vlgmr.msra.gmra.mrb[20].mxu0 %v8917_v15  ;;  %5028 = vmatprep.subr.bf16.mxu1 %v8128_v14  ;;  %v8099_v15 = vld [vmem:[#allocation9 + $0x68] ss:$16 sps:$4 sm:$0xff]  }
 0x422   :  { %5136 = vmatpush1.bf16.msra.mxu0 %v8081_v16 }
 0x423   :  { %5137 = vmatprep.subr.bf16.mxu0 %v8089_v17 }
 0x424   :  { %5029 = vmatpush1.bf16.msra.mxu1 %v8126_v18 }
 0x425   :  { %5030 = vmatprep.subr.bf16.mxu1 %v8134_v58 }
 0x426   :  { %5138 = vmatpush1.bf16.msra.mxu0 %v8087_v19 }
 0x427   :  { %5139 = vmatprep.subr.bf16.mxu0 %v8095_v21 }
 0x428   :  { %5031 = vmatpush1.bf16.msra.mxu1 %v8132_v24 }
 0x429   :  { %5032 = vmatprep.subr.bf16.mxu1 %v8140_v27 }
 0x42a   :  { %5140 = vmatpush1.bf16.msra.mxu0 %v8093_v28 }
 0x42b   :  { %5141 = vmatprep.subr.bf16.mxu0 %v8101_v29 }
 0x42c   :  { %5033 = vmatpush1.bf16.msra.mxu1 %v8138_v30 }
 0x42d   :  { %5034 = vmatprep.subr.bf16.mxu1 %v8146_v32 }
 0x42e   :  { %5142 = vmatpush1.bf16.msra.mxu0 %v8099_v15 }
 0x42f   :  { %5143 = vmatprep.subr.bf16.mxu0 %v8107_v0  ;;  %v8174_v0 = vld [vmem:[#allocation9 + $0x200] ss:$16 sps:$4 sm:$0xff]  }
 0x430   :  { %5035 = vmatpush1.bf16.msra.mxu1 %v8144_v34  ;;  %v8177_v34 = vld [vmem:[#allocation9 + $0x208] ss:$16 sps:$4 sm:$0xff]  }
 0x431   :  { %5036 = vmatprep.subr.bf16.mxu1 %v8152_v8 }
 0x432   :  { %5144 = vmatpush1.bf16.msra.mxu0 %v8105_v35  ;;  %v8182_v35 = vld [vmem:[#allocation9 + $0x224] ss:$16 sps:$4 sm:$0xff]  }
 0x433   :  { %5145 = vmatprep.subr.bf16.mxu0 %v8113_v36  ;;  %v8185_v36 = vld [vmem:[#allocation9 + $0x22c] ss:$16 sps:$4 sm:$0xff]  }
 0x434   :  { %5037 = vmatpush1.bf16.msra.mxu1 %v8150_v46 }
 0x435   :  { %5038 = vmatprep.subr.bf16.mxu1 %v8158_v37  ;;  %v8180_v37 = vld [vmem:[#allocation9 + $0x220] ss:$16 sps:$4 sm:$0xff]  }
 0x436   :  { %5146 = vmatpush1.bf16.msra.mxu0 %v8111_v38  ;;  %v8183_v38 = vld [vmem:[#allocation9 + $0x228] ss:$16 sps:$4 sm:$0xff]  }
 0x437   :  { %5147 = vmatprep.subr.bf16.mxu0 %v8119_v39  ;;  %v8188_v39 = vld [vmem:[#allocation9 + $0x244] ss:$16 sps:$4 sm:$0xff]  }
 0x438   :  { %5039 = vmatpush1.bf16.msra.mxu1 %v8156_v52  ;;  %v8191_v52 = vld [vmem:[#allocation9 + $0x24c] ss:$16 sps:$4 sm:$0xff]  }
 0x439   :  { %5040 = vmatprep.subr.bf16.mxu1 %v8164_v41  ;;  %v8186_v41 = vld [vmem:[#allocation9 + $0x240] ss:$16 sps:$4 sm:$0xff]  }
 0x43a   :  { %5148 = vmatpush1.bf16.msra.mxu0 %v8117_v42  ;;  %v8189_v42 = vld [vmem:[#allocation9 + $0x248] ss:$16 sps:$4 sm:$0xff]  }
 0x43b   :  { %5149 = vmatprep.subr.bf16.mxu0 %v8125_v43  ;;  %v8194_v43 = vld [vmem:[#allocation9 + $0x264] ss:$16 sps:$4 sm:$0xff]  }
 0x43c   :  { %5041 = vmatpush1.bf16.msra.mxu1 %v8162_v45  ;;  %v8197_v45 = vld [vmem:[#allocation9 + $0x26c] ss:$16 sps:$4 sm:$0xff]  }
 0x43d   :  { %5042 = vmatprep.subr.bf16.mxu1 %v8170_v48  ;;  %v8192_v48 = vld [vmem:[#allocation9 + $0x260] ss:$16 sps:$4 sm:$0xff]  }
 0x43e   :  { %5150 = vmatpush1.bf16.msra.mxu0 %v8123_v49  ;;  %v8195_v49 = vld [vmem:[#allocation9 + $0x268] ss:$16 sps:$4 sm:$0xff]  }
 0x43f   :  { %5151 = vmatprep.subr.bf16.mxu0 %v8131_v47  ;;  %v8200_v47 = vld [vmem:[#allocation9 + $0x284] ss:$16 sps:$4 sm:$0xff]  }
 0x440   :  { %5043 = vmatpush1.bf16.msra.mxu1 %v8168_v51  ;;  %v8203_v51 = vld [vmem:[#allocation9 + $0x28c] ss:$16 sps:$4 sm:$0xff]  }
 0x441   :  { %5053 = vmatprep.subr.bf16.mxu1 %v8176_v53  ;;  %v8198_v53 = vld [vmem:[#allocation9 + $0x280] ss:$16 sps:$4 sm:$0xff]  }
 0x442   :  { %5152 = vmatpush1.bf16.msra.mxu0 %v8129_v54  ;;  %v8201_v54 = vld [vmem:[#allocation9 + $0x288] ss:$16 sps:$4 sm:$0xff]  }
 0x443   :  { %5153 = vmatprep.subr.bf16.mxu0 %v8137_v55  ;;  %v8206_v55 = vld [vmem:[#allocation9 + $0x2a4] ss:$16 sps:$4 sm:$0xff]  }
 0x446   :  { %5154 = vmatpush1.bf16.msra.mxu0 %v8135_v56  ;;  %v8209_v56 = vld [vmem:[#allocation9 + $0x2ac] ss:$16 sps:$4 sm:$0xff]  }
 0x447   :  { %5155 = vmatprep.subr.bf16.mxu0 %v8143_v57  ;;  %v8204_v57 = vld [vmem:[#allocation9 + $0x2a0] ss:$16 sps:$4 sm:$0xff]  }
 0x44a   :  { %5156 = vmatpush1.bf16.msra.mxu0 %v8141_v59  ;;  %v8207_v59 = vld [vmem:[#allocation9 + $0x2a8] ss:$16 sps:$4 sm:$0xff]  }
 0x44b   :  { %5157 = vmatprep.subr.bf16.mxu0 %v8149_v25  ;;  %v8212_v25 = vld [vmem:[#allocation9 + $0x2c4] ss:$16 sps:$4 sm:$0xff]  }
 0x44e   :  { %5158 = vmatpush1.bf16.msra.mxu0 %v8147_v5  ;;  %v8215_v5 = vld [vmem:[#allocation9 + $0x2cc] ss:$16 sps:$4 sm:$0xff]  }
 0x44f   :  { %5159 = vmatprep.subr.bf16.mxu0 %v8155_v60  ;;  %v8210_v60 = vld [vmem:[#allocation9 + $0x2c0] ss:$16 sps:$4 sm:$0xff]  }
 0x452   :  { %5160 = vmatpush1.bf16.msra.mxu0 %v8153_v40  ;;  %v8213_v40 = vld [vmem:[#allocation9 + $0x2c8] ss:$16 sps:$4 sm:$0xff]  }
 0x453   :  { %5161 = vmatprep.subr.bf16.mxu0 %v8161_v62  ;;  %v8218_v62 = vld [vmem:[#allocation9 + $0x2e4] ss:$16 sps:$4 sm:$0xff]  }
 0x456   :  { %5162 = vmatpush1.bf16.msra.mxu0 %v8159_v63  ;;  %v8221_v63 = vld [vmem:[#allocation9 + $0x2ec] ss:$16 sps:$4 sm:$0xff]  }
 0x457   :  { %5163 = vmatprep.subr.bf16.mxu0 %v8167_v31 }
 0x45a   :  { %5164 = vmatpush1.bf16.msra.mxu0 %v8165_v1  ;;  %v2607_v1 = vrot.slane %v8942_v11, %v1250_v33  ;;  %v8222_v33 = vld [vmem:[#allocation9 + $0x300] ss:$16 sps:$4 sm:$0xff]  }
 0x45b   :  { %5165 = vmatprep.subr.bf16.mxu0 %v8173_v2 }
 0x45e   :  { %5166 = vmatpush1.bf16.msra.mxu0 %v8171_v6 }
 0x45f   :  { %5176 = vmatprep.subr.bf16.mxu0 %v8179_v7 }
 0x4b4   :  { %v3769_v50 = vpop.f32.mrb[12].mxu0  ;;  %v8950_v14 = vpop.f32.mrb[20].mxu1 }
 0x4b5   :  { %v7348_v16 = vadd.f32 %v3769_v50, %v2591_v12  ;;  %v3771_v17 = vpop.f32.mrb[13].mxu0  ;;  %v3894_v18 = vpop.f32.mrb[21].mxu1  ;;  %v8216_v12 = vld [vmem:[#allocation9 + $0x2e0] ss:$16 sps:$4 sm:$0xff]  }
 0x4b6   :  { %v7349_v58 = vadd.f32 %v3771_v17, %v2595_v44  ;;  %v7351_v19 = vadd.f32 %v3894_v18, %v2603_v13  ;;  %v3773_v21 = vpop.f32.mrb[14].mxu0  ;;  %v3896_v24 = vpop.f32.mrb[22].mxu1  ;;  %v8219_v44 = vld [vmem:[#allocation9 + $0x2e8] ss:$16 sps:$4 sm:$0xff]   ;;  %v8224_v17 = vld [vmem:[#allocation9 + $0x304] ss:$16 sps:$4 sm:$0xff]  }
 0x4b7   :  { %v4019_v27 = vmax.f32 %v7348_v16, 0.0  ;;  %v3774_v28 = vpop.f32.mrb[15].mxu0  ;;  %v3897_v29 = vpop.f32.mrb[23].mxu1  ;;  %v8227_v18 = vld [vmem:[#allocation9 + $0x30c] ss:$16 sps:$4 sm:$0xff]  }
 0x4b8   :  { %v4020_v30 = vmax.f32 %v7349_v58, 0.0  ;;  %v4022_v32 = vmax.f32 %v7351_v19, 0.0  ;;  %v8225_v19 = vld [vmem:[#allocation9 + $0x308] ss:$16 sps:$4 sm:$0xff]   ;;  %v8230_v24 = vld [vmem:[#allocation9 + $0x324] ss:$16 sps:$4 sm:$0xff]  }
 0x4b9   :  { %v4186_v8 = vpack.c.bf16 %v4019_v27, %v4019_v27  ;;  %v8233_v27 = vld [vmem:[#allocation9 + $0x32c] ss:$16 sps:$4 sm:$0xff]   ;;  %v8228_v28 = vld [vmem:[#allocation9 + $0x320] ss:$16 sps:$4 sm:$0xff]   ;;  %v8231_v29 = vld [vmem:[#allocation9 + $0x328] ss:$16 sps:$4 sm:$0xff]  }
 0x4ba   :  { %v4187_v15 = vpack.c.bf16 %v4020_v30, %v4020_v30  ;;  %v4189_v46 = vpack.c.bf16 %v4022_v32, %v4022_v32  ;;  %v8236_v30 = vld [vmem:[#allocation9 + $0x344] ss:$16 sps:$4 sm:$0xff]   ;;  %v8239_v32 = vld [vmem:[#allocation9 + $0x34c] ss:$16 sps:$4 sm:$0xff]  }
 0x4bc   :  { %5044 = vmatprep.mubr.bf16.mxu1 %v4187_v15  ;;  %5167 = vmatprep.mubr.bf16.mxu0 %v4187_v15  ;;  %v8234_v15 = vld [vmem:[#allocation9 + $0x340] ss:$16 sps:$4 sm:$0xff]  }
 0x4bd   :  { %5045 = vmatmul.mubr.bf16.vlgmr.msra.gmra.mrb[28].mxu1 %v4186_v8  ;;  %5168 = vmatmul.mubr.bf16.vlgmr.msra.gmra.mrb[24].mxu0 %v4186_v8  ;;  %v8245_v8 = vld [vmem:[#allocation9 + $0x36c] ss:$16 sps:$4 sm:$0xff]  }
 0x4be   :  { %5054 = vmatpush1.bf16.msra.mxu1 %v8174_v0  ;;  %5177 = vmatpush1.bf16.msra.mxu0 %v8177_v34  ;;  %v8237_v0 = vld [vmem:[#allocation9 + $0x348] ss:$16 sps:$4 sm:$0xff]   ;;  %v8242_v34 = vld [vmem:[#allocation9 + $0x364] ss:$16 sps:$4 sm:$0xff]  }
 0x4bf   :  { %5085 = vmatprep.mubr.bf16.mxu1 %v4189_v46  ;;  %5208 = vmatprep.mubr.bf16.mxu0 %v4189_v46  ;;  %v8248_v46 = vld [vmem:[#allocation9 + $0x384] ss:$16 sps:$4 sm:$0xff]  }
 0x4c0   :  { %5055 = vmatprep.subr.bf16.mxu1 %v8182_v35  ;;  %5178 = vmatprep.subr.bf16.mxu0 %v8185_v36  ;;  %v8240_v35 = vld [vmem:[#allocation9 + $0x360] ss:$16 sps:$4 sm:$0xff]   ;;  %v8243_v36 = vld [vmem:[#allocation9 + $0x368] ss:$16 sps:$4 sm:$0xff]  }
 0x4c2   :  { %5056 = vmatpush1.bf16.msra.mxu1 %v8180_v37  ;;  %5179 = vmatpush1.bf16.msra.mxu0 %v8183_v38  ;;  %v8251_v37 = vld [vmem:[#allocation9 + $0x38c] ss:$16 sps:$4 sm:$0xff]   ;;  %v8246_v38 = vld [vmem:[#allocation9 + $0x380] ss:$16 sps:$4 sm:$0xff]  }
 0x4c3   :  { %5057 = vmatprep.subr.bf16.mxu1 %v8188_v39  ;;  %5180 = vmatprep.subr.bf16.mxu0 %v8191_v52  ;;  %v8249_v39 = vld [vmem:[#allocation9 + $0x388] ss:$16 sps:$4 sm:$0xff]   ;;  %v8254_v52 = vld [vmem:[#allocation9 + $0x3a4] ss:$16 sps:$4 sm:$0xff]  }
 0x4c6   :  { %5058 = vmatpush1.bf16.msra.mxu1 %v8186_v41  ;;  %5181 = vmatpush1.bf16.msra.mxu0 %v8189_v42  ;;  %v8257_v41 = vld [vmem:[#allocation9 + $0x3ac] ss:$16 sps:$4 sm:$0xff]   ;;  %v8252_v42 = vld [vmem:[#allocation9 + $0x3a0] ss:$16 sps:$4 sm:$0xff]  }
 0x4c7   :  { %5059 = vmatprep.subr.bf16.mxu1 %v8194_v43  ;;  %5182 = vmatprep.subr.bf16.mxu0 %v8197_v45  ;;  %v8255_v43 = vld [vmem:[#allocation9 + $0x3a8] ss:$16 sps:$4 sm:$0xff]   ;;  %v2599_v45 = vrot.slane %v8942_v11, %v8830_v61 }
 0x4ca   :  { %5060 = vmatpush1.bf16.msra.mxu1 %v8192_v48  ;;  %5183 = vmatpush1.bf16.msra.mxu0 %v8195_v49  ;;  %v8260_v48 = vld [vmem:[#allocation9 + $0x3c4] ss:$16 sps:$4 sm:$0xff]   ;;  %v8263_v49 = vld [vmem:[#allocation9 + $0x3cc] ss:$16 sps:$4 sm:$0xff]  }
 0x4cb   :  { %5061 = vmatprep.subr.bf16.mxu1 %v8200_v47  ;;  %5184 = vmatprep.subr.bf16.mxu0 %v8203_v51  ;;  %v8258_v47 = vld [vmem:[#allocation9 + $0x3c0] ss:$16 sps:$4 sm:$0xff]   ;;  %v8261_v51 = vld [vmem:[#allocation9 + $0x3c8] ss:$16 sps:$4 sm:$0xff]  }
 0x4ce   :  { %5062 = vmatpush1.bf16.msra.mxu1 %v8198_v53  ;;  %5185 = vmatpush1.bf16.msra.mxu0 %v8201_v54  ;;  %v7350_v53 = vadd.f32 %v8950_v14, %v2599_v45  ;;  %v8266_v54 = vld [vmem:[#allocation9 + $0x3e4] ss:$16 sps:$4 sm:$0xff]   ;;  %v8270_v14 = vld [vmem:[#allocation9 + $0x400] ss:$16 sps:$4 sm:$0xff]  }
 0x4cf   :  { %5063 = vmatprep.subr.bf16.mxu1 %v8206_v55  ;;  %5186 = vmatprep.subr.bf16.mxu0 %v8209_v56  ;;  %v8269_v55 = vld [vmem:[#allocation9 + $0x3ec] ss:$16 sps:$4 sm:$0xff]   ;;  %v8326_v45 = vld [vmem:[#allocation10 + $0x34] ss:$12 sps:$4 sm:$0xff]  }
 0x4d2   :  { %5064 = vmatpush1.bf16.msra.mxu1 %v8204_v57  ;;  %5187 = vmatpush1.bf16.msra.mxu0 %v8207_v59 }
 0x4d3   :  { %5065 = vmatprep.subr.bf16.mxu1 %v8212_v25  ;;  %5188 = vmatprep.subr.bf16.mxu0 %v8215_v5  ;;  %v8264_v25 = vld [vmem:[#allocation9 + $0x3e0] ss:$16 sps:$4 sm:$0xff]   ;;  %v8267_v5 = vld [vmem:[#allocation9 + $0x3e8] ss:$16 sps:$4 sm:$0xff]  }
 0x4d4   :  { %v7182_v31 = vpop.f32.mrb[16].mxu0 }
 0x4d5   :  { %v7204_v2 = vpop.f32.mrb[24].mxu1  ;;  %v7183_v6 = vpop.f32.mrb[17].mxu0 }
 0x4d6   :  { %v7184_v7 = vadd.f32 %v7183_v6, %v7182_v31  ;;  %v7205_v9 = vpop.f32.mrb[25].mxu1  ;;  %5066 = vmatpush1.bf16.msra.mxu1 %v8210_v60  ;;  %5189 = vmatpush1.bf16.msra.mxu0 %v8213_v40  ;;  %v7185_v10 = vpop.f32.mrb[18].mxu0  ;;  %v4021_v60 = vmax.f32 %v7350_v53, 0.0  ;;  %v8273_v31 = vld [vmem:[#allocation9 + $0x408] ss:$16 sps:$4 sm:$0xff]  }
 0x4d7   :  { %v7206_v13 = vadd.f32 %v7205_v9, %v7204_v2  ;;  %v7207_v50 = vpop.f32.mrb[26].mxu1  ;;  %v7186_v16 = vpop.f32.mrb[19].mxu0  ;;  %5067 = vmatprep.subr.bf16.mxu1 %v8218_v62  ;;  %5190 = vmatprep.subr.bf16.mxu0 %v8221_v63  ;;  %v8272_v62 = vld [vmem:[#allocation9 + $0x404] ss:$16 sps:$4 sm:$0xff]   ;;  %v8275_v63 = vld [vmem:[#allocation9 + $0x40c] ss:$16 sps:$4 sm:$0xff]  }
 0x4d8   :  { %v3934_v58 = vadd.f32 %v7184_v7, %v2607_v1  ;;  %v7208_v4 = vpop.f32.mrb[27].mxu1  ;;  %v4188_v1 = vpack.c.bf16 %v4021_v60, %v4021_v60  ;;  %v8278_v2 = vld [vmem:[#allocation9 + $0x424] ss:$16 sps:$4 sm:$0xff]   ;;  %v8281_v6 = vld [vmem:[#allocation9 + $0x42c] ss:$16 sps:$4 sm:$0xff]  }
 0x4d9   :  { %v8276_v7 = vld [vmem:[#allocation9 + $0x420] ss:$16 sps:$4 sm:$0xff]   ;;  %v8279_v9 = vld [vmem:[#allocation9 + $0x428] ss:$16 sps:$4 sm:$0xff]   ;;  %v8284_v10 = vld [vmem:[#allocation9 + $0x444] ss:$16 sps:$4 sm:$0xff]  }
 0x4da   :  { %5068 = vmatpush1.bf16.msra.mxu1 %v8216_v12  ;;  %5191 = vmatpush1.bf16.msra.mxu0 %v8219_v44  ;;  %v3974_v21 = vadd.f32 %v7206_v13, %v3934_v58  ;;  %v8287_v12 = vld [vmem:[#allocation9 + $0x44c] ss:$16 sps:$4 sm:$0xff]   ;;  %v8282_v44 = vld [vmem:[#allocation9 + $0x440] ss:$16 sps:$4 sm:$0xff]   ;;  %v8285_v13 = vld [vmem:[#allocation9 + $0x448] ss:$16 sps:$4 sm:$0xff]  }
 0x4db   :  { %5069 = vmatprep.subr.bf16.mxu1 %v8224_v17  ;;  %5192 = vmatprep.subr.bf16.mxu0 %v8227_v18  ;;  %v8290_v50 = vld [vmem:[#allocation9 + $0x464] ss:$16 sps:$4 sm:$0xff]   ;;  %v8293_v16 = vld [vmem:[#allocation9 + $0x46c] ss:$16 sps:$4 sm:$0xff]   ;;  %v8288_v17 = vld [vmem:[#allocation9 + $0x460] ss:$16 sps:$4 sm:$0xff]  }
 0x4dc   :  { %v8291_v18 = vld [vmem:[#allocation9 + $0x468] ss:$16 sps:$4 sm:$0xff]   ;;  %v8296_v58 = vld [vmem:[#allocation9 + $0x484] ss:$16 sps:$4 sm:$0xff]   ;;  %v8299_v4 = vld [vmem:[#allocation9 + $0x48c] ss:$16 sps:$4 sm:$0xff]  }
 0x4dd   :  { %v8360_v53 = vld [vmem:[#allocation10 + $0x110] ss:$12 sps:$4 sm:$0xff]   ;;  %v8333_v60 = vld [vmem:[#allocation10 + $0x78] ss:$12 sps:$4 sm:$0xff]  }
 0x4de   :  { %5070 = vmatpush1.bf16.msra.mxu1 %v8222_v33  ;;  %5193 = vmatpush1.bf16.msra.mxu0 %v8225_v19  ;;  %v8294_v33 = vld [vmem:[#allocation9 + $0x480] ss:$16 sps:$4 sm:$0xff]   ;;  %v8302_v19 = vld [vmem:[#allocation9 + $0x4a4] ss:$16 sps:$4 sm:$0xff]  }
 0x4df   :  { %5071 = vmatprep.subr.bf16.mxu1 %v8230_v24  ;;  %5194 = vmatprep.subr.bf16.mxu0 %v8233_v27  ;;  %v8300_v24 = vld [vmem:[#allocation9 + $0x4a0] ss:$16 sps:$4 sm:$0xff]   ;;  %v8303_v27 = vld [vmem:[#allocation9 + $0x4a8] ss:$16 sps:$4 sm:$0xff]  }
 0x4e2   :  { %5072 = vmatpush1.bf16.msra.mxu1 %v8228_v28  ;;  %5195 = vmatpush1.bf16.msra.mxu0 %v8231_v29  ;;  %v8308_v28 = vld [vmem:[#allocation9 + $0x4c4] ss:$16 sps:$4 sm:$0xff]   ;;  %v8311_v29 = vld [vmem:[#allocation9 + $0x4cc] ss:$16 sps:$4 sm:$0xff]  }
 0x4e3   :  { %5073 = vmatprep.subr.bf16.mxu1 %v8236_v30  ;;  %5196 = vmatprep.subr.bf16.mxu0 %v8239_v32  ;;  %v8306_v30 = vld [vmem:[#allocation9 + $0x4c0] ss:$16 sps:$4 sm:$0xff]   ;;  %v8309_v32 = vld [vmem:[#allocation9 + $0x4c8] ss:$16 sps:$4 sm:$0xff]  }
 0x4e6   :  { %5074 = vmatpush1.bf16.msra.mxu1 %v8234_v15  ;;  %5197 = vmatpush1.bf16.msra.mxu0 %v8237_v0  ;;  %v8314_v15 = vld [vmem:[#allocation9 + $0x4e4] ss:$16 sps:$4 sm:$0xff]   ;;  %v8317_v0 = vld [vmem:[#allocation9 + $0x4ec] ss:$16 sps:$4 sm:$0xff]  }
 0x4e7   :  { %5075 = vmatprep.subr.bf16.mxu1 %v8242_v34  ;;  %5198 = vmatprep.subr.bf16.mxu0 %v8245_v8  ;;  %v8312_v34 = vld [vmem:[#allocation9 + $0x4e0] ss:$16 sps:$4 sm:$0xff]   ;;  %v8315_v8 = vld [vmem:[#allocation9 + $0x4e8] ss:$16 sps:$4 sm:$0xff]  }
 0x4ea   :  { %5076 = vmatpush1.bf16.msra.mxu1 %v8240_v35  ;;  %5199 = vmatpush1.bf16.msra.mxu0 %v8243_v36  ;;  %v8320_v36 = vld [vmem:[#allocation10 + $0x4] ss:$12 sps:$4 sm:$0xff]  }
 0x4eb   :  { %5077 = vmatprep.subr.bf16.mxu1 %v8248_v46  ;;  %5200 = vmatprep.subr.bf16.mxu0 %v8251_v37  ;;  %v8345_v46 = vld [vmem:[#allocation10 + $0xc8] ss:$12 sps:$4 sm:$0xff]   ;;  %v8318_v37 = vld [vmem:[#allocation10] ss:$12 sps:$4 sm:$0xff]  }
 0x4ee   :  { %5078 = vmatpush1.bf16.msra.mxu1 %v8246_v38  ;;  %5201 = vmatpush1.bf16.msra.mxu0 %v8249_v39  ;;  %v8346_v38 = vld [vmem:[#allocation10 + $0x8] ss:$12 sps:$4 sm:$0xff]  }
 0x4ef   :  { %5079 = vmatprep.subr.bf16.mxu1 %v8254_v52  ;;  %5202 = vmatprep.subr.bf16.mxu0 %v8257_v41  ;;  %v8323_v52 = vld [vmem:[#allocation10 + $0x1c] ss:$12 sps:$4 sm:$0xff]   ;;  %v8350_v41 = vld [vmem:[#allocation10 + $0xe0] ss:$12 sps:$4 sm:$0xff]  }
 0x4f2   :  { %5080 = vmatpush1.bf16.msra.mxu1 %v8252_v42  ;;  %5203 = vmatpush1.bf16.msra.mxu0 %v8255_v43  ;;  %v8321_v42 = vld [vmem:[#allocation10 + $0x18] ss:$12 sps:$4 sm:$0xff]   ;;  %v8351_v43 = vld [vmem:[#allocation10 + $0x20] ss:$12 sps:$4 sm:$0xff]  }
 0x4f3   :  { %5081 = vmatprep.subr.bf16.mxu1 %v8260_v48  ;;  %5204 = vmatprep.subr.bf16.mxu0 %v8263_v49  ;;  %v8355_v48 = vld [vmem:[#allocation10 + $0xf8] ss:$12 sps:$4 sm:$0xff]   ;;  %v8324_v49 = vld [vmem:[#allocation10 + $0x30] ss:$12 sps:$4 sm:$0xff]  }
 0x4f4   :  { %v4013_v56 = vpop.f32.mrb[20].mxu0 }
 0x4f5   :  { %v8958_v57 = vadd.f32 %v4013_v56, %v3974_v21  ;;  %v7318_v59 = vpop.f32.mrb[21].mxu0  ;;  %v8305_v21 = vld [vmem:[#allocation9 + $0x4ac] ss:$16 sps:$4 sm:$0xff]   ;;  %v8332_v56 = vld [vmem:[#allocation10 + $0x64] ss:$12 sps:$4 sm:$0xff]  }
 0x4f6   :  { %5082 = vmatpush1.bf16.msra.mxu1 %v8258_v47  ;;  %5205 = vmatpush1.bf16.msra.mxu0 %v8261_v51  ;;  %v4016_v11 = vpop.f32.mrb[22].mxu0  ;;  %v8356_v47 = vld [vmem:[#allocation10 + $0x38] ss:$12 sps:$4 sm:$0xff]   ;;  %v8330_v59 = vld [vmem:[#allocation10 + $0x60] ss:$12 sps:$4 sm:$0xff]  }
 0x4f7   :  { %v7319_v40 = vpop.f32.mrb[23].mxu0  ;;  %5083 = vmatprep.subr.bf16.mxu1 %v8266_v54  ;;  %5206 = vmatprep.subr.bf16.mxu0 %v8269_v55  ;;  %v4023_v35 = vmax.f32 %v8958_v57, 0.0  ;;  %v8329_v51 = vld [vmem:[#allocation10 + $0x4c] ss:$12 sps:$4 sm:$0xff]   ;;  %v8327_v54 = vld [vmem:[#allocation10 + $0x48] ss:$12 sps:$4 sm:$0xff]  }
 0x4f8   :  { %v8361_v55 = vld [vmem:[#allocation10 + $0x50] ss:$12 sps:$4 sm:$0xff]   ;;  %v8365_v57 = vld [vmem:[#allocation10 + $0x128] ss:$12 sps:$4 sm:$0xff]   ;;  %v8371_v40 = vld [vmem:[#allocation10 + $0x80] ss:$12 sps:$4 sm:$0xff]  }
 0x4f9   :  { %v4190_v39 = vpack.c.bf16 %v4023_v35, %v4023_v35  ;;  %v8366_v11 = vld [vmem:[#allocation10 + $0x68] ss:$12 sps:$4 sm:$0xff]  }
 0x4fa   :  { %5084 = vmatpush1.bf16.msra.mxu1 %v8264_v25  ;;  %5207 = vmatpush1.bf16.msra.mxu0 %v8267_v5  ;;  %v8335_v25 = vld [vmem:[#allocation10 + $0x7c] ss:$12 sps:$4 sm:$0xff]   ;;  %v8370_v5 = vld [vmem:[#allocation10 + $0x140] ss:$12 sps:$4 sm:$0xff]  }
 0x4fb   :  { %5094 = vmatprep.subr.bf16.mxu1 %v8272_v62  ;;  %5217 = vmatprep.subr.bf16.mxu0 %v8275_v63  ;;  %v8338_v62 = vld [vmem:[#allocation10 + $0x94] ss:$12 sps:$4 sm:$0xff]   ;;  %v8336_v63 = vld [vmem:[#allocation10 + $0x90] ss:$12 sps:$4 sm:$0xff]  }
 0x4fd   :  { %5086 = vmatmul.mubr.bf16.vlgmr.msra.gmra.mrb[28].mxu1 %v4188_v1  ;;  %5209 = vmatmul.mubr.bf16.vlgmr.msra.gmra.mrb[24].mxu0 %v4188_v1  ;;  %v8344_v1 = vld [vmem:[#allocation10 + $0xc4] ss:$12 sps:$4 sm:$0xff]  }
 0x4fe   :  { %5095 = vmatpush1.bf16.msra.mxu1 %v8270_v14  ;;  %5218 = vmatpush1.bf16.msra.mxu0 %v8273_v31  ;;  %v8341_v14 = vld [vmem:[#allocation10 + $0xac] ss:$12 sps:$4 sm:$0xff]   ;;  %v8339_v31 = vld [vmem:[#allocation10 + $0xa8] ss:$12 sps:$4 sm:$0xff]  }
 0x4ff   :  { %5096 = vmatprep.subr.bf16.mxu1 %v8278_v2  ;;  %5219 = vmatprep.subr.bf16.mxu0 %v8281_v6  ;;  %v8342_v2 = vld [vmem:[#allocation10 + $0xc0] ss:$12 sps:$4 sm:$0xff]   ;;  %v8349_v6 = vld [vmem:[#allocation10 + $0xdc] ss:$12 sps:$4 sm:$0xff]  }
 0x500   :  { %5126 = vmatprep.mubr.bf16.mxu1 %v8648_v3  ;;  %5249 = vmatprep.mubr.bf16.mxu0 %v8648_v3  ;;  %v8297_v3 = vld [vmem:[#allocation9 + $0x488] ss:$16 sps:$4 sm:$0xff]  }
 0x502   :  { %5097 = vmatpush1.bf16.msra.mxu1 %v8276_v7  ;;  %5220 = vmatpush1.bf16.msra.mxu0 %v8279_v9  ;;  %v8347_v7 = vld [vmem:[#allocation10 + $0xd8] ss:$12 sps:$4 sm:$0xff]   ;;  %v8354_v9 = vld [vmem:[#allocation10 + $0xf4] ss:$12 sps:$4 sm:$0xff]  }
 0x503   :  { %5098 = vmatprep.subr.bf16.mxu1 %v8284_v10  ;;  %5221 = vmatprep.subr.bf16.mxu0 %v8287_v12  ;;  %v8352_v10 = vld [vmem:[#allocation10 + $0xf0] ss:$12 sps:$4 sm:$0xff]   ;;  %v8359_v12 = vld [vmem:[#allocation10 + $0x10c] ss:$12 sps:$4 sm:$0xff]  }
 0x506   :  { %5099 = vmatpush1.bf16.msra.mxu1 %v8282_v44  ;;  %5222 = vmatpush1.bf16.msra.mxu0 %v8285_v13  ;;  %v8357_v44 = vld [vmem:[#allocation10 + $0x108] ss:$12 sps:$4 sm:$0xff]   ;;  %v8364_v13 = vld [vmem:[#allocation10 + $0x124] ss:$12 sps:$4 sm:$0xff]  }
 0x507   :  { %5100 = vmatprep.subr.bf16.mxu1 %v8290_v50  ;;  %5223 = vmatprep.subr.bf16.mxu0 %v8293_v16  ;;  %v8362_v50 = vld [vmem:[#allocation10 + $0x120] ss:$12 sps:$4 sm:$0xff]   ;;  %v8369_v16 = vld [vmem:[#allocation10 + $0x13c] ss:$12 sps:$4 sm:$0xff]  }
 0x50a   :  { %5101 = vmatpush1.bf16.msra.mxu1 %v8288_v17  ;;  %5224 = vmatpush1.bf16.msra.mxu0 %v8291_v18  ;;  %v8367_v17 = vld [vmem:[#allocation10 + $0x138] ss:$12 sps:$4 sm:$0xff]   ;;  %v8374_v18 = vld [vmem:[#allocation10 + $0x154] ss:$12 sps:$4 sm:$0xff]  }
 0x50b   :  { %5102 = vmatprep.subr.bf16.mxu1 %v8296_v58  ;;  %5225 = vmatprep.subr.bf16.mxu0 %v8299_v4  ;;  %v8375_v58 = vld [vmem:[#allocation10 + $0x158] ss:$12 sps:$4 sm:$0xff]   ;;  %v8372_v4 = vld [vmem:[#allocation10 + $0x150] ss:$12 sps:$4 sm:$0xff]  }
 0x50e   :  { %5103 = vmatpush1.bf16.msra.mxu1 %v8294_v33  ;;  %5226 = vmatpush1.bf16.msra.mxu0 %v8297_v3  ;;  %v8376_v33 = vld [vmem:[#allocation10 + $0x98] ss:$12 sps:$4 sm:$0xff]  }
 0x50f   :  { %5104 = vmatprep.subr.bf16.mxu1 %v8302_v19  ;;  %5227 = vmatprep.subr.bf16.mxu0 %v8305_v21  ;;  %v8379_v3 = vld [vmem:[#allocation10 + $0x16c] ss:$12 sps:$4 sm:$0xff]   ;;  %v8380_v19 = vld [vmem:[#allocation10 + $0x170] ss:$12 sps:$4 sm:$0xff]   ;;  %v8377_v21 = vld [vmem:[#allocation10 + $0x168] ss:$12 sps:$4 sm:$0xff]  }
 0x512   :  { %5105 = vmatpush1.bf16.msra.mxu1 %v8300_v24  ;;  %5228 = vmatpush1.bf16.msra.mxu0 %v8303_v27  ;;  %v8381_v24 = vld [vmem:[#allocation10 + $0xb0] ss:$12 sps:$4 sm:$0xff]  }
 0x513   :  { %5106 = vmatprep.subr.bf16.mxu1 %v8308_v28  ;;  %5229 = vmatprep.subr.bf16.mxu0 %v8311_v29  ;;  %v8384_v27 = vld [vmem:[#allocation10 + $0x184] ss:$12 sps:$4 sm:$0xff]   ;;  %v8385_v28 = vld [vmem:[#allocation10 + $0x248] ss:$12 sps:$4 sm:$0xff]  }
 0x514   :  { %v8966_v29 = vld [vmem:[%s9009_s8 + $0x4] ss:$8 sm:$0xf] }
 0x516   :  { %5107 = vmatpush1.bf16.msra.mxu1 %v8306_v30  ;;  %5230 = vmatpush1.bf16.msra.mxu0 %v8309_v32  ;;  %v4195_v30 = vrot.slane %v8966_v29, %v8813_v22  ;;  %v4199_v32 = vrot.slane %v8966_v29, %v8816_v23 }
 0x517   :  { %5108 = vmatprep.subr.bf16.mxu1 %v8314_v15  ;;  %5231 = vmatprep.subr.bf16.mxu0 %v8317_v0  ;;  %v4207_v15 = vrot.slane %v8966_v29, %v8840_v26  ;;  %v8389_v26 = vld [vmem:[#allocation10 + $0x19c] ss:$12 sps:$4 sm:$0xff]  }
 0x51a   :  { %5109 = vmatpush1.bf16.msra.mxu1 %v8312_v34  ;;  %5232 = vmatpush1.bf16.msra.mxu0 %v8315_v8 }
 0x51b   :  { %5924 = vmatprep.subr.bf16.mxu1 %v8320_v36  ;;  %7219 = vmatprep.subr.bf16.mxu0 %v8345_v46 }
 0x51d   :  { %5127 = vmatmul.mubr.bf16.vlgmr.msra.gmra.mrb[28].mxu1 %v4190_v39  ;;  %5250 = vmatmul.mubr.bf16.vlgmr.msra.gmra.mrb[24].mxu0 %v4190_v39 }
 0x51e   :  { %5925 = vmatpush1.bf16.msra.mxu1 %v8318_v37  ;;  %7220 = vmatpush3.bf16.msra.mxu0 %v8346_v38 }
 0x51f   :  { %5926 = vmatprep.subr.bf16.mxu1 %v8323_v52  ;;  %7221 = vmatprep.subr.bf16.mxu0 %v8350_v41 }
 0x522   :  { %5927 = vmatpush1.bf16.msra.mxu1 %v8321_v42  ;;  %7222 = vmatpush3.bf16.msra.mxu0 %v8351_v43 }
 0x523   :  { %5928 = vmatprep.subr.bf16.mxu1 %v8326_v45  ;;  %7223 = vmatprep.subr.bf16.mxu0 %v8355_v48 }
 0x526   :  { %5929 = vmatpush1.bf16.msra.mxu1 %v8324_v49  ;;  %7224 = vmatpush3.bf16.msra.mxu0 %v8356_v47  ;;  %v8382_v49 = vld [vmem:[#allocation10 + $0x180] ss:$12 sps:$4 sm:$0xff]   ;;  %v8386_v47 = vld [vmem:[#allocation10 + $0x188] ss:$12 sps:$4 sm:$0xff]  }
 0x527   :  { %5930 = vmatprep.subr.bf16.mxu1 %v8329_v51  ;;  %7225 = vmatprep.subr.bf16.mxu0 %v8360_v53  ;;  %v8390_v53 = vld [vmem:[#allocation10 + $0x260] ss:$12 sps:$4 sm:$0xff]  }
 0x52a   :  { %5931 = vmatpush1.bf16.msra.mxu1 %v8327_v54  ;;  %7226 = vmatpush3.bf16.msra.mxu0 %v8361_v55  ;;  %v8387_v55 = vld [vmem:[#allocation10 + $0x198] ss:$12 sps:$4 sm:$0xff]  }
 0x52b   :  { %5932 = vmatprep.subr.bf16.mxu1 %v8332_v56  ;;  %7227 = vmatprep.subr.bf16.mxu0 %v8365_v57  ;;  %v8391_v56 = vld [vmem:[#allocation10 + $0x1a0] ss:$12 sps:$4 sm:$0xff]  }
 0x52c   :  { %v8394_v57 = vld [vmem:[#allocation10 + $0x1b4] ss:$12 sps:$4 sm:$0xff]  }
 0x52e   :  { %5933 = vmatpush1.bf16.msra.mxu1 %v8330_v59  ;;  %7228 = vmatpush3.bf16.msra.mxu0 %v8366_v11  ;;  %v8395_v59 = vld [vmem:[#allocation10 + $0x278] ss:$12 sps:$4 sm:$0xff]   ;;  %v8392_v11 = vld [vmem:[#allocation10 + $0x1b0] ss:$12 sps:$4 sm:$0xff]  }
 0x52f   :  { %5934 = vmatprep.subr.bf16.mxu1 %v8335_v25  ;;  %7229 = vmatprep.subr.bf16.mxu0 %v8370_v5  ;;  %v8396_v25 = vld [vmem:[#allocation10 + $0x1b8] ss:$12 sps:$4 sm:$0xff]  }
 0x530   :  { %v8399_v5 = vld [vmem:[#allocation10 + $0x1cc] ss:$12 sps:$4 sm:$0xff]  }
 0x532   :  { %5935 = vmatpush1.bf16.msra.mxu1 %v8333_v60  ;;  %7230 = vmatpush3.bf16.msra.mxu0 %v8371_v40  ;;  %v8400_v60 = vld [vmem:[#allocation10 + $0x290] ss:$12 sps:$4 sm:$0xff]   ;;  %v8397_v40 = vld [vmem:[#allocation10 + $0x1c8] ss:$12 sps:$4 sm:$0xff]  }
 0x533   :  { %5936 = vmatprep.subr.bf16.mxu1 %v8338_v62  ;;  %7231 = vmatprep.subr.bf16.mxu0 %v8375_v58  ;;  %v8401_v62 = vld [vmem:[#allocation10 + $0x1d0] ss:$12 sps:$4 sm:$0xff]   ;;  %v8417_v58 = vld [vmem:[#allocation10 + $0x228] ss:$12 sps:$4 sm:$0xff]  }
 0x536   :  { %5937 = vmatpush1.bf16.msra.mxu1 %v8336_v63  ;;  %7232 = vmatpush3.bf16.msra.mxu0 %v8376_v33  ;;  %v8404_v63 = vld [vmem:[#allocation10 + $0x1e4] ss:$12 sps:$4 sm:$0xff]  }
 0x537   :  { %5938 = vmatprep.subr.bf16.mxu1 %v8341_v14  ;;  %7233 = vmatprep.subr.bf16.mxu0 %v8380_v19  ;;  %v8405_v14 = vld [vmem:[#allocation10 + $0x2a8] ss:$12 sps:$4 sm:$0xff]   ;;  %v8422_v19 = vld [vmem:[#allocation10 + $0x240] ss:$12 sps:$4 sm:$0xff]  }
 0x53a   :  { %5939 = vmatpush1.bf16.msra.mxu1 %v8339_v31  ;;  %7234 = vmatpush3.bf16.msra.mxu0 %v8381_v24  ;;  %v8402_v31 = vld [vmem:[#allocation10 + $0x1e0] ss:$12 sps:$4 sm:$0xff]   ;;  %v8427_v24 = vld [vmem:[#allocation10 + $0x25c] ss:$12 sps:$4 sm:$0xff]  }
 0x53b   :  { %5940 = vmatprep.subr.bf16.mxu1 %v8344_v1  ;;  %7241 = vmatprep.subr.bf16.mxu0 %v8385_v28  ;;  %v8406_v1 = vld [vmem:[#allocation10 + $0x1e8] ss:$12 sps:$4 sm:$0xff]  }
 0x53c   :  { %v8430_v28 = vld [vmem:[#allocation10 + $0x274] ss:$12 sps:$4 sm:$0xff]  }
 0x53e   :  { %5941 = vmatpush1.bf16.msra.mxu1 %v8342_v2  ;;  %v8409_v2 = vld [vmem:[#allocation10 + $0x1fc] ss:$12 sps:$4 sm:$0xff]  }
 0x53f   :  { %5942 = vmatprep.subr.bf16.mxu1 %v8349_v6  ;;  %v8410_v6 = vld [vmem:[#allocation10 + $0x2c0] ss:$12 sps:$4 sm:$0xff]  }
 0x542   :  { %5943 = vmatpush1.bf16.msra.mxu1 %v8347_v7  ;;  %v8407_v7 = vld [vmem:[#allocation10 + $0x1f8] ss:$12 sps:$4 sm:$0xff]  }
 0x543   :  { %5944 = vmatprep.subr.bf16.mxu1 %v8354_v9  ;;  %v8411_v9 = vld [vmem:[#allocation10 + $0x200] ss:$12 sps:$4 sm:$0xff]  }
 0x546   :  { %5945 = vmatpush1.bf16.msra.mxu1 %v8352_v10  ;;  %v4203_v10 = vrot.slane %v8966_v29, %v8830_v61  ;;  %v8428_v29 = vld [vmem:[#allocation10 + $0x270] ss:$12 sps:$4 sm:$0xff]  }
 0x547   :  { %5946 = vmatprep.subr.bf16.mxu1 %v8359_v12  ;;  %v8414_v12 = vld [vmem:[#allocation10 + $0x214] ss:$12 sps:$4 sm:$0xff]  }
 0x54a   :  { %5947 = vmatpush1.bf16.msra.mxu1 %v8357_v44  ;;  %v8415_v44 = vld [vmem:[#allocation10 + $0x2d8] ss:$12 sps:$4 sm:$0xff]  }
 0x54b   :  { %5948 = vmatprep.subr.bf16.mxu1 %v8364_v13  ;;  %v8412_v13 = vld [vmem:[#allocation10 + $0x210] ss:$12 sps:$4 sm:$0xff]  }
 0x54e   :  { %5949 = vmatpush1.bf16.msra.mxu1 %v8362_v50  ;;  %v8416_v50 = vld [vmem:[#allocation10 + $0x218] ss:$12 sps:$4 sm:$0xff]  }
 0x54f   :  { %5950 = vmatprep.subr.bf16.mxu1 %v8369_v16 }
 0x552   :  { %5951 = vmatpush1.bf16.msra.mxu1 %v8367_v17  ;;  %v8419_v17 = vld [vmem:[#allocation10 + $0x22c] ss:$12 sps:$4 sm:$0xff]  }
 0x553   :  { %5952 = vmatprep.subr.bf16.mxu1 %v8374_v18  ;;  %v8420_v18 = vld [vmem:[#allocation10 + $0x2f0] ss:$12 sps:$4 sm:$0xff]  }
 0x556   :  { %5953 = vmatpush1.bf16.msra.mxu1 %v8372_v4  ;;  %v8421_v4 = vld [vmem:[#allocation10 + $0x230] ss:$12 sps:$4 sm:$0xff]  }
 0x557   :  { %5954 = vmatprep.subr.bf16.mxu1 %v8379_v3  ;;  %v8424_v3 = vld [vmem:[#allocation10 + $0x244] ss:$12 sps:$4 sm:$0xff]  }
 0x55a   :  { %5955 = vmatpush1.bf16.msra.mxu1 %v8377_v21 }
 0x55b   :  { %5965 = vmatprep.subr.bf16.mxu1 %v8384_v27  ;;  %v8425_v27 = vld [vmem:[#allocation10 + $0x258] ss:$12 sps:$4 sm:$0xff]  }
 0x5f0   :  { %v5128_v0 = vpop.f32.mrb[28].mxu1  ;;  %v8974_v34 = vpop.f32.mrb[24].mxu0 }
 0x5f1   :  { %v7352_v8 = vadd.f32 %v5128_v0, %v4195_v30  ;;  %v5130_v35 = vpop.f32.mrb[29].mxu1  ;;  %v5253_v36 = vpop.f32.mrb[25].mxu0  ;;  %v7354_v16 = vadd.f32 %v8974_v34, %v4203_v10  ;;  %v8433_v30 = vld [vmem:[#allocation10 + $0x28c] ss:$12 sps:$4 sm:$0xff]   ;;  %v8439_v34 = vld [vmem:[#allocation10 + $0x2bc] ss:$12 sps:$4 sm:$0xff]  }
 0x5f2   :  { %v7353_v46 = vadd.f32 %v5130_v35, %v4199_v32  ;;  %v7355_v37 = vadd.f32 %v5253_v36, %v4207_v15  ;;  %v5132_v38 = vpop.f32.mrb[30].mxu1  ;;  %v5255_v39 = vpop.f32.mrb[26].mxu0  ;;  %v8431_v32 = vld [vmem:[#allocation10 + $0x288] ss:$12 sps:$4 sm:$0xff]   ;;  %v8436_v15 = vld [vmem:[#allocation10 + $0x2a4] ss:$12 sps:$4 sm:$0xff]  }
 0x5f3   :  { %v5258_v52 = vmax.f32 %v7352_v8, 0.0  ;;  %v5133_v41 = vpop.f32.mrb[31].mxu1  ;;  %v5256_v42 = vpop.f32.mrb[27].mxu0  ;;  %v5260_v33 = vmax.f32 %v7354_v16, 0.0  ;;  %v8434_v0 = vld [vmem:[#allocation10 + $0x2a0] ss:$12 sps:$4 sm:$0xff]  }
 0x5f4   :  { %v5259_v43 = vmax.f32 %v7353_v46, 0.0  ;;  %v5261_v45 = vmax.f32 %v7355_v37, 0.0  ;;  %v8437_v8 = vld [vmem:[#allocation10 + $0x2b8] ss:$12 sps:$4 sm:$0xff]   ;;  %v8442_v35 = vld [vmem:[#allocation10 + $0x2d4] ss:$12 sps:$4 sm:$0xff]  }
 0x5f5   :  { %v5392_v51 = vpack.c.bf16 %v5258_v52, %v5258_v52  ;;  %v5394_v21 = vpack.c.bf16 %v5260_v33, %v5260_v33  ;;  %v8440_v36 = vld [vmem:[#allocation10 + $0x2d0] ss:$12 sps:$4 sm:$0xff]   ;;  %v8445_v46 = vld [vmem:[#allocation10 + $0x2ec] ss:$12 sps:$4 sm:$0xff]   ;;  %v8443_v37 = vld [vmem:[#allocation10 + $0x2e8] ss:$12 sps:$4 sm:$0xff]  }
 0x5f6   :  { %v5393_v48 = vpack.c.bf16 %v5259_v43, %v5259_v43  ;;  %v5395_v54 = vpack.c.bf16 %v5261_v45, %v5261_v45  ;;  %v8446_v38 = vld [vmem:[#allocation12 + $0x40] sm:$0xff]   ;;  %v8448_v52 = vld [vmem:[#allocation12 + $0x48] sm:$0xff]   ;;  %v8450_v42 = vld [vmem:[#allocation12 + $0x50] sm:$0xff]  }
 0x5f7   :  { %v8447_v39 = vld [vmem:[#allocation12] sm:$0xff]   ;;  %v8449_v41 = vld [vmem:[#allocation12 + $0x8] sm:$0xff]   ;;  %v8451_v43 = vld [vmem:[#allocation12 + $0x10] sm:$0xff]  }
 0x5f8   :  { %5956 = vmatprep.mubr.bf16.mxu1 %v5393_v48  ;;  %6038 = vmatprep.mubr.bf16.mxu0 %v5393_v48  ;;  %v8452_v45 = vld [vmem:[#allocation12 + $0x58] sm:$0xff]   ;;  %v8463_v33 = vld [vmem:[#allocation12 + $0x88] sm:$0xff]  }
 0x5f9   :  { %5957 = vmatmul.mubr.bf16.vlgmr.msra.gmra.mrb[32].mxu1 %v5392_v51  ;;  %6039 = vmatmul.mubr.bf16.vlgmr.msra.gmra.mrb[28].mxu0 %v5392_v51  ;;  %v8453_v48 = vld [vmem:[#allocation12 + $0x18] sm:$0xff]   ;;  %v8456_v51 = vld [vmem:[#allocation12 + $0x68] sm:$0xff]  }
 0x5fa   :  { %5966 = vmatpush1.bf16.msra.mxu1 %v8382_v49  ;;  %7242 = vmatpush3.bf16.msra.mxu0 %v8386_v47  ;;  %v8454_v49 = vld [vmem:[#allocation12 + $0x60] sm:$0xff]  }
 0x5fb   :  { %5997 = vmatprep.mubr.bf16.mxu1 %v5395_v54  ;;  %6078 = vmatprep.mubr.bf16.mxu0 %v5395_v54  ;;  %v8455_v47 = vld [vmem:[#allocation12 + $0x20] sm:$0xff]   ;;  %v8459_v54 = vld [vmem:[#allocation12 + $0x30] sm:$0xff]  }
 0x5fc   :  { %5967 = vmatprep.subr.bf16.mxu1 %v8389_v26  ;;  %7243 = vmatprep.subr.bf16.mxu0 %v8390_v53  ;;  %v8457_v26 = vld [vmem:[#allocation12 + $0x28] sm:$0xff]   ;;  %v8458_v53 = vld [vmem:[#allocation12 + $0x70] sm:$0xff]  }
 0x5fe   :  { %5968 = vmatpush1.bf16.msra.mxu1 %v8387_v55  ;;  %7244 = vmatpush3.bf16.msra.mxu0 %v8391_v56  ;;  %v8460_v55 = vld [vmem:[#allocation12 + $0x78] sm:$0xff]  }
 0x5ff   :  { %5969 = vmatprep.subr.bf16.mxu1 %v8394_v57  ;;  %7245 = vmatprep.subr.bf16.mxu0 %v8395_v59  ;;  %v8461_v56 = vld [vmem:[#allocation12 + $0x38] sm:$0xff]  }
 0x602   :  { %5970 = vmatpush1.bf16.msra.mxu1 %v8392_v11  ;;  %7246 = vmatpush3.bf16.msra.mxu0 %v8396_v25 }
 0x603   :  { %5971 = vmatprep.subr.bf16.mxu1 %v8399_v5  ;;  %7247 = vmatprep.subr.bf16.mxu0 %v8400_v60  ;;  %v6999_v60 = vld [vmem:[%s9009_s8 + $0x5] ss:$8 sm:$0x7] }
 0x606   :  { %5972 = vmatpush1.bf16.msra.mxu1 %v8397_v40  ;;  %7248 = vmatpush3.bf16.msra.mxu0 %v8401_v62  ;;  %v5408_v40 = vrot.slane %v6999_v60, %v8830_v61 }
 0x607   :  { %5973 = vmatprep.subr.bf16.mxu1 %v8404_v63  ;;  %7249 = vmatprep.subr.bf16.mxu0 %v8405_v14 }
 0x60a   :  { %5974 = vmatpush1.bf16.msra.mxu1 %v8402_v31  ;;  %7250 = vmatpush3.bf16.msra.mxu0 %v8406_v1 }
 0x60b   :  { %5975 = vmatprep.subr.bf16.mxu1 %v8409_v2  ;;  %7251 = vmatprep.subr.bf16.mxu0 %v8410_v6 }
 0x60e   :  { %5976 = vmatpush1.bf16.msra.mxu1 %v8407_v7  ;;  %7252 = vmatpush3.bf16.msra.mxu0 %v8411_v9  ;;  %v5400_v7 = vrot.slane %v6999_v60, %v8813_v22  ;;  %v5404_v9 = vrot.slane %v6999_v60, %v8816_v23  ;;  %v8464_v22 = vld [vmem:[#allocation12 + $0x90] sm:$0xff]   ;;  %v8465_v23 = vld [vmem:[#allocation12 + $0x98] sm:$0xff]  }
 0x60f   :  { %5977 = vmatprep.subr.bf16.mxu1 %v8414_v12  ;;  %7253 = vmatprep.subr.bf16.mxu0 %v8415_v44 }
 0x612   :  { %5978 = vmatpush1.bf16.msra.mxu1 %v8412_v13  ;;  %7254 = vmatpush3.bf16.msra.mxu0 %v8416_v50 }
 0x613   :  { %5979 = vmatprep.subr.bf16.mxu1 %v8419_v17  ;;  %7255 = vmatprep.subr.bf16.mxu0 %v8420_v18 }
 0x616   :  { %5980 = vmatpush1.bf16.msra.mxu1 %v8417_v58  ;;  %7256 = vmatpush3.bf16.msra.mxu0 %v8421_v4  ;;  %v8462_v58 = vld [vmem:[#allocation12 + $0x80] sm:$0xff]  }
 0x617   :  { %5981 = vmatprep.subr.bf16.mxu1 %v8424_v3  ;;  %7263 = vmatprep.subr.bf16.mxu0 %v8446_v38  ;;  %v8466_v3 = vld [vmem:[#allocation12 + $0xa0] sm:$0xff]  }
 0x619   :  { %6079 = vmatmul.mubr.bf16.vlgmr.msra.gmra.mrb[32].mxu0 %v5394_v21 }
 0x61a   :  { %5982 = vmatpush1.bf16.msra.mxu1 %v8422_v19  ;;  %7264 = vmatpush3.bf16.msra.mxu0 %v8447_v39  ;;  %v8467_v19 = vld [vmem:[#allocation12 + $0xa8] sm:$0xff]  }
 0x61b   :  { %5983 = vmatprep.subr.bf16.mxu1 %v8427_v24  ;;  %7265 = vmatprep.subr.bf16.mxu0 %v8448_v52  ;;  %v8469_v24 = vld [vmem:[#allocation12 + $0xb8] sm:$0xff]  }
 0x61e   :  { %5984 = vmatpush1.bf16.msra.mxu1 %v8425_v27  ;;  %7266 = vmatpush3.bf16.msra.mxu0 %v8449_v41 }
 0x61f   :  { %5985 = vmatprep.subr.bf16.mxu1 %v8430_v28  ;;  %7267 = vmatprep.subr.bf16.mxu0 %v8450_v42 }
 0x622   :  { %5986 = vmatpush1.bf16.msra.mxu1 %v8428_v29  ;;  %7268 = vmatpush3.bf16.msra.mxu0 %v8451_v43 }
 0x623   :  { %5987 = vmatprep.subr.bf16.mxu1 %v8433_v30  ;;  %7269 = vmatprep.subr.bf16.mxu0 %v8452_v45 }
 0x626   :  { %5988 = vmatpush1.bf16.msra.mxu1 %v8431_v32  ;;  %7270 = vmatpush3.bf16.msra.mxu0 %v8453_v48 }
 0x627   :  { %5989 = vmatprep.subr.bf16.mxu1 %v8436_v15  ;;  %7271 = vmatprep.subr.bf16.mxu0 %v8454_v49 }
 0x62a   :  { %5990 = vmatpush1.bf16.msra.mxu1 %v8434_v0  ;;  %7272 = vmatpush3.bf16.msra.mxu0 %v8455_v47 }
 0x62b   :  { %5991 = vmatprep.subr.bf16.mxu1 %v8439_v34  ;;  %7273 = vmatprep.subr.bf16.mxu0 %v8456_v51  ;;  %v6137_v34 = vld [vmem:[%s9009_s8 + $0x6] ss:$0 sm:$0xff] }
 0x62e   :  { %5992 = vmatpush1.bf16.msra.mxu1 %v8437_v8  ;;  %7274 = vmatpush3.bf16.msra.mxu0 %v8457_v26 }
 0x62f   :  { %5993 = vmatprep.subr.bf16.mxu1 %v8442_v35  ;;  %7275 = vmatprep.subr.bf16.mxu0 %v8458_v53 }
 0x632   :  { %5994 = vmatpush1.bf16.msra.mxu1 %v8440_v36  ;;  %7276 = vmatpush3.bf16.msra.mxu0 %v8459_v54 }
 0x633   :  { %5995 = vmatprep.subr.bf16.mxu1 %v8445_v46  ;;  %7277 = vmatprep.subr.bf16.mxu0 %v8460_v55 }
 0x636   :  { %5996 = vmatpush1.bf16.msra.mxu1 %v8443_v37  ;;  %7278 = vmatpush3.bf16.msra.mxu0 %v8461_v56 }
 0x637   :  { %7320 = vmatprep.subr.bf16.mxu0 %v8649_v20 }
 0x639   :  { %5998 = vmatmul.mubr.bf16.vlgmr.msra.gmra.mrb[32].mxu1 %v5394_v21  ;;  %v8468_v21 = vld [vmem:[#allocation12 + $0xb0] sm:$0xff]  }
 0x6cc   :  { %v7235_v57 = vpop.f32.mrb[28].mxu0 }
 0x6cd   :  { %v7236_v59 = vpop.f32.mrb[29].mxu0 }
 0x6ce   :  { %v7237_v11 = vadd.f32 %v7236_v59, %v7235_v57  ;;  %v7238_v25 = vpop.f32.mrb[30].mxu0 }
 0x6cf   :  { %v7239_v5 = vpop.f32.mrb[31].mxu0 }
 0x6d0   :  { %v6041_v14 = vadd.f32 %v7237_v11, %v5408_v40 }
 0x6ec   :  { %v7257_v62 = vpop.f32.mrb[32].mxu0 }
 0x6ed   :  { %v7258_v63 = vpop.f32.mrb[33].mxu0 }
 0x6ee   :  { %v7259_v31 = vadd.f32 %v7258_v63, %v7257_v62  ;;  %v7260_v1 = vpop.f32.mrb[34].mxu0 }
 0x6ef   :  { %v7261_v2 = vpop.f32.mrb[35].mxu0 }
 0x6f0   :  { %v6081_v6 = vadd.f32 %v7259_v31, %v6041_v14 }
 0x6f2   :  { %v6088_v27 = vmax.f32 %v6081_v6, 0.0 }
 0x6f4   :  { %v6140_v28 = vpack.c.bf16 %v6088_v27, %v6088_v27 }
 0x70c   :  { %v5999_v10 = vpop.f32.mrb[32].mxu1 }
 0x70d   :  { %v7356_v12 = vadd.f32 %v5999_v10, %v5400_v7  ;;  %v6001_v44 = vpop.f32.mrb[33].mxu1 }
 0x70e   :  { %v7357_v13 = vadd.f32 %v6001_v44, %v5404_v9  ;;  %v6003_v50 = vpop.f32.mrb[34].mxu1 }
 0x70f   :  { %v6086_v16 = vmax.f32 %v7356_v12, 0.0  ;;  %v6004_v17 = vpop.f32.mrb[35].mxu1 }
 0x710   :  { %v6087_v18 = vmax.f32 %v7357_v13, 0.0 }
 0x711   :  { %v6138_v4 = vpack.c.bf16 %v6086_v16, %v6086_v16 }
 0x712   :  { %v6139_v61 = vpack.c.bf16 %v6087_v18, %v6087_v18 }
 0x714   :  { %6317 = vmatprep.mubr.bf16.mxu0 %v6139_v61 }
 0x715   :  { %6318 = vmatmul.mubr.bf16.vlgmr.msra.gmra.mrb[36].mxu0 %v6138_v4 }
 0x716   :  { %7321 = vmatpush3.bf16.msra.mxu0 %v8462_v58  ;;  %7336 = vmatprep.mubr.msk.bf16.mxu0 %vm8650_vm2, %v8649_v20 }
 0x717   :  { %7322 = vmatprep.subr.bf16.mxu0 %v8649_v20 }
 0x71a   :  { %7323 = vmatpush3.bf16.msra.mxu0 %v8463_v33 }
 0x71b   :  { %7324 = vmatprep.subr.bf16.mxu0 %v8649_v20 }
 0x71e   :  { %7325 = vmatpush3.bf16.msra.mxu0 %v8464_v22 }
 0x71f   :  { %7326 = vmatprep.subr.bf16.mxu0 %v8649_v20 }
 0x722   :  { %7327 = vmatpush3.bf16.msra.mxu0 %v8465_v23 }
 0x723   :  { %7328 = vmatprep.subr.bf16.mxu0 %v8649_v20 }
 0x726   :  { %7329 = vmatpush3.bf16.msra.mxu0 %v8466_v3 }
 0x727   :  { %7330 = vmatprep.subr.bf16.mxu0 %v8649_v20 }
 0x72a   :  { %7331 = vmatpush3.bf16.msra.mxu0 %v8467_v19 }
 0x72b   :  { %7332 = vmatprep.subr.bf16.mxu0 %v8649_v20 }
 0x72e   :  { %7333 = vmatpush3.bf16.msra.mxu0 %v8468_v21 }
 0x72f   :  { %7334 = vmatprep.subr.bf16.mxu0 %v8649_v20 }
 0x732   :  { %7335 = vmatpush3.bf16.msra.mxu0 %v8469_v24 }
 0x735   :  { %7337 = vmatmul.mubr.bf16.vlgmr.msra.gmra.mrb[40].mxu0 %v6140_v28 }
 0x7e8   :  { %v7279_v29 = vpop.f32.mrb[36].mxu0 }
 0x7e9   :  { %v7280_v30 = vpop.f32.mrb[37].mxu0 }
 0x7ea   :  { %v7281_v32 = vadd.f32 %v7280_v30, %v7279_v29  ;;  %v7282_v15 = vpop.f32.mrb[38].mxu0 }
 0x7eb   :  { %v7283_v0 = vpop.f32.mrb[39].mxu0 }
 0x7ec   :  { %v6320_v8 = vadd.f32 %v7281_v32, %v6137_v34 }
 0x808   :  { %v6359_v35 = vpop.f32.mrb[40].mxu0 }
 0x809   :  { %v6360_v36 = vadd.f32 %v6359_v35, %v6320_v8  ;;  %v7338_v46 = vpop.f32.mrb[41].mxu0 }
 0x80a   :  { %v6362_v37 = vpop.f32.mrb[42].mxu0 }
 0x80b   :  { %6365 = vst [vmem:[%s9010_s9] sm:$0xff] %v6360_v36  ;;  %v7339_v20 = vpop.f32.mrb[43].mxu0 }
 0x80c   :  { %6370 = vsyncpa [#allocation3], 1 }
 0x80d   :  { %6371 = vsyncpa [#allocation5], 1 }
 0x80e   :  { %6372 = vsyncpa [#allocation8], 1 }
 0x80f   :  { %6373 = vsyncpa [#allocation11], 1 }

</bundles_post_ra>
